<compile_context>
chip_gen: v7x
topology: tpu7x:2x2x1
jax: 0.10.0
libtpu: 0.0.40
codegen_flags: <defaults>
</compile_context>

<pallas_src>
import functools

import jax
import jax.numpy as jnp
from jax.experimental import pallas as pl
from jax.experimental.pallas import tpu as pltpu


LANES = 128       # TPU lane width; fc hidden (90) is zero-padded up to this
FC_HIDDEN = 90    # nn.Linear(*, 90)
MAX_TILE_ELEMS = 6144            # cap on block_b*block_s (bf16 h tiles:
                                 # 2 inputs x 2 bufs x 6144*768*2B ~= 38 MiB)
VMEM_LIMIT_BYTES = 50 * 1024 * 1024   # safe on v7x (64 MiB phys), fine on v5e/v6e


def _round_up(x, m):
    return ((x + m - 1) // m) * m


def _pad_axis_to(x, axis, target):
    size = x.shape[axis]
    if size == target:
        return x
    widths = [(0, 0)] * x.ndim
    widths[axis] = (0, target - size)
    return jnp.pad(x, widths)


# ----------------------------------------------------------------------------
# Shared in-kernel head: mix_result + fc + optional sigmoid
# ----------------------------------------------------------------------------
def _mix_fc_head(e1, e2, w1_ref, b1_ref, w2_ref, b2_ref, res_opt, sig):
    if res_opt == 4:
        # nn.CosineSimilarity(dim=1, eps=1e-6), then unsqueeze(1)
        num = jnp.sum(e1 * e2, axis=1, keepdims=True)
        n1 = jnp.maximum(jnp.sqrt(jnp.sum(e1 * e1, axis=1, keepdims=True)), 1e-6)
        n2 = jnp.maximum(jnp.sqrt(jnp.sum(e2 * e2, axis=1, keepdims=True)), 1e-6)
        out = num / (n1 * n2)
    else:
        if res_opt == 1:
            feat = jnp.abs(e1 - e2)
        elif res_opt == 2:
            feat = jnp.abs(e1 + e2)
        else:  # res_opt == 3: stack(dim=1).view(-1, 2H) == feature concat
            feat = jnp.concatenate([e1, e2], axis=1)
        # fc1: (Bt, fc_in) @ (fc_in, 128) MXU pass; padded lanes are 0.
        z1 = jnp.dot(feat, w1_ref[...],
                     preferred_element_type=jnp.float32) + b1_ref[...]
        a1 = jnp.maximum(z1, 0.0)
        # fc2 (90 -> 1): VPU multiply + lane reduce (w2 lane-dense, padded).
        out = jnp.sum(a1 * w2_ref[...], axis=1, keepdims=True) + b2_ref[...]
    if sig == 1:
        out = jax.nn.sigmoid(out)
    return out


# ----------------------------------------------------------------------------
# Kernel builders
# ----------------------------------------------------------------------------
def _make_single_step_kernel(emb_opt, res_opt, sig, seq_len):
    """Grid over batch only: the whole (CLS tile or full-seq) block fits in VMEM."""
    inv_s = 1.0 / float(seq_len)

    def kernel(h1_ref, h2_ref, w1_ref, b1_ref, w2_ref, b2_ref, o_ref):
        if emb_opt == 1:
            # CLS token: only the first seq tile was DMA'd (index_map pins 0).
            e1 = h1_ref[:, 0, :].astype(jnp.float32)
            e2 = h2_ref[:, 0, :].astype(jnp.float32)
        else:
            # mean over seq: full S resident in this tile, f32 accumulation.
            e1 = jnp.sum(h1_ref[...].astype(jnp.float32), axis=1) * inv_s
            e2 = jnp.sum(h2_ref[...].astype(jnp.float32), axis=1) * inv_s
        out = _mix_fc_head(e1, e2, w1_ref, b1_ref, w2_ref, b2_ref, res_opt, sig)
        # Lane-dense (Bt, 128) store (unmasked vst); wrapper slices (B, 1).
        o_ref[...] = jnp.broadcast_to(out, o_ref.shape)

    return kernel


def _make_multi_step_kernel(res_opt, sig, seq_len):
    """Grid (batch, seq): seq is an inner 'arbitrary' reduction axis (mean only)."""
    inv_s = 1.0 / float(seq_len)

    def kernel(h1_ref, h2_ref, w1_ref, b1_ref, w2_ref, b2_ref, o_ref,
               acc1, acc2):
        s = pl.program_id(1)
        part1 = jnp.sum(h1_ref[...].astype(jnp.float32), axis=1)
        part2 = jnp.sum(h2_ref[...].astype(jnp.float32), axis=1)

        @pl.when(s == 0)
        def _():
            acc1[...] = part1      # write-through init (no zero + add)
            acc2[...] = part2

        @pl.when(s > 0)
        def _():
            acc1[...] += part1
            acc2[...] += part2

        @pl.when(s == pl.num_programs(1) - 1)
        def _():
            e1 = acc1[...] * inv_s
            e2 = acc2[...] * inv_s
            out = _mix_fc_head(e1, e2, w1_ref, b1_ref, w2_ref, b2_ref,
                               res_opt, sig)
            o_ref[...] = jnp.broadcast_to(out, o_ref.shape)

    return kernel


# ----------------------------------------------------------------------------
# Tile selection (generation-safe VMEM budget, megacore-friendly batch tiles)
# ----------------------------------------------------------------------------
def _choose_tiles(batch, seq, emb_opt, seq_tile_cap, max_tile_elems):
    if emb_opt == 1:
        block_s = seq if seq <= 16 else 16     # only the CLS row is needed
    elif seq <= seq_tile_cap:
        block_s = seq                          # collapse the seq grid axis
    else:
        block_s = seq_tile_cap                 # multiple of 16 by construction

    target_b = max(8, (max_tile_elems // max(block_s, 1)) // 8 * 8)
    block_b = min(64, target_b)
    batch_p = _round_up(batch, 8)
    if batch_p >= 16:
        # keep at least 2 batch tiles so v7x's two TCs can split the grid
        block_b = min(block_b, max(8, (batch_p // 2) // 8 * 8))
    block_b = min(block_b, batch_p)
    return block_b, block_s


# ----------------------------------------------------------------------------
# Wrapper: seq reduction + mix_result + fc head + sigmoid (tiled Pallas call)
# ----------------------------------------------------------------------------
def siamese_head_pallas(h1, h2, w1, b1, w2, b2, *, emb_opt, res_opt, sig,
                        seq_tile_cap=256, max_tile_elems=MAX_TILE_ELEMS):
    """h1, h2: (B, S, H) bfloat16 hidden states; returns (B, 1) float32."""
    B, S, H = h1.shape
    assert h2.shape == (B, S, H)
    if emb_opt in (3, 4, 5):
        # TODO(synk): emb_opt 3/4/5 need pooler_output / per-layer
        # hidden_states from a real BERT; fall back to mean pooling.
        emb_opt = 2
    assert seq_tile_cap % 16 == 0

    block_b, block_s = _choose_tiles(B, S, emb_opt, seq_tile_cap,
                                     max_tile_elems)

    # Zero-pad batch to a tile multiple (padded rows sliced off at the end).
    Bp = _round_up(B, block_b)
    h1p = _pad_axis_to(h1, 0, Bp)
    h2p = _pad_axis_to(h2, 0, Bp)

    seq_steps = 1
    if emb_opt != 1 and block_s < S:
        Sp = _round_up(S, block_s)
        # zero rows do not change the seq sum; mean still divides by true S
        h1p = _pad_axis_to(h1p, 1, Sp)
        h2p = _pad_axis_to(h2p, 1, Sp)
        seq_steps = Sp // block_s

    fc_in = w1.shape[0]
    # Zero-pad fc params to 128 lanes for clean MXU tiles / unmasked stores.
    w1_pad = jnp.zeros((fc_in, LANES), jnp.float32).at[:, :FC_HIDDEN].set(w1)
    b1_pad = jnp.zeros((1, LANES), jnp.float32).at[:, :FC_HIDDEN].set(
        b1.reshape(1, -1))
    w2_pad = jnp.zeros((1, LANES), jnp.float32).at[:, :FC_HIDDEN].set(
        w2.reshape(1, -1))          # w2 stored transposed, lane-dense
    b2_2d = b2.reshape(1, 1).astype(jnp.float32)

    out_shape = jax.ShapeDtypeStruct((Bp, LANES), jnp.float32)

    if seq_steps == 1:
        grid = (Bp // block_b,)
        kernel = _make_single_step_kernel(emb_opt, res_opt, sig, S)
        in_specs = [
            pl.BlockSpec((block_b, block_s, H), lambda b: (b, 0, 0)),
            pl.BlockSpec((block_b, block_s, H), lambda b: (b, 0, 0)),
            # fc params: constant block index -> DMA'd once, VMEM-resident
            pl.BlockSpec((fc_in, LANES), lambda b: (0, 0)),
            pl.BlockSpec((1, LANES), lambda b: (0, 0)),
            pl.BlockSpec((1, LANES), lambda b: (0, 0)),
            pl.BlockSpec((1, 1), lambda b: (0, 0)),
        ]
        out_specs = pl.BlockSpec((block_b, LANES), lambda b: (b, 0))
        scratch_shapes = []
        dim_sem = ("parallel",)
    else:
        grid = (Bp // block_b, seq_steps)
        kernel = _make_multi_step_kernel(res_opt, sig, S)
        in_specs = [
            pl.BlockSpec((block_b, block_s, H), lambda b, s: (b, s, 0)),
            pl.BlockSpec((block_b, block_s, H), lambda b, s: (b, s, 0)),
            pl.BlockSpec((fc_in, LANES), lambda b, s: (0, 0)),
            pl.BlockSpec((1, LANES), lambda b, s: (0, 0)),
            pl.BlockSpec((1, LANES), lambda b, s: (0, 0)),
            pl.BlockSpec((1, 1), lambda b, s: (0, 0)),
        ]
        out_specs = pl.BlockSpec((block_b, LANES), lambda b, s: (b, 0))
        scratch_shapes = [
            pltpu.VMEM((block_b, H), jnp.float32),   # e1 partial-sum acc
            pltpu.VMEM((block_b, H), jnp.float32),   # e2 partial-sum acc
        ]
        dim_sem = ("parallel", "arbitrary")

    out_padded = pl.pallas_call(
        kernel,
        out_shape=out_shape,
        grid_spec=pltpu.PrefetchScalarGridSpec(
            num_scalar_prefetch=0,
            grid=grid,
            in_specs=in_specs,
            out_specs=out_specs,
            scratch_shapes=scratch_shapes,
        ),
        compiler_params=pltpu.CompilerParams(
            dimension_semantics=dim_sem,
            vmem_limit_bytes=VMEM_LIMIT_BYTES,
        ),
    )(h1p, h2p, w1_pad, b1_pad, w2_pad, b2_2d)
    return out_padded[:B, :1]


# ----------------------------------------------------------------------------
# Full module (encoder glue + Pallas head)
# ----------------------------------------------------------------------------
class SiameseNetworkPallas:
    HIDDEN = 768  # fixed by nn.Linear(768 [or 1536], 90) in the reference

    def __init__(self, emb_opt, res_opt, sig, *, vocab_size, max_seq, key,
                 seq_tile_cap=256):
        self.emb_opt = emb_opt
        self.res_opt = res_opt
        self.sig = sig
        self.seq_tile_cap = seq_tile_cap
        H = self.HIDDEN
        fc_in = H * 2 if res_opt == 3 else H

        k_emb, k_pos, k_w1, k_b1, k_w2, k_b2 = jax.random.split(key, 6)
        # TODO(synk): pretrained BERT encoder (AutoModel) is not replicated;
        # replaced by a deterministic token + position embedding lookup.
        self.emb_table = 0.02 * jax.random.normal(k_emb, (vocab_size, H),
                                                  dtype=jnp.float32)
        self.pos_table = 0.02 * jax.random.normal(k_pos, (max_seq, H),
                                                  dtype=jnp.float32)
        # fc parameters (same shapes as the PyTorch module)
        self.w1 = 0.05 * jax.random.normal(k_w1, (fc_in, 90), dtype=jnp.float32)
        self.b1 = 0.01 * jax.random.normal(k_b1, (90,), dtype=jnp.float32)
        self.w2 = 0.05 * jax.random.normal(k_w2, (90, 1), dtype=jnp.float32)
        self.b2 = 0.01 * jax.random.normal(k_b2, (1,), dtype=jnp.float32)

    def _encoder(self, input_ids, token_type_ids, attention_mask):
        # Synthetic stand-in for BERT last_hidden_state: (B, S, H), bf16 so
        # the mem-bound Pallas head reads half the HBM bytes.
        # TODO(synk): fusing the embedding gather + tanh into the kernel
        # (manual DMA gather) would remove this HBM round trip entirely.
        del token_type_ids, attention_mask  # unused by synthetic encoder
        S = input_ids.shape[1]
        h = self.emb_table[input_ids] + self.pos_table[None, :S, :]
        return jnp.tanh(h).astype(jnp.bfloat16)

    @functools.partial(jax.jit, static_argnums=0)
    def forward(self, input_ids1, token_type_ids1, attention_mask1,
                input_ids2, token_type_ids2, attention_mask2):
        h1 = self._encoder(input_ids1, token_type_ids1, attention_mask1)
        h2 = self._encoder(input_ids2, token_type_ids2, attention_mask2)
        return siamese_head_pallas(
            h1, h2, self.w1, self.b1, self.w2, self.b2,
            emb_opt=self.emb_opt, res_opt=self.res_opt, sig=self.sig,
            seq_tile_cap=self.seq_tile_cap)


# ----------------------------------------------------------------------------
# Pure-JAX reference of the head (correctness sanity check)
# ----------------------------------------------------------------------------
def _head_ref(h1, h2, w1, b1, w2, b2, *, emb_opt, res_opt, sig):
    e1 = h1[:, 0, :] if emb_opt == 1 else jnp.mean(h1, axis=1)
    e2 = h2[:, 0, :] if emb_opt == 1 else jnp.mean(h2, axis=1)
    if res_opt == 4:
        num = jnp.sum(e1 * e2, axis=1, keepdims=True)
        n1 = jnp.maximum(jnp.linalg.norm(e1, axis=1, keepdims=True), 1e-6)
        n2 = jnp.maximum(jnp.linalg.norm(e2, axis=1, keepdims=True), 1e-6)
        out = num / (n1 * n2)
    else:
        if res_opt == 1:
            feat = jnp.abs(e1 - e2)
        elif res_opt == 2:
            feat = jnp.abs(e1 + e2)
        else:
            feat = jnp.concatenate([e1, e2], axis=1)
        out = jnp.maximum(feat @ w1 + b1, 0.0) @ w2 + b2
    return jax.nn.sigmoid(out) if sig == 1 else out


if __name__ == "__main__":
    # Small demo shapes (H fixed at 768 by the module's fc layer).
    B, S, VOCAB = 16, 64, 128
    key = jax.random.PRNGKey(0)
    k_model, k_ids1, k_ids2 = jax.random.split(key, 3)

    input_ids1 = jax.random.randint(k_ids1, (B, S), 0, VOCAB, dtype=jnp.int32)
    input_ids2 = jax.random.randint(k_ids2, (B, S), 0, VOCAB, dtype=jnp.int32)
    token_type_ids = jnp.zeros((B, S), dtype=jnp.int32)
    attention_mask = jnp.ones((B, S), dtype=jnp.int32)

    def _check(net, cfg):
        out = net.forward(input_ids1, token_type_ids, attention_mask,
                          input_ids2, token_type_ids, attention_mask)
        out = jax.block_until_ready(out)
        assert out.shape == (B, 1), out.shape
        h1 = net._encoder(input_ids1, token_type_ids, attention_mask)
        h2 = net._encoder(input_ids2, token_type_ids, attention_mask)
        ref = _head_ref(h1.astype(jnp.float32), h2.astype(jnp.float32),
                        net.w1, net.b1, net.w2, net.b2, **cfg)
        assert jnp.allclose(out, ref, atol=2e-3, rtol=2e-3), (cfg, out[:4], ref[:4])

    configs = [
        dict(emb_opt=2, res_opt=1, sig=1),   # mean + |e1-e2| + fc + sigmoid (single seq step)
        dict(emb_opt=1, res_opt=3, sig=0),   # CLS + concat + fc (CLS grid trim)
        dict(emb_opt=2, res_opt=4, sig=1),   # mean + cosine + sigmoid
    ]
    for cfg in configs:
        net = SiameseNetworkPallas(vocab_size=VOCAB, max_seq=S, key=k_model,
                                   **cfg)
        _check(net, cfg)

    # Also exercise the multi-step seq-reduction path by capping the seq tile.
    cfg = dict(emb_opt=2, res_opt=1, sig=1)
    net = SiameseNetworkPallas(vocab_size=VOCAB, max_seq=S, key=k_model,
                               seq_tile_cap=16, **cfg)
    _check(net, cfg)

    print("KERNEL_OK")
</pallas_src>

<mosaic_0001>
module attributes {stable_mosaic.version = 11 : i64} {
  func.func @kernel(%arg0: i32, %arg1: memref<8x64x768xbf16, #tpu.memory_space<vmem>>, %arg2: memref<8x64x768xbf16, #tpu.memory_space<vmem>>, %arg3: memref<768x128xf32, #tpu.memory_space<vmem>>, %arg4: memref<1x128xf32, #tpu.memory_space<vmem>>, %arg5: memref<1x128xf32, #tpu.memory_space<vmem>>, %arg6: memref<1x1xf32, #tpu.memory_space<vmem>>, %arg7: memref<8x128xf32, #tpu.memory_space<vmem>>) attributes {dimension_semantics = [#tpu.dimension_semantics<parallel>], iteration_bounds = array<i64: 2>, scalar_prefetch = 0 : i64, scratch_operands = 0 : i64, tpu.core_type = #tpu.core_type<tc>, window_params = [{transform_indices = @transform_0, window_bounds = array<i64: 8, 64, 768>}, {transform_indices = @transform_1, window_bounds = array<i64: 8, 64, 768>}, {pipeline_mode = #tpu.pipeline_mode<synchronous>, transform_indices = @transform_2, window_bounds = array<i64: 768, 128>}, {pipeline_mode = #tpu.pipeline_mode<synchronous>, transform_indices = @transform_3, window_bounds = array<i64: 1, 128>}, {pipeline_mode = #tpu.pipeline_mode<synchronous>, transform_indices = @transform_4, window_bounds = array<i64: 1, 128>}, {pipeline_mode = #tpu.pipeline_mode<synchronous>, transform_indices = @transform_5, window_bounds = array<i64: 1, 1>}, {transform_indices = @transform_6, window_bounds = array<i64: 8, 128>}]} {
    %c0 = arith.constant 0 : index
    %c0_0 = arith.constant 0 : index
    %c0_1 = arith.constant 0 : index
    %0 = vector.load %arg1[%c0, %c0_0, %c0_1] : memref<8x64x768xbf16, #tpu.memory_space<vmem>>, vector<8x64x768xbf16>
    %1 = arith.extf %0 : vector<8x64x768xbf16> to vector<8x64x768xf32>
    %cst = arith.constant dense<0.000000e+00> : vector<8x768xf32>
    %2 = vector.multi_reduction <add>, %1, %cst [1] : vector<8x64x768xf32> to vector<8x768xf32>
    %cst_2 = arith.constant 1.562500e-02 : f32
    %3 = vector.broadcast %cst_2 : f32 to vector<8x768xf32>
    %4 = arith.mulf %2, %3 : vector<8x768xf32>
    %c0_3 = arith.constant 0 : index
    %c0_4 = arith.constant 0 : index
    %c0_5 = arith.constant 0 : index
    %5 = vector.load %arg2[%c0_3, %c0_4, %c0_5] : memref<8x64x768xbf16, #tpu.memory_space<vmem>>, vector<8x64x768xbf16>
    %6 = arith.extf %5 : vector<8x64x768xbf16> to vector<8x64x768xf32>
    %cst_6 = arith.constant dense<0.000000e+00> : vector<8x768xf32>
    %7 = vector.multi_reduction <add>, %6, %cst_6 [1] : vector<8x64x768xf32> to vector<8x768xf32>
    %cst_7 = arith.constant 1.562500e-02 : f32
    %8 = vector.broadcast %cst_7 : f32 to vector<8x768xf32>
    %9 = arith.mulf %7, %8 : vector<8x768xf32>
    %10 = arith.subf %4, %9 : vector<8x768xf32>
    %11 = math.absf %10 : vector<8x768xf32>
    %c0_8 = arith.constant 0 : index
    %c0_9 = arith.constant 0 : index
    %12 = vector.load %arg3[%c0_8, %c0_9] : memref<768x128xf32, #tpu.memory_space<vmem>>, vector<768x128xf32>
    %cst_10 = arith.constant dense<0.000000e+00> : vector<8x128xf32>
    %13 = tpu.matmul %11, %12, %cst_10 {dimension_numbers = #tpu.dot_dimension_numbers<[1], [0], [0], [1], [0, 0, 1, 1], [], []>} : vector<8x768xf32>, vector<768x128xf32>, vector<8x128xf32> -> vector<8x128xf32>
    %c0_11 = arith.constant 0 : index
    %c0_12 = arith.constant 0 : index
    %14 = vector.load %arg4[%c0_11, %c0_12] : memref<1x128xf32, #tpu.memory_space<vmem>>, vector<1x128xf32>
    %15 = vector.broadcast %14 : vector<1x128xf32> to vector<8x128xf32>
    %16 = arith.addf %13, %15 : vector<8x128xf32>
    %cst_13 = arith.constant 0.000000e+00 : f32
    %17 = vector.broadcast %cst_13 : f32 to vector<8x128xf32>
    %18 = arith.maximumf %16, %17 : vector<8x128xf32>
    %c0_14 = arith.constant 0 : index
    %c0_15 = arith.constant 0 : index
    %19 = vector.load %arg5[%c0_14, %c0_15] : memref<1x128xf32, #tpu.memory_space<vmem>>, vector<1x128xf32>
    %20 = vector.broadcast %19 : vector<1x128xf32> to vector<8x128xf32>
    %21 = arith.mulf %18, %20 : vector<8x128xf32>
    %cst_16 = arith.constant dense<0.000000e+00> : vector<8xf32>
    %22 = vector.multi_reduction <add>, %21, %cst_16 [1] : vector<8x128xf32> to vector<8xf32>
    %23 = vector.shape_cast %22 : vector<8xf32> to vector<8x1xf32>
    %c0_17 = arith.constant 0 : index
    %c0_18 = arith.constant 0 : index
    %24 = vector.load %arg6[%c0_17, %c0_18] : memref<1x1xf32, #tpu.memory_space<vmem>>, vector<1x1xf32>
    %25 = vector.broadcast %24 : vector<1x1xf32> to vector<8x1xf32>
    %26 = arith.addf %23, %25 : vector<8x1xf32>
    %27 = arith.negf %26 : vector<8x1xf32>
    %28 = math.exp %27 : vector<8x1xf32>
    %cst_19 = arith.constant 1.000000e+00 : f32
    %29 = vector.broadcast %cst_19 : f32 to vector<8x1xf32>
    %30 = arith.addf %29, %28 : vector<8x1xf32>
    %31 = arith.divf %29, %30 : vector<8x1xf32>
    %32 = vector.shape_cast %31 : vector<8x1xf32> to vector<8x1xf32>
    %33 = vector.broadcast %32 : vector<8x1xf32> to vector<8x128xf32>
    %c0_20 = arith.constant 0 : index
    %c0_21 = arith.constant 0 : index
    %34 = vector.load %arg7[%c0_20, %c0_21] : memref<8x128xf32, #tpu.memory_space<vmem>>, vector<8x128xf32>
    tpu.vector_store %arg7[%c0_20, %c0_21], %33 {strides = array<i32>} : memref<8x128xf32, #tpu.memory_space<vmem>>, vector<8x128xf32>,
    return
  }
  func.func @transform_0(%arg0: i32) -> (i32, i32, i32) {
    %c0_i32 = arith.constant 0 : i32
    %c0_i32_0 = arith.constant 0 : i32
    %c0_i32_1 = arith.constant 0 : i32
    return %arg0, %c0_i32, %c0_i32_0 : i32, i32, i32
  }
  func.func @transform_1(%arg0: i32) -> (i32, i32, i32) {
    %c0_i32 = arith.constant 0 : i32
    %c0_i32_0 = arith.constant 0 : i32
    %c0_i32_1 = arith.constant 0 : i32
    return %arg0, %c0_i32, %c0_i32_0 : i32, i32, i32
  }
  func.func @transform_2(%arg0: i32) -> (i32, i32) {
    %c0_i32 = arith.constant 0 : i32
    %c0_i32_0 = arith.constant 0 : i32
    %c0_i32_1 = arith.constant 0 : i32
    return %c0_i32, %c0_i32_0 : i32, i32
  }
  func.func @transform_3(%arg0: i32) -> (i32, i32) {
    %c0_i32 = arith.constant 0 : i32
    %c0_i32_0 = arith.constant 0 : i32
    %c0_i32_1 = arith.constant 0 : i32
    return %c0_i32, %c0_i32_0 : i32, i32
  }
  func.func @transform_4(%arg0: i32) -> (i32, i32) {
    %c0_i32 = arith.constant 0 : i32
    %c0_i32_0 = arith.constant 0 : i32
    %c0_i32_1 = arith.constant 0 : i32
    return %c0_i32, %c0_i32_0 : i32, i32
  }
  func.func @transform_5(%arg0: i32) -> (i32, i32) {
    %c0_i32 = arith.constant 0 : i32
    %c0_i32_0 = arith.constant 0 : i32
    %c0_i32_1 = arith.constant 0 : i32
    return %c0_i32, %c0_i32_0 : i32, i32
  }
  func.func @transform_6(%arg0: i32) -> (i32, i32) {
    %c0_i32 = arith.constant 0 : i32
    %c0_i32_0 = arith.constant 0 : i32
    return %arg0, %c0_i32 : i32, i32
  }
}

</mosaic_0001>

<bundles_post_ra>
// kernel: forward.1
= control target key start
LH: loop header
LB: loop body
LE: loop exit
PB: predicated region body
PF: predicated region fallthrough
CT: control target
= control target key end

     0   :  { %s3707_s23 = smov 0   ;;  %s7252_s0 = inlined_call_operand.vmem [shape: bf16[16,64,768], index: 0, kind: input, shape index: {}]   ;;  %s7253_s1 = inlined_call_operand.vmem [shape: bf16[16,64,768], index: 1, kind: input, shape index: {}]   ;;  %s7254_s2 = inlined_call_operand.vmem [shape: f32[768,128], index: 2, kind: input, shape index: {}]   ;;  %s7255_s3 = inlined_call_operand.vmem [shape: f32[1,128], index: 3, kind: input, shape index: {}]   ;;  %s7256_s4 = inlined_call_operand.vmem [shape: f32[1,128], index: 4, kind: input, shape index: {}]   ;;  %s7257_s5 = inlined_call_operand.<no memory space> [shape: f32[1,1], index: 5, kind: input, shape index: {}]   ;;  %s7258_s6 = inlined_call_operand.vmem [shape: f32[16,128], index: 6, kind: output, shape index: {}]  }
   0x1   :  { %v11_v0 = vstv %s7257_s5 }
   0x2   :  { %12 = vst [vmem:[#allocation2] sm:$0x1] %v11_v0 }
   0x3 LB: > { %s3713_s24 = sadd.s32 4294967295, %s3666_s23   ;;  %p3390_p0 = scmp.ge.s32.totalorder %s3666_s23, 1  ;;  %s3666_s23 = sphi %s3707_s23, %s18_s23  }
   0x4   : > { %p228_p1 = scmp.lt.s32.totalorder %s3666_s23, 3 }
   0x6   : > { %p229_p2 = pnand %p3390_p0, %p228_p1 }
   0x8   : > { %232 = sbr.rel (%p229_p2) target bundleno = 1183 (0x49f), region = 44 }
   0xf   : > { %v2890_v1 = vld [vmem:[%s7254_s2 + $0x80] sm:$0xff]  ;;  %v2891_v2 = vld [vmem:[%s7254_s2 + $0x88] sm:$0xff]  ;;  %v2892_v10 = vld [vmem:[%s7254_s2 + $0x90] sm:$0xff]  ;;  %s3391_s18 = sshll.u32 %s3713_s24, 3  ;;  %vm3025_vm0 = vcmask 1041409   ;;  %vm3027_vm1 = vcmask 1042434  }
  0x10   : > { %v2874_v3 = vld [vmem:[%s7254_s2] sm:$0xff]  ;;  %v3507_v4 = vpack.c.bf16 %v2891_v2, %v2890_v1  ;;  %v2875_v5 = vld [vmem:[%s7254_s2 + $0x8] sm:$0xff]  ;;  %v2893_v11 = vld [vmem:[%s7254_s2 + $0x98] sm:$0xff]  ;;  %p3774_p3 = scmp.lt.s32.totalorder %s3391_s18, 15  ;;  %vm3029_vm2 = vcmask 1043459   ;;  %vm3031_vm3 = vcmask 1044484  }
  0x11   : > { %v2922_v6 = vld [vmem:[%s7254_s2 + $0x180] sm:$0xff]  ;;  %v2923_v7 = vld [vmem:[%s7254_s2 + $0x188] sm:$0xff]  ;;  %v3509_v8 = vpack.c.bf16 %v2875_v5, %v2874_v3  ;;  %v3511_v13 = vpack.c.bf16 %v2893_v11, %v2892_v10  ;;  %v2876_v15 = vld [vmem:[%s7254_s2 + $0x10] sm:$0xff]  ;;  %vm3033_vm4 = vcmask 1045509   ;;  %vm3035_vm5 = vcmask 1046534   ;;  %p278_p4 = scmp.lt.s32.totalorder %s3713_s24, 1 }
  0x12   : > { %v3539_v9 = vpack.c.bf16 %v2923_v7, %v2922_v6  ;;  %v2906_v12 = vld [vmem:[%s7254_s2 + $0x100] sm:$0xff]  ;;  %3508 = vmatprep.subr.bf16.mxu0 %v3507_v4  ;;  %v2907_v14 = vld [vmem:[%s7254_s2 + $0x108] sm:$0xff]  ;;  %v2877_v16 = vld [vmem:[%s7254_s2 + $0x18] sm:$0xff]  ;;  %s9139_s18 = smov (!%p3774_p3, %s3391_s18), 15  ;;  %vm3037_vm6 = vcmask 1047559  }
  0x13   : > { %3510 = vmatpush3.bf16.msra.mxu0 %v3509_v8  ;;  %v3541_v17 = vpack.c.bf16 %v2907_v14, %v2906_v12  ;;  %v3513_v18 = vpack.c.bf16 %v2877_v16, %v2876_v15  ;;  %v2924_v19 = vld [vmem:[%s7254_s2 + $0x190] sm:$0xff]  ;;  %v2925_v20 = vld [vmem:[%s7254_s2 + $0x198] sm:$0xff]  ;;  %v2894_v21 = vld [vmem:[%s7254_s2 + $0xa0] sm:$0xff]  ;;  %s3603_s21 = smul.u32 192, %s9139_s18  ;;  %s9141_s24 = smov (!%p278_p4, %s3713_s24), 1 }
  0x14   : > { %3540 = vmatprep.subr.bf16.mxu1 %v3539_v9  ;;  %3512 = vmatprep.subr.bf16.mxu0 %v3511_v13  ;;  %v3543_v22 = vpack.c.bf16 %v2925_v20, %v2924_v19  ;;  %v2895_v23 = vld [vmem:[%s7254_s2 + $0xa8] sm:$0xff]  ;;  %v2908_v24 = vld [vmem:[%s7254_s2 + $0x110] sm:$0xff]  ;;  %v2909_v25 = vld [vmem:[%s7254_s2 + $0x118] sm:$0xff]  ;;  %s3395_s8 = sshll.u32 %s9141_s24, 3 }
  0x15   : > { %3542 = vmatpush3.bf16.msra.mxu1 %v3541_v17  ;;  %v3515_v26 = vpack.c.bf16 %v2895_v23, %v2894_v21  ;;  %v3545_v27 = vpack.c.bf16 %v2909_v25, %v2908_v24  ;;  %v2878_v28 = vld [vmem:[%s7254_s2 + $0x20] sm:$0xff]  ;;  %v2879_v29 = vld [vmem:[%s7254_s2 + $0x28] sm:$0xff]  ;;  %v2896_v32 = vld [vmem:[%s7254_s2 + $0xb0] sm:$0xff]  ;;  %s3918_s27 = scalar_lea.vmem %s7252_s0, %s3603_s21  ;;  %s4278_s14 = scalar_lea.vmem %s7253_s1, %s3603_s21 }
  0x16   : > { %v2926_v30 = vld [vmem:[%s7254_s2 + $0x1a0] sm:$0xff]  ;;  %3544 = vmatprep.subr.bf16.mxu1 %v3543_v22  ;;  %v2927_v31 = vld [vmem:[%s7254_s2 + $0x1a8] sm:$0xff]  ;;  %v2897_v33 = vld [vmem:[%s7254_s2 + $0xb8] sm:$0xff]  ;;  %v3517_v34 = vpack.c.bf16 %v2879_v29, %v2878_v28  ;;  %s281_s11 = scalar_lea.vmem %s7258_s6, %s3395_s8 }
  0x17   : > { %3514 = vmatpush3.bf16.msra.mxu0 %v3513_v18  ;;  %v3547_v35 = vpack.c.bf16 %v2927_v31, %v2926_v30  ;;  %v2910_v36 = vld [vmem:[%s7254_s2 + $0x120] sm:$0xff]  ;;  %v2911_v37 = vld [vmem:[%s7254_s2 + $0x128] sm:$0xff]  ;;  %v2880_v38 = vld [vmem:[%s7254_s2 + $0x30] sm:$0xff]  ;;  %v3519_v39 = vpack.c.bf16 %v2897_v33, %v2896_v32 }
  0x18   : > { %3516 = vmatprep.subr.bf16.mxu0 %v3515_v26  ;;  %v2881_v40 = vld [vmem:[%s7254_s2 + $0x38] sm:$0xff]  ;;  %v2928_v41 = vld [vmem:[%s7254_s2 + $0x1b0] sm:$0xff]  ;;  %v3549_v43 = vpack.c.bf16 %v2911_v37, %v2910_v36  ;;  %v2898_v44 = vld [vmem:[%s7254_s2 + $0xc0] sm:$0xff] }
  0x19   : > { %v2929_v42 = vld [vmem:[%s7254_s2 + $0x1b8] sm:$0xff]  ;;  %3546 = vmatpush3.bf16.msra.mxu1 %v3545_v27  ;;  %v2899_v45 = vld [vmem:[%s7254_s2 + $0xc8] sm:$0xff]  ;;  %v2912_v46 = vld [vmem:[%s7254_s2 + $0x130] sm:$0xff]  ;;  %v3521_v51 = vpack.c.bf16 %v2881_v40, %v2880_v38 }
  0x1a   : > { %3548 = vmatprep.subr.bf16.mxu1 %v3547_v35  ;;  %v3551_v47 = vpack.c.bf16 %v2929_v42, %v2928_v41  ;;  %v2913_v48 = vld [vmem:[%s7254_s2 + $0x138] sm:$0xff]  ;;  %v2882_v49 = vld [vmem:[%s7254_s2 + $0x40] sm:$0xff]  ;;  %v2883_v50 = vld [vmem:[%s7254_s2 + $0x48] sm:$0xff]  ;;  %v3523_v55 = vpack.c.bf16 %v2899_v45, %v2898_v44 }
  0x1b   : > { %3518 = vmatpush3.bf16.msra.mxu0 %v3517_v34  ;;  %v2930_v52 = vld [vmem:[%s7254_s2 + $0x1c0] sm:$0xff]  ;;  %v2931_v53 = vld [vmem:[%s7254_s2 + $0x1c8] sm:$0xff]  ;;  %v2900_v54 = vld [vmem:[%s7254_s2 + $0xd0] sm:$0xff]  ;;  %v3553_v59 = vpack.c.bf16 %v2913_v48, %v2912_v46  ;;  %v3525_v3 = vpack.c.bf16 %v2883_v50, %v2882_v49 }
  0x1c   : > { %3520 = vmatprep.subr.bf16.mxu0 %v3519_v39  ;;  %v2901_v56 = vld [vmem:[%s7254_s2 + $0xd8] sm:$0xff]  ;;  %v2914_v57 = vld [vmem:[%s7254_s2 + $0x140] sm:$0xff]  ;;  %v2915_v58 = vld [vmem:[%s7254_s2 + $0x148] sm:$0xff]  ;;  %v3555_v63 = vpack.c.bf16 %v2931_v53, %v2930_v52 }
  0x1d   : > { %3550 = vmatpush3.bf16.msra.mxu1 %v3549_v43  ;;  %v3860_v60 = vld [vmem:[%s7254_s2 + $0x50] sm:$0xff]  ;;  %v3865_v61 = vld [vmem:[%s7254_s2 + $0x58] sm:$0xff]  ;;  %v3876_v1 = vld [vmem:[%s7254_s2 + $0xe0] sm:$0xff]  ;;  %v3527_v7 = vpack.c.bf16 %v2901_v56, %v2900_v54  ;;  %v3557_v11 = vpack.c.bf16 %v2915_v58, %v2914_v57 }
  0x1e   : > { %v2932_v62 = vld [vmem:[%s7254_s2 + $0x1d0] sm:$0xff]  ;;  %3552 = vmatprep.subr.bf16.mxu1 %v3551_v47  ;;  %v2933_v0 = vld [vmem:[%s7254_s2 + $0x1d8] sm:$0xff]  ;;  %v3881_v2 = vld [vmem:[%s7254_s2 + $0xe8] sm:$0xff]  ;;  %v3529_v15 = vpack.c.bf16 %v3865_v61, %v3860_v60 }
  0x1f   : > { %3522 = vmatpush3.bf16.msra.mxu0 %v3521_v51  ;;  %v3886_v4 = vld [vmem:[%s7254_s2 + $0x150] sm:$0xff]  ;;  %v3891_v5 = vld [vmem:[%s7254_s2 + $0x158] sm:$0xff]  ;;  %v3896_v6 = vld [vmem:[%s7254_s2 + $0x60] sm:$0xff]  ;;  %v3559_v16 = vpack.c.bf16 %v2933_v0, %v2932_v62  ;;  %v3531_v17 = vpack.c.bf16 %v3881_v2, %v3876_v1 }
  0x20   : > { %3524 = vmatprep.subr.bf16.mxu0 %v3523_v55  ;;  %v3901_v8 = vld [vmem:[%s7254_s2 + $0x68] sm:$0xff]  ;;  %v3906_v9 = vld [vmem:[%s7254_s2 + $0x1e0] sm:$0xff]  ;;  %v3923_v12 = vld [vmem:[%s7254_s2 + $0xf0] sm:$0xff]  ;;  %v3561_v18 = vpack.c.bf16 %v3891_v5, %v3886_v4 }
  0x21   : > { %v3911_v10 = vld [vmem:[%s7254_s2 + $0x1e8] sm:$0xff]  ;;  %3554 = vmatpush3.bf16.msra.mxu1 %v3553_v59  ;;  %v3928_v13 = vld [vmem:[%s7254_s2 + $0xf8] sm:$0xff]  ;;  %v3933_v14 = vld [vmem:[%s7254_s2 + $0x160] sm:$0xff]  ;;  %v3533_v22 = vpack.c.bf16 %v3901_v8, %v3896_v6 }
  0x22   : > { %3556 = vmatprep.subr.bf16.mxu1 %v3555_v63  ;;  %v3944_v19 = vld [vmem:[%s7254_s2 + $0x168] sm:$0xff]  ;;  %v3949_v20 = vld [vmem:[%s7254_s2 + $0x70] sm:$0xff]  ;;  %v3954_v21 = vld [vmem:[%s7254_s2 + $0x78] sm:$0xff]  ;;  %v3563_v23 = vpack.c.bf16 %v3911_v10, %v3906_v9  ;;  %v3535_v24 = vpack.c.bf16 %v3928_v13, %v3923_v12 }
  0x23   : > { %3526 = vmatpush3.bf16.msra.mxu0 %v3525_v3  ;;  %v3565_v25 = vpack.c.bf16 %v3944_v19, %v3933_v14  ;;  %v3967_v26 = vld [vmem:[%s7254_s2 + $0x1f0] sm:$0xff]  ;;  %v3972_v27 = vld [vmem:[%s7254_s2 + $0x1f8] sm:$0xff]  ;;  %v3975_v28 = vld [vmem:[%s3918_s27] sm:$0xff]  ;;  %v3537_v29 = vpack.c.bf16 %v3954_v21, %v3949_v20 }
  0x24   : > { %7754 = vst [vmem:[#allocation3_spill] sm:$0xff] %v3975_v28  ;;  %3528 = vmatprep.subr.bf16.mxu0 %v3527_v7  ;;  %v3567_v30 = vpack.c.bf16 %v3972_v27, %v3967_v26  ;;  %v3982_v31 = vld [vmem:[%s3918_s27 + $0x18] sm:$0xff]  ;;  %v3985_v32 = vld [vmem:[%s3918_s27 + $0x30] sm:$0xff]  ;;  %v3988_v33 = vld [vmem:[%s3918_s27 + $0x48] sm:$0xff]  ;;  %v475_v34 = vunpack.c.h.bf16 %v3975_v28 }
  0x25   : > { %7755 = vst [vmem:[#allocation4_spill] sm:$0xff] %v3982_v31  ;;  %7756 = vst [vmem:[#allocation5_spill] sm:$0xff] %v3985_v32  ;;  %3558 = vmatpush3.bf16.msra.mxu1 %v3557_v11  ;;  %v3993_v36 = vld [vmem:[%s3918_s27 + $0x60] sm:$0xff]  ;;  %v3996_v37 = vld [vmem:[%s3918_s27 + $0x78] sm:$0xff]  ;;  %v481_v39 = vunpack.c.h.bf16 %v3982_v31  ;;  %v487_v40 = vunpack.c.h.bf16 %v3985_v32  ;;  %v493_v41 = vunpack.c.h.bf16 %v3988_v33 }
  0x26   : > { %7757 = vst [vmem:[#allocation6_spill] sm:$0xff] %v3988_v33  ;;  %v3999_v38 = vld [vmem:[%s3918_s27 + $0x90] sm:$0xff]  ;;  %3560 = vmatprep.subr.bf16.mxu1 %v3559_v16  ;;  %v4006_v43 = vld [vmem:[%s3918_s27 + $0xa8] sm:$0xff]  ;;  %v306_v44 = vld [vmem:[%s3918_s27 + $0xc0] sm:$0xff]  ;;  %v499_v46 = vunpack.c.h.bf16 %v3993_v36  ;;  %v505_v47 = vunpack.c.h.bf16 %v3996_v37 }
  0x27   : > { %v309_v45 = vld [vmem:[%s3918_s27 + $0xd8] sm:$0xff]  ;;  %v511_v48 = vunpack.c.h.bf16 %v3999_v38  ;;  %3530 = vmatpush3.bf16.msra.mxu0 %v3529_v15  ;;  %v312_v50 = vld [vmem:[%s3918_s27 + $0xf0] sm:$0xff]  ;;  %v315_v51 = vld [vmem:[%s3918_s27 + $0x108] sm:$0xff]  ;;  %v517_v53 = vunpack.c.h.bf16 %v4006_v43  ;;  %v523_v54 = vunpack.c.h.bf16 %v306_v44  ;;  %v871_v56 = vadd.f32 %v481_v39, %v475_v34 }
  0x28   : > { %v4017_v52 = vld [vmem:[%s3918_s27 + $0x120] sm:$0xff]  ;;  %v529_v55 = vunpack.c.h.bf16 %v309_v45  ;;  %3532 = vmatprep.subr.bf16.mxu0 %v3531_v17  ;;  %v4021_v57 = vld [vmem:[%s3918_s27 + $0x138] sm:$0xff]  ;;  %v4024_v58 = vld [vmem:[%s3918_s27 + $0x150] sm:$0xff]  ;;  %v535_v60 = vunpack.c.h.bf16 %v312_v50  ;;  %v541_v61 = vunpack.c.h.bf16 %v315_v51 }
  0x29   : > { %7758 = vst [vmem:[#allocation7_spill] sm:$0xff] %v4021_v57  ;;  %7759 = vst [vmem:[#allocation8_spill] sm:$0xff] %v4024_v58  ;;  %v4027_v59 = vld [vmem:[%s3918_s27 + $0x168] sm:$0xff]  ;;  %v547_v62 = vunpack.c.h.bf16 %v4017_v52  ;;  %3562 = vmatpush3.bf16.msra.mxu1 %v3561_v18  ;;  %v4032_v0 = vld [vmem:[%s3918_s27 + $0x180] sm:$0xff]  ;;  %v553_v3 = vunpack.c.h.bf16 %v4021_v57  ;;  %v559_v4 = vunpack.c.h.bf16 %v4024_v58  ;;  %v872_v7 = vadd.f32 %v871_v56, %v487_v40 }
  0x2a   : > { %7760 = vst [vmem:[#allocation9_spill] sm:$0xff] %v4027_v59  ;;  %7761 = vst [vmem:[#allocation10_spill] sm:$0xff] %v4032_v0  ;;  %v4035_v1 = vld [vmem:[%s3918_s27 + $0x198] sm:$0xff]  ;;  %v4038_v2 = vld [vmem:[%s3918_s27 + $0x1b0] sm:$0xff]  ;;  %v565_v5 = vunpack.c.h.bf16 %v4027_v59  ;;  %3564 = vmatprep.subr.bf16.mxu1 %v3563_v23  ;;  %v949_v18 = vadd.f32 %v529_v55, %v523_v54 }
  0x2b   : > { %7762 = vst [vmem:[#allocation11_spill] sm:$0xff] %v4035_v1  ;;  %7763 = vst [vmem:[#allocation12_spill] sm:$0xff] %v4038_v2  ;;  %v4044_v9 = vld [vmem:[%s3918_s27 + $0x1c8] sm:$0xff]  ;;  %v4047_v10 = vld [vmem:[%s3918_s27 + $0x1e0] sm:$0xff]  ;;  %3534 = vmatpush3.bf16.msra.mxu0 %v3533_v22  ;;  %v873_v45 = vadd.f32 %v872_v7, %v493_v41 }
  0x2c   : > { %7764 = vst [vmem:[#allocation13_spill] sm:$0xff] %v4044_v9  ;;  %7765 = vst [vmem:[#allocation14_spill] sm:$0xff] %v4047_v10  ;;  %v4050_v11 = vld [vmem:[%s3918_s27 + $0x1f8] sm:$0xff]  ;;  %v4059_v23 = vld [vmem:[%s3918_s27 + $0x210] sm:$0xff]  ;;  %3536 = vmatprep.subr.bf16.mxu0 %v3535_v24  ;;  %v950_v41 = vadd.f32 %v949_v18, %v535_v60 }
  0x2d   : > { %7766 = vst [vmem:[#allocation15_spill] sm:$0xff] %v4050_v11  ;;  %7767 = vst [vmem:[#allocation16_spill] sm:$0xff] %v4059_v23  ;;  %v4062_v34 = vld [vmem:[%s3918_s27 + $0x228] sm:$0xff]  ;;  %v4065_v36 = vld [vmem:[%s3918_s27 + $0x240] sm:$0xff]  ;;  %3566 = vmatpush3.bf16.msra.mxu1 %v3565_v25  ;;  %v874_v60 = vadd.f32 %v873_v45, %v499_v46 }
  0x2e   : > { %7768 = vst [vmem:[#allocation17_spill] sm:$0xff] %v4062_v34  ;;  %7769 = vst [vmem:[#allocation18_spill] sm:$0xff] %v4065_v36  ;;  %v4074_v6 = vld [vmem:[%s3918_s27 + $0x258] sm:$0xff]  ;;  %v4077_v8 = vld [vmem:[%s3918_s27 + $0x270] sm:$0xff]  ;;  %3568 = vmatprep.subr.bf16.mxu1 %v3567_v30  ;;  %v951_v46 = vadd.f32 %v950_v41, %v541_v61 }
  0x2f   : > { %7770 = vst [vmem:[#allocation19_spill] sm:$0xff] %v4074_v6  ;;  %7771 = vst [vmem:[#allocation20_spill] sm:$0xff] %v4077_v8  ;;  %v4080_v22 = vld [vmem:[%s3918_s27 + $0x288] sm:$0xff]  ;;  %v4089_v12 = vld [vmem:[%s3918_s27 + $0x2a0] sm:$0xff]  ;;  %3538 = vmatpush3.bf16.msra.mxu0 %v3537_v29  ;;  %v875_v20 = vadd.f32 %v874_v60, %v505_v47 }
  0x30   : > { %7772 = vst [vmem:[#allocation21_spill] sm:$0xff] %v4080_v22  ;;  %7773 = vst [vmem:[#allocation22_spill] sm:$0xff] %v4089_v12  ;;  %v4092_v13 = vld [vmem:[%s3918_s27 + $0x2b8] sm:$0xff]  ;;  %v4095_v24 = vld [vmem:[%s3918_s27 + $0x2d0] sm:$0xff]  ;;  %v952_v37 = vadd.f32 %v951_v46, %v547_v62 }
  0x31   : > { %7774 = vst [vmem:[#allocation23_spill] sm:$0xff] %v4092_v13  ;;  %7775 = vst [vmem:[#allocation24_spill] sm:$0xff] %v4095_v24  ;;  %v4104_v14 = vld [vmem:[%s3918_s27 + $0x2e8] sm:$0xff]  ;;  %v4107_v19 = vld [vmem:[%s3918_s27 + $0x300] sm:$0xff]  ;;  %v876_v52 = vadd.f32 %v875_v20, %v511_v48 }
  0x32   : > { %7776 = vst [vmem:[#allocation25_spill] sm:$0xff] %v4104_v14  ;;  %7777 = vst [vmem:[#allocation26_spill] sm:$0xff] %v4107_v19  ;;  %v4110_v25 = vld [vmem:[%s3918_s27 + $0x318] sm:$0xff]  ;;  %v4119_v26 = vld [vmem:[%s3918_s27 + $0x330] sm:$0xff]  ;;  %v953_v38 = vadd.f32 %v952_v37, %v553_v3  ;;  %v7813_v58 = vunpack.c.h.bf16 %v4107_v19 }
  0x33   : > { %7778 = vst [vmem:[#allocation27_spill] sm:$0xff] %v4110_v25  ;;  %7779 = vst [vmem:[#allocation28_spill] sm:$0xff] %v4119_v26  ;;  %v4122_v27 = vld [vmem:[%s3918_s27 + $0x348] sm:$0xff]  ;;  %v4125_v30 = vld [vmem:[%s3918_s27 + $0x360] sm:$0xff]  ;;  %v877_v39 = vadd.f32 %v876_v52, %v517_v53 }
  0x34   : > { %7780 = vst [vmem:[#allocation29_spill] sm:$0xff] %v4122_v27  ;;  %7781 = vst [vmem:[#allocation30_spill] sm:$0xff] %v4125_v30  ;;  %v4133_v21 = vld [vmem:[%s3918_s27 + $0x378] sm:$0xff]  ;;  %v4136_v29 = vld [vmem:[%s3918_s27 + $0x390] sm:$0xff]  ;;  %v954_v43 = vadd.f32 %v953_v38, %v559_v4 }
  0x35   : > { %7782 = vst [vmem:[#allocation31_spill] sm:$0xff] %v4133_v21  ;;  %7783 = vst [vmem:[#allocation32_spill] sm:$0xff] %v4136_v29  ;;  %v4139_v61 = vld [vmem:[%s3918_s27 + $0x3a8] sm:$0xff]  ;;  %v4147_v47 = vld [vmem:[%s3918_s27 + $0x3c0] sm:$0xff]  ;;  %v878_v35 = vrot.slane %v877_v39, 4 }
  0x36   : > { %7784 = vst [vmem:[#allocation33_spill] sm:$0xff] %v4139_v61  ;;  %7785 = vst [vmem:[#allocation34_spill] sm:$0xff] %v4147_v47  ;;  %v4150_v60 = vld [vmem:[%s3918_s27 + $0x3d8] sm:$0xff]  ;;  %v4153_v49 = vld [vmem:[%s3918_s27 + $0x3f0] sm:$0xff]  ;;  %v715_v18 = vunpack.c.h.bf16 %v4147_v47  ;;  %v955_v15 = vadd.f32 %v954_v43, %v565_v5  ;;  %v7810_v47 = vunpack.c.h.bf16 %v4035_v1 }
  0x37   : > { %7786 = vst [vmem:[#allocation35_spill] sm:$0xff] %v4150_v60  ;;  %7787 = vst [vmem:[#allocation36_spill] sm:$0xff] %v4153_v49  ;;  %v4161_v62 = vld [vmem:[%s3918_s27 + $0x408] sm:$0xff]  ;;  %v4164_v46 = vld [vmem:[%s3918_s27 + $0x420] sm:$0xff]  ;;  %v721_v50 = vunpack.c.h.bf16 %v4150_v60  ;;  %v727_v63 = vunpack.c.h.bf16 %v4153_v49  ;;  %v7809_v60 = vunpack.c.h.bf16 %v4032_v0 }
  0x38   : > { %7788 = vst [vmem:[#allocation37_spill] sm:$0xff] %v4161_v62  ;;  %7789 = vst [vmem:[#allocation38_spill] sm:$0xff] %v4164_v46  ;;  %v4167_v51 = vld [vmem:[%s3918_s27 + $0x438] sm:$0xff]  ;;  %v4175_v48 = vld [vmem:[%s3918_s27 + $0x450] sm:$0xff]  ;;  %v956_v49 = vrot.slane %v955_v15, 4 }
  0x39   : > { %7790 = vst [vmem:[#allocation39_spill] sm:$0xff] %v4167_v51  ;;  %7791 = vst [vmem:[#allocation40_spill] sm:$0xff] %v4175_v48  ;;  %v4178_v20 = vld [vmem:[%s3918_s27 + $0x468] sm:$0xff]  ;;  %v4181_v44 = vld [vmem:[%s3918_s27 + $0x480] sm:$0xff]  ;;  %v1027_v59 = vadd.f32 %v7810_v47, %v7809_v60  ;;  %v7816_v47 = vunpack.c.h.bf16 %v4077_v8 }
  0x3a   : > { %7792 = vst [vmem:[#allocation41_spill] sm:$0xff] %v4178_v20  ;;  %7793 = vst [vmem:[#allocation42_spill] sm:$0xff] %v4181_v44  ;;  %v4189_v3 = vld [vmem:[%s3918_s27 + $0x498] sm:$0xff]  ;;  %v4192_v37 = vld [vmem:[%s3918_s27 + $0x4b0] sm:$0xff]  ;;  %v763_v45 = vunpack.c.h.bf16 %v4181_v44 }
  0x3b   : > { %7794 = vst [vmem:[#allocation43_spill] sm:$0xff] %v4189_v3  ;;  %7795 = vst [vmem:[#allocation44_spill] sm:$0xff] %v4192_v37  ;;  %v4195_v41 = vld [vmem:[%s3918_s27 + $0x4c8] sm:$0xff]  ;;  %v4203_v53 = vld [vmem:[%s3918_s27 + $0x4e0] sm:$0xff]  ;;  %v769_v17 = vunpack.c.h.bf16 %v4189_v3  ;;  %v775_v56 = vunpack.c.h.bf16 %v4192_v37 }
  0x3c   : > { %7796 = vst [vmem:[#allocation45_spill] sm:$0xff] %v4195_v41  ;;  %7797 = vst [vmem:[#allocation46_spill] sm:$0xff] %v4203_v53  ;;  %v4206_v52 = vld [vmem:[%s3918_s27 + $0x4f8] sm:$0xff]  ;;  %v4209_v7 = vld [vmem:[%s3918_s27 + $0x510] sm:$0xff]  ;;  %v781_v40 = vunpack.c.h.bf16 %v4195_v41  ;;  %v787_v55 = vunpack.c.h.bf16 %v4203_v53  ;;  %v879_v53 = vadd.f32 %v878_v35, %v877_v39 }
  0x3d   : > { %7798 = vst [vmem:[#allocation47_spill] sm:$0xff] %v4206_v52  ;;  %7799 = vst [vmem:[#allocation48_spill] sm:$0xff] %v4209_v7  ;;  %v4215_v42 = vld [vmem:[%s3918_s27 + $0x528] sm:$0xff]  ;;  %v4218_v4 = vld [vmem:[%s3918_s27 + $0x540] sm:$0xff]  ;;  %v793_v54 = vunpack.c.h.bf16 %v4206_v52  ;;  %v1339_v35 = vadd.f32 %v769_v17, %v763_v45 }
  0x3e   : > { %7800 = vst [vmem:[#allocation49_spill] sm:$0xff] %v4215_v42  ;;  %7801 = vst [vmem:[#allocation50_spill] sm:$0xff] %v4218_v4  ;;  %v4221_v38 = vld [vmem:[%s3918_s27 + $0x558] sm:$0xff]  ;;  %v4229_v33 = vld [vmem:[%s3918_s27 + $0x570] sm:$0xff]  ;;  %v811_v41 = vunpack.c.h.bf16 %v4218_v4  ;;  %v880_v39 = vrot.slane %v879_v53, 2  ;;  %v1261_v42 = vadd.f32 %v721_v50, %v715_v18 }
  0x3f   : > { %7802 = vst [vmem:[#allocation51_spill] sm:$0xff] %v4221_v38  ;;  %7803 = vst [vmem:[#allocation52_spill] sm:$0xff] %v4229_v33  ;;  %v4232_v32 = vld [vmem:[%s3918_s27 + $0x588] sm:$0xff]  ;;  %v4235_v31 = vld [vmem:[%s3918_s27 + $0x5a0] sm:$0xff]  ;;  %v817_v37 = vunpack.c.h.bf16 %v4221_v38  ;;  %v823_v5 = vunpack.c.h.bf16 %v4229_v33  ;;  %v957_v38 = vadd.f32 %v956_v49, %v955_v15  ;;  %v7811_v33 = vunpack.c.h.bf16 %v4065_v36 }
  0x40   : > { %7804 = vst [vmem:[#allocation53_spill] sm:$0xff] %v4232_v32  ;;  %7805 = vst [vmem:[#allocation54_spill] sm:$0xff] %v4235_v31  ;;  %v4241_v3 = vld [vmem:[%s3918_s27 + $0x5b8] sm:$0xff]  ;;  %v4244_v52 = vld [vmem:[%s3918_s27 + $0x5d0] sm:$0xff]  ;;  %v829_v43 = vunpack.c.h.bf16 %v4232_v32  ;;  %v835_v44 = vunpack.c.h.bf16 %v4235_v31  ;;  %v7812_v32 = vunpack.c.h.bf16 %v4074_v6  ;;  %v7815_v15 = vunpack.c.h.bf16 %v4038_v2 }
  0x41   : > { %7806 = vst [vmem:[#allocation55_spill] sm:$0xff] %v4241_v3  ;;  %7807 = vst [vmem:[#allocation56_spill] sm:$0xff] %v4244_v52  ;;  %v4247_v16 = vld [vmem:[%s3918_s27 + $0x5e8] sm:$0xff]  ;;  %v841_v28 = vunpack.c.h.bf16 %v4241_v3  ;;  %v847_v4 = vunpack.c.h.bf16 %v4244_v52  ;;  %v7814_v3 = vunpack.c.h.bf16 %v4110_v25  ;;  %v881_v52 = vadd.f32 %v880_v39, %v879_v53  ;;  %v4471_v25 = vld [vmem:[%s4278_s14 + $0x378] sm:$0xff] }
  0x42   : > { %7808 = vst [vmem:[#allocation57_spill] sm:$0xff] %v4247_v16  ;;  %v1105_v31 = vadd.f32 %v7812_v32, %v7811_v33  ;;  %v1417_v16 = vadd.f32 %v817_v37, %v811_v41  ;;  %v958_v49 = vrot.slane %v957_v38, 2  ;;  %v1028_v0 = vadd.f32 %v1027_v59, %v7815_v15  ;;  %7887 = vst [vmem:[#allocation102_spill] sm:$0xff] %v4471_v25  ;;  %v4481_v19 = vld [vmem:[%s4278_s14 + $0x3c0] sm:$0xff]  ;;  %v4556_v1 = vld [vmem:[%s4278_s14 + $0x558] sm:$0xff] }
  0x43   : > { %v1183_v57 = vadd.f32 %v7814_v3, %v7813_v58  ;;  %v7817_v36 = vunpack.c.h.bf16 %v4119_v26  ;;  %v882_v32 = vrot.slane %v881_v52, 1  ;;  %v1262_v33 = vadd.f32 %v1261_v42, %v727_v63  ;;  %v4468_v26 = vld [vmem:[%s4278_s14 + $0x360] sm:$0xff]  ;;  %7890 = vst [vmem:[#allocation105_spill] sm:$0xff] %v4481_v19  ;;  %7907 = vst [vmem:[#allocation122_spill] sm:$0xff] %v4556_v1 }
  0x44   : > { %v1106_v60 = vadd.f32 %v1105_v31, %v7816_v47  ;;  %v1340_v58 = vadd.f32 %v1339_v35, %v775_v56  ;;  %v1418_v17 = vadd.f32 %v1417_v16, %v823_v5  ;;  %v959_v50 = vadd.f32 %v958_v49, %v957_v38  ;;  %v4295_v35 = vld [vmem:[%s4278_s14] sm:$0xff]  ;;  %7886 = vst [vmem:[#allocation101_spill] sm:$0xff] %v4468_v26 }
  0x45   : > { %v1184_v6 = vadd.f32 %v1183_v57, %v7817_v36  ;;  %v7818_v59 = vunpack.c.h.bf16 %v4044_v9  ;;  %v7819_v31 = vunpack.c.h.bf16 %v4080_v22  ;;  %v7820_v57 = vunpack.c.h.bf16 %v4122_v27  ;;  %v4465_v27 = vld [vmem:[%s4278_s14 + $0x348] sm:$0xff]  ;;  %v4520_v9 = vld [vmem:[%s4278_s14 + $0x498] sm:$0xff] }
  0x46   : > { %v883_v41 = vadd.f32 %v882_v32, %v881_v52  ;;  %v7821_v3 = vunpack.c.h.bf16 %v4161_v62  ;;  %v1341_v53 = vadd.f32 %v1340_v58, %v781_v40  ;;  %v1419_v39 = vadd.f32 %v1418_v17, %v829_v43  ;;  %v4417_v62 = vld [vmem:[%s4278_s14 + $0x240] sm:$0xff]  ;;  %7885 = vst [vmem:[#allocation100_spill] sm:$0xff] %v4465_v27  ;;  %v4494_v22 = vld [vmem:[%s4278_s14 + $0x408] sm:$0xff]  ;;  %7899 = vst [vmem:[#allocation114_spill] sm:$0xff] %v4520_v9 }
  0x47   : > { %v1029_v18 = vadd.f32 %v1028_v0, %v7818_v59  ;;  %v1107_v45 = vadd.f32 %v1106_v60, %v7819_v31  ;;  %v1185_v36 = vadd.f32 %v1184_v6, %v7820_v57  ;;  %v960_v42 = vrot.slane %v959_v50, 1  ;;  %v4308_v59 = vld [vmem:[%s4278_s14 + $0x18] sm:$0xff]  ;;  %7868 = vst [vmem:[#allocation83_spill] sm:$0xff] %v4417_v62  ;;  %7893 = vst [vmem:[#allocation108_spill] sm:$0xff] %v4494_v22 }
  0x48   : > { %v1263_v37 = vadd.f32 %v1262_v33, %v7821_v3  ;;  %v7822_v63 = vunpack.c.h.bf16 %v4047_v10  ;;  %v7823_v56 = vunpack.c.h.bf16 %v4089_v12  ;;  %v7824_v38 = vunpack.c.h.bf16 %v4125_v30  ;;  %7830 = vst [vmem:[#allocation59_spill] sm:$0xff] %v4308_v59  ;;  %v4488_v12 = vld [vmem:[%s4278_s14 + $0x3d8] sm:$0xff]  ;;  %v4527_v10 = vld [vmem:[%s4278_s14 + $0x4b0] sm:$0xff] }
  0x49   : > { %v7825_v6 = vunpack.c.h.bf16 %v4164_v46  ;;  %v1342_v49 = vadd.f32 %v1341_v53, %v787_v55  ;;  %v1420_v15 = vadd.f32 %v1419_v39, %v835_v44  ;;  %v4299_v40 = vmul.f32 0.015625, %v883_v41  ;;  %v4414_v46 = vld [vmem:[%s4278_s14 + $0x228] sm:$0xff]  ;;  %7891 = vst [vmem:[#allocation106_spill] sm:$0xff] %v4488_v12  ;;  %7900 = vst [vmem:[#allocation115_spill] sm:$0xff] %v4527_v10 }
  0x4a   : > { %v1030_v16 = vadd.f32 %v1029_v18, %v7822_v63  ;;  %v1108_v0 = vadd.f32 %v1107_v45, %v7823_v56  ;;  %v1186_v5 = vadd.f32 %v1185_v36, %v7824_v38  ;;  %v961_v43 = vadd.f32 %v960_v42, %v959_v50  ;;  %v4313_v45 = vld [vmem:[%s4278_s14 + $0x30] sm:$0xff]  ;;  %v4325_v42 = vld [vmem:[%s4278_s14 + $0x48] sm:$0xff]  ;;  %7867 = vst [vmem:[#allocation82_spill] sm:$0xff] %v4414_v46 }
  0x4b   : > { %v1264_v52 = vadd.f32 %v1263_v37, %v7825_v6  ;;  %7826 = vst [vmem:[#allocation58_spill] sm:$0xff] %v4299_v40  ;;  %v7827_v47 = vunpack.c.h.bf16 %v4050_v11  ;;  %v7828_v32 = vunpack.c.h.bf16 %v4092_v13  ;;  %v7829_v58 = vunpack.c.h.bf16 %v4133_v21  ;;  %7832 = vst [vmem:[#allocation60_spill] sm:$0xff] %v4313_v45  ;;  %v4504_v13 = vld [vmem:[%s4278_s14 + $0x438] sm:$0xff] }
  0x4c   : > { %v7831_v18 = vunpack.c.h.bf16 %v4167_v51  ;;  %v1343_v44 = vadd.f32 %v1342_v49, %v793_v54  ;;  %v1421_v31 = vadd.f32 %v1420_v15, %v841_v28  ;;  %v7833_v57 = vunpack.c.h.bf16 %v4059_v23  ;;  %7837 = vst [vmem:[#allocation62_spill] sm:$0xff] %v4325_v42  ;;  %v4411_v51 = vld [vmem:[%s4278_s14 + $0x210] sm:$0xff]  ;;  %7895 = vst [vmem:[#allocation110_spill] sm:$0xff] %v4504_v13 }
  0x4d   : > { %v1031_v60 = vadd.f32 %v1030_v16, %v7827_v47  ;;  %v1109_v33 = vadd.f32 %v1108_v0, %v7828_v32  ;;  %v1187_v17 = vadd.f32 %v1186_v5, %v7829_v58  ;;  %v7834_v41 = vunpack.c.h.bf16 %v4095_v24  ;;  %v4332_v0 = vld [vmem:[%s4278_s14 + $0x60] sm:$0xff]  ;;  %v4342_v47 = vld [vmem:[%s4278_s14 + $0x78] sm:$0xff]  ;;  %7866 = vst [vmem:[#allocation81_spill] sm:$0xff] %v4411_v51  ;;  %v4507_v23 = vld [vmem:[%s4278_s14 + $0x450] sm:$0xff] }
  0x4e   : > { %v1265_v55 = vadd.f32 %v1264_v52, %v7831_v18  ;;  %v7835_v37 = vunpack.c.h.bf16 %v4136_v29  ;;  %v4322_v39 = vmul.f32 0.015625, %v961_v43  ;;  %v7838_v28 = vunpack.c.h.bf16 %v4175_v48  ;;  %7840 = vst [vmem:[#allocation63_spill] sm:$0xff] %v4332_v0  ;;  %7844 = vst [vmem:[#allocation64_spill] sm:$0xff] %v4342_v47  ;;  %v7848_v18 = vld [vmem:[#allocation57_spill] sm:$0xff] }
  0x4f   : > { %v1032_v36 = vadd.f32 %v1031_v60, %v7833_v57  ;;  %v1110_v3 = vadd.f32 %v1109_v33, %v7834_v41  ;;  %v7839_v63 = vunpack.c.h.bf16 %v4209_v7  ;;  %v1422_v56 = vadd.f32 %v1421_v31, %v847_v4  ;;  %v7846_v33 = vld [vmem:[#allocation49_spill] sm:$0xff]  ;;  %7896 = vst [vmem:[#allocation111_spill] sm:$0xff] %v4507_v23 }
  0x50   : > { %v1188_v53 = vadd.f32 %v1187_v17, %v7835_v37  ;;  %7836 = vst [vmem:[#allocation61_spill] sm:$0xff] %v4322_v39  ;;  %v1266_v54 = vadd.f32 %v1265_v55, %v7838_v28  ;;  %v7841_v5 = vunpack.c.h.bf16 %v4062_v34  ;;  %v7842_v52 = vunpack.c.h.bf16 %v4104_v14  ;;  %v4352_v31 = vld [vmem:[%s4278_s14 + $0x90] sm:$0xff]  ;;  %v4356_v37 = vld [vmem:[%s4278_s14 + $0xa8] sm:$0xff]  ;;  %v4501_v14 = vld [vmem:[%s4278_s14 + $0x420] sm:$0xff] }
  0x51   : > { %v1344_v16 = vadd.f32 %v1343_v44, %v7839_v63  ;;  %v7843_v15 = vunpack.c.h.bf16 %v4139_v61  ;;  %v7845_v4 = vunpack.c.h.bf16 %v4178_v20  ;;  %v7847_v58 = vunpack.c.h.bf16 %v7846_v33  ;;  %7850 = vst [vmem:[#allocation65_spill] sm:$0xff] %v4352_v31  ;;  %7851 = vst [vmem:[#allocation66_spill] sm:$0xff] %v4356_v37  ;;  %v4420_v61 = vld [vmem:[%s4278_s14 + $0x258] sm:$0xff]  ;;  %v4491_v29 = vld [vmem:[%s4278_s14 + $0x3f0] sm:$0xff] }
  0x52   : > { %v1033_v6 = vadd.f32 %v1032_v36, %v7841_v5  ;;  %v1111_v49 = vadd.f32 %v1110_v3, %v7842_v52  ;;  %v7849_v55 = vunpack.c.h.bf16 %v7848_v18  ;;  %7869 = vst [vmem:[#allocation84_spill] sm:$0xff] %v4420_v61  ;;  %7892 = vst [vmem:[#allocation107_spill] sm:$0xff] %v4491_v29  ;;  %v1873_v24 = vunpack.c.h.bf16 %v4420_v61  ;;  %v4517_v61 = vld [vmem:[%s4278_s14 + $0x480] sm:$0xff]  ;;  %v4530_v34 = vld [vmem:[%s4278_s14 + $0x4c8] sm:$0xff] }
  0x53   : > { %v1189_v43 = vadd.f32 %v1188_v53, %v7843_v15  ;;  %v1267_v32 = vadd.f32 %v1266_v54, %v7845_v4  ;;  %v1345_v17 = vadd.f32 %v1344_v16, %v7847_v58  ;;  %v4360_v16 = vld [vmem:[%s4278_s14 + $0xc0] sm:$0xff]  ;;  %v4364_v4 = vld [vmem:[%s4278_s14 + $0xd8] sm:$0xff]  ;;  %v4368_v53 = vld [vmem:[%s4278_s14 + $0xf0] sm:$0xff]  ;;  %7894 = vst [vmem:[#allocation109_spill] sm:$0xff] %v4501_v14  ;;  %v1969_v2 = vunpack.c.h.bf16 %v4488_v12 }
  0x54   : > { %v1423_v44 = vadd.f32 %v1422_v56, %v7849_v55  ;;  %v1034_v36 = vrot.slane %v1033_v6, 4  ;;  %v1112_v41 = vrot.slane %v1111_v49, 4  ;;  %7852 = vst [vmem:[#allocation67_spill] sm:$0xff] %v4360_v16  ;;  %7853 = vst [vmem:[#allocation68_spill] sm:$0xff] %v4364_v4  ;;  %v4559_v39 = vld [vmem:[%s4278_s14 + $0x570] sm:$0xff]  ;;  %v1975_v40 = vunpack.c.h.bf16 %v4491_v29  ;;  %v4572_v12 = vld [vmem:[%s4278_s14 + $0x5b8] sm:$0xff] }
  0x55   : > { %v1190_v3 = vrot.slane %v1189_v43, 4  ;;  %v1268_v28 = vrot.slane %v1267_v32, 4  ;;  %v1346_v54 = vrot.slane %v1345_v17, 4  ;;  %7854 = vst [vmem:[#allocation69_spill] sm:$0xff] %v4368_v53  ;;  %7898 = vst [vmem:[#allocation113_spill] sm:$0xff] %v4517_v61  ;;  %v2011_v37 = vunpack.c.h.bf16 %v4517_v61 }
  0x56   : > { %v1424_v63 = vrot.slane %v1423_v44, 4  ;;  %v1035_v5 = vadd.f32 %v1034_v36, %v1033_v6  ;;  %v1113_v52 = vadd.f32 %v1112_v41, %v1111_v49  ;;  %v4372_v6 = vld [vmem:[%s4278_s14 + $0x108] sm:$0xff]  ;;  %v4384_v49 = vld [vmem:[%s4278_s14 + $0x150] sm:$0xff]  ;;  %7901 = vst [vmem:[#allocation116_spill] sm:$0xff] %v4530_v34  ;;  %7908 = vst [vmem:[#allocation123_spill] sm:$0xff] %v4559_v39  ;;  %v2017_v29 = vunpack.c.h.bf16 %v4520_v9 }
  0x57   : > { %v1191_v15 = vadd.f32 %v1190_v3, %v1189_v43  ;;  %v1269_v55 = vadd.f32 %v1268_v28, %v1267_v32  ;;  %v1347_v57 = vadd.f32 %v1346_v54, %v1345_v17  ;;  %7855 = vst [vmem:[#allocation70_spill] sm:$0xff] %v4372_v6  ;;  %v4376_v32 = vld [vmem:[%s4278_s14 + $0x120] sm:$0xff]  ;;  %v4380_v54 = vld [vmem:[%s4278_s14 + $0x138] sm:$0xff]  ;;  %7858 = vst [vmem:[#allocation73_spill] sm:$0xff] %v4384_v49  ;;  %v2065_v9 = vunpack.c.h.bf16 %v4556_v1 }
  0x58   : > { %v1425_v60 = vadd.f32 %v1424_v63, %v1423_v44  ;;  %v1036_v50 = vrot.slane %v1035_v5, 2  ;;  %v1114_v18 = vrot.slane %v1113_v52, 2  ;;  %7856 = vst [vmem:[#allocation71_spill] sm:$0xff] %v4376_v32  ;;  %7857 = vst [vmem:[#allocation72_spill] sm:$0xff] %v4380_v54  ;;  %v7917_v1 = vunpack.c.h.bf16 %v4364_v4  ;;  %v8014_v4 = vld [vmem:[#allocation45_spill] sm:$0xff] }
  0x59   : > { %v1192_v33 = vrot.slane %v1191_v15, 2  ;;  %v1270_v43 = vrot.slane %v1269_v55, 2  ;;  %v1348_v36 = vrot.slane %v1347_v57, 2  ;;  %7911 = vst [vmem:[#allocation126_spill] sm:$0xff] %v4572_v12 }
  0x5a   : > { %v1426_v41 = vrot.slane %v1425_v60, 2  ;;  %v1037_v44 = vadd.f32 %v1036_v50, %v1035_v5  ;;  %v1115_v3 = vadd.f32 %v1114_v18, %v1113_v52  ;;  %v4391_v18 = vld [vmem:[%s4278_s14 + $0x180] sm:$0xff]  ;;  %v4394_v5 = vld [vmem:[%s4278_s14 + $0x198] sm:$0xff] }
  0x5b   : > { %v1193_v28 = vadd.f32 %v1192_v33, %v1191_v15  ;;  %v1271_v38 = vadd.f32 %v1270_v43, %v1269_v55  ;;  %v1349_v58 = vadd.f32 %v1348_v36, %v1347_v57  ;;  %v4388_v33 = vld [vmem:[%s4278_s14 + $0x168] sm:$0xff]  ;;  %7860 = vst [vmem:[#allocation75_spill] sm:$0xff] %v4391_v18  ;;  %7861 = vst [vmem:[#allocation76_spill] sm:$0xff] %v4394_v5  ;;  %v4398_v55 = vld [vmem:[%s4278_s14 + $0x1b0] sm:$0xff] }
  0x5c   : > { %v1427_v56 = vadd.f32 %v1426_v41, %v1425_v60  ;;  %v1038_v17 = vrot.slane %v1037_v44, 1  ;;  %v1116_v20 = vrot.slane %v1115_v3, 1  ;;  %7859 = vst [vmem:[#allocation74_spill] sm:$0xff] %v4388_v33  ;;  %7862 = vst [vmem:[#allocation77_spill] sm:$0xff] %v4398_v55  ;;  %v4401_v43 = vld [vmem:[%s4278_s14 + $0x1c8] sm:$0xff]  ;;  %v4404_v36 = vld [vmem:[%s4278_s14 + $0x1e0] sm:$0xff]  ;;  %v7915_v33 = vunpack.c.h.bf16 %v4308_v59 }
  0x5d   : > { %v1194_v50 = vrot.slane %v1193_v28, 1  ;;  %v1272_v57 = vrot.slane %v1271_v38, 1  ;;  %v1350_v52 = vrot.slane %v1349_v58, 1  ;;  %7863 = vst [vmem:[#allocation78_spill] sm:$0xff] %v4401_v43  ;;  %7864 = vst [vmem:[#allocation79_spill] sm:$0xff] %v4404_v36  ;;  %v4407_v41 = vld [vmem:[%s4278_s14 + $0x1f8] sm:$0xff] }
  0x5e   : > { %v1428_v15 = vrot.slane %v1427_v56, 1  ;;  %7865 = vst [vmem:[#allocation80_spill] sm:$0xff] %v4407_v41  ;;  %v1039_v63 = vadd.f32 %v1038_v17, %v1037_v44  ;;  %v1117_v48 = vadd.f32 %v1116_v20, %v1115_v3  ;;  %v4424_v17 = vld [vmem:[%s4278_s14 + $0x270] sm:$0xff]  ;;  %v4427_v20 = vld [vmem:[%s4278_s14 + $0x288] sm:$0xff]  ;;  %v4430_v44 = vld [vmem:[%s4278_s14 + $0x2a0] sm:$0xff] }
  0x5f   : > { %v1195_v60 = vadd.f32 %v1194_v50, %v1193_v28  ;;  %v1273_v21 = vadd.f32 %v1272_v57, %v1271_v38  ;;  %v1351_v30 = vadd.f32 %v1350_v52, %v1349_v58  ;;  %7870 = vst [vmem:[#allocation85_spill] sm:$0xff] %v4424_v17  ;;  %7871 = vst [vmem:[#allocation86_spill] sm:$0xff] %v4427_v20  ;;  %v4433_v3 = vld [vmem:[%s4278_s14 + $0x2b8] sm:$0xff]  ;;  %v4443_v58 = vld [vmem:[%s4278_s14 + $0x2d0] sm:$0xff] }
  0x60   : > { %v1429_v7 = vadd.f32 %v1428_v15, %v1427_v56  ;;  %7872 = vst [vmem:[#allocation87_spill] sm:$0xff] %v4430_v44  ;;  %7873 = vst [vmem:[#allocation88_spill] sm:$0xff] %v4433_v3  ;;  %v4436_v50 = vmul.f32 0.015625, %v1039_v63  ;;  %v4438_v38 = vmul.f32 0.015625, %v1117_v48  ;;  %v4446_v57 = vld [vmem:[%s4278_s14 + $0x2e8] sm:$0xff]  ;;  %v4449_v52 = vld [vmem:[%s4278_s14 + $0x300] sm:$0xff] }
  0x61   : > { %v4440_v56 = vmul.f32 0.015625, %v1195_v60  ;;  %7877 = vst [vmem:[#allocation92_spill] sm:$0xff] %v4443_v58  ;;  %7878 = vst [vmem:[#allocation93_spill] sm:$0xff] %v4446_v57  ;;  %v4452_v15 = vld [vmem:[%s4278_s14 + $0x318] sm:$0xff]  ;;  %v4455_v63 = vmul.f32 0.015625, %v1273_v21  ;;  %v4457_v48 = vmul.f32 0.015625, %v1351_v30  ;;  %v1915_v11 = vunpack.c.h.bf16 %v4449_v52 }
  0x62   : > { %7874 = vst [vmem:[#allocation89_spill] sm:$0xff] %v4436_v50  ;;  %7875 = vst [vmem:[#allocation90_spill] sm:$0xff] %v4438_v38  ;;  %v4459_v60 = vmul.f32 0.015625, %v1429_v7  ;;  %v4462_v28 = vld [vmem:[%s4278_s14 + $0x330] sm:$0xff]  ;;  %v4478_v30 = vld [vmem:[%s4278_s14 + $0x3a8] sm:$0xff]  ;;  %v1921_v8 = vunpack.c.h.bf16 %v4452_v15  ;;  %v1981_v57 = vunpack.c.h.bf16 %v4494_v22  ;;  %v1987_v38 = vunpack.c.h.bf16 %v4501_v14 }
  0x63   : > { %7876 = vst [vmem:[#allocation91_spill] sm:$0xff] %v4440_v56  ;;  %7879 = vst [vmem:[#allocation94_spill] sm:$0xff] %v4449_v52  ;;  %v4475_v21 = vld [vmem:[%s4278_s14 + $0x390] sm:$0xff]  ;;  %v4514_v7 = vld [vmem:[%s4278_s14 + $0x468] sm:$0xff]  ;;  %v1993_v50 = vunpack.c.h.bf16 %v4504_v13  ;;  %v2023_v13 = vunpack.c.h.bf16 %v4527_v10  ;;  %v2029_v14 = vunpack.c.h.bf16 %v4530_v34  ;;  %v2089_v34 = vunpack.c.h.bf16 %v4572_v12 }
  0x64   : > { %7880 = vst [vmem:[#allocation95_spill] sm:$0xff] %v4452_v15  ;;  %7881 = vst [vmem:[#allocation96_spill] sm:$0xff] %v4455_v63  ;;  %v1933_v63 = vunpack.c.h.bf16 %v4465_v27  ;;  %v4540_v52 = vld [vmem:[%s4278_s14 + $0x4f8] sm:$0xff]  ;;  %v4543_v15 = vld [vmem:[%s4278_s14 + $0x510] sm:$0xff]  ;;  %v7920_v12 = vunpack.c.h.bf16 %v4417_v62  ;;  %v2431_v31 = vadd.f32 %v1921_v8, %v1915_v11 }
  0x65   : > { %7882 = vst [vmem:[#allocation97_spill] sm:$0xff] %v4457_v48  ;;  %7883 = vst [vmem:[#allocation98_spill] sm:$0xff] %v4459_v60  ;;  %v4533_v60 = vld [vmem:[%s4278_s14 + $0x4e0] sm:$0xff]  ;;  %v1927_v48 = vunpack.c.h.bf16 %v4462_v28  ;;  %v4546_v56 = vld [vmem:[%s4278_s14 + $0x528] sm:$0xff]  ;;  %v2041_v51 = vunpack.c.h.bf16 %v4540_v52  ;;  %v2047_v46 = vunpack.c.h.bf16 %v4543_v15 }
  0x66   : > { %7884 = vst [vmem:[#allocation99_spill] sm:$0xff] %v4462_v28  ;;  %7888 = vst [vmem:[#allocation103_spill] sm:$0xff] %v4475_v21  ;;  %v1963_v28 = vunpack.c.h.bf16 %v4481_v19  ;;  %v4553_v27 = vld [vmem:[%s4278_s14 + $0x540] sm:$0xff]  ;;  %v4579_v21 = vld [vmem:[%s4278_s14 + $0x5d0] sm:$0xff]  ;;  %v2035_v58 = vunpack.c.h.bf16 %v4533_v60 }
  0x67   : > { %7889 = vst [vmem:[#allocation104_spill] sm:$0xff] %v4478_v30  ;;  %7897 = vst [vmem:[#allocation112_spill] sm:$0xff] %v4514_v7  ;;  %v4566_v30 = vld [vmem:[%s4278_s14 + $0x588] sm:$0xff]  ;;  %v4569_v19 = vld [vmem:[%s4278_s14 + $0x5a0] sm:$0xff]  ;;  %v2059_v61 = vunpack.c.h.bf16 %v4553_v27  ;;  %v2071_v7 = vunpack.c.h.bf16 %v4559_v39 }
  0x68   : > { %7902 = vst [vmem:[#allocation117_spill] sm:$0xff] %v4533_v60  ;;  %7903 = vst [vmem:[#allocation118_spill] sm:$0xff] %v4540_v52  ;;  %v4582_v22 = vld [vmem:[%s4278_s14 + $0x5e8] sm:$0xff]  ;;  %v2077_v23 = vunpack.c.h.bf16 %v4566_v30  ;;  %v2083_v10 = vunpack.c.h.bf16 %v4569_v19  ;;  %v2095_v60 = vunpack.c.h.bf16 %v4579_v21 }
  0x69   : > { %7904 = vst [vmem:[#allocation119_spill] sm:$0xff] %v4543_v15  ;;  %7905 = vst [vmem:[#allocation120_spill] sm:$0xff] %v4546_v56  ;;  %v2101_v52 = vunpack.c.h.bf16 %v4582_v22  ;;  %v7914_v15 = vunpack.c.h.bf16 %v4295_v35  ;;  %v7921_v35 = vunpack.c.h.bf16 %v4313_v45  ;;  %v2665_v59 = vadd.f32 %v2065_v9, %v2059_v61  ;;  %v8020_v45 = vld [vmem:[#allocation51_spill] sm:$0xff]  ;;  %v8029_v62 = vld [vmem:[#allocation4_spill] sm:$0xff] }
  0x6a   : > { %7906 = vst [vmem:[#allocation121_spill] sm:$0xff] %v4553_v27  ;;  %7909 = vst [vmem:[#allocation124_spill] sm:$0xff] %v4566_v30  ;;  %v7916_v27 = vunpack.c.h.bf16 %v4360_v16  ;;  %v7918_v30 = vunpack.c.h.bf16 %v4391_v18  ;;  %v2587_v16 = vadd.f32 %v2017_v29, %v2011_v37  ;;  %v7924_v18 = vunpack.c.h.bf16 %v4424_v17 }
  0x6b   : > { %7910 = vst [vmem:[#allocation125_spill] sm:$0xff] %v4569_v19  ;;  %7912 = vst [vmem:[#allocation127_spill] sm:$0xff] %v4579_v21  ;;  %v2119_v56 = vadd.f32 %v7915_v33, %v7914_v15  ;;  %v7919_v19 = vunpack.c.h.bf16 %v4394_v5  ;;  %v2353_v21 = vadd.f32 %v1873_v24, %v7920_v12  ;;  %v7922_v33 = vunpack.c.h.bf16 %v4368_v53  ;;  %v8013_v53 = vld [vmem:[#allocation44_spill] sm:$0xff] }
  0x6c   : > { %7913 = vst [vmem:[#allocation128_spill] sm:$0xff] %v4582_v22  ;;  %v2197_v39 = vadd.f32 %v7917_v1, %v7916_v27  ;;  %v2509_v22 = vadd.f32 %v1969_v2, %v1963_v28  ;;  %v7923_v1 = vunpack.c.h.bf16 %v4398_v55  ;;  %v7925_v12 = vunpack.c.h.bf16 %v4325_v42  ;;  %v8007_v55 = vld [vmem:[#allocation38_spill] sm:$0xff] }
  0x6d   : > { %v2275_v49 = vadd.f32 %v7919_v19, %v7918_v30  ;;  %v2120_v25 = vadd.f32 %v2119_v56, %v7921_v35  ;;  %v2354_v5 = vadd.f32 %v2353_v21, %v7924_v18  ;;  %v2432_v19 = vadd.f32 %v2431_v31, %v1927_v48  ;;  %v8019_v42 = vld [vmem:[#allocation50_spill] sm:$0xff] }
  0x6e   : > { %v2198_v15 = vadd.f32 %v2197_v39, %v7922_v33  ;;  %v2510_v30 = vadd.f32 %v2509_v22, %v1975_v40  ;;  %v7926_v2 = vunpack.c.h.bf16 %v4372_v6  ;;  %v2588_v24 = vadd.f32 %v2587_v16, %v2023_v13  ;;  %v8012_v6 = vld [vmem:[#allocation43_spill] sm:$0xff] }
  0x6f   : > { %v2276_v27 = vadd.f32 %v2275_v49, %v7923_v1  ;;  %v2121_v11 = vadd.f32 %v2120_v25, %v7925_v12  ;;  %v2666_v28 = vadd.f32 %v2665_v59, %v2071_v7  ;;  %v7927_v39 = vunpack.c.h.bf16 %v4401_v43  ;;  %v8006_v43 = vld [vmem:[#allocation37_spill] sm:$0xff] }
  0x70   : > { %v2199_v8 = vadd.f32 %v2198_v15, %v7926_v2  ;;  %v7928_v9 = vunpack.c.h.bf16 %v4427_v20  ;;  %v2433_v37 = vadd.f32 %v2432_v19, %v1933_v63  ;;  %v2511_v49 = vadd.f32 %v2510_v30, %v1981_v57  ;;  %v7938_v30 = vld [vmem:[#allocation102_spill] sm:$0xff] }
  0x71   : > { %v2277_v29 = vadd.f32 %v2276_v27, %v7927_v39  ;;  %v7929_v18 = vunpack.c.h.bf16 %v4332_v0  ;;  %v7930_v22 = vunpack.c.h.bf16 %v4376_v32  ;;  %v2589_v25 = vadd.f32 %v2588_v24, %v2029_v14  ;;  %v7999_v20 = vld [vmem:[#allocation30_spill] sm:$0xff] }
  0x72   : > { %v2355_v61 = vadd.f32 %v2354_v5, %v7928_v9  ;;  %v2667_v56 = vadd.f32 %v2666_v28, %v2077_v23  ;;  %v7931_v48 = vunpack.c.h.bf16 %v4404_v36  ;;  %v7932_v59 = vunpack.c.h.bf16 %v4430_v44  ;;  %v7942_v28 = vld [vmem:[#allocation73_spill] sm:$0xff]  ;;  %v8005_v36 = vld [vmem:[#allocation36_spill] sm:$0xff]  ;;  %v8011_v32 = vld [vmem:[#allocation42_spill] sm:$0xff] }
  0x73   : > { %v2122_v31 = vadd.f32 %v2121_v11, %v7929_v18  ;;  %v2200_v40 = vadd.f32 %v2199_v8, %v7930_v22  ;;  %v7933_v21 = vunpack.c.h.bf16 %v4468_v26  ;;  %v2512_v5 = vadd.f32 %v2511_v49, %v1987_v38  ;;  %v7940_v8 = vld [vmem:[#allocation65_spill] sm:$0xff]  ;;  %v7946_v49 = vld [vmem:[#allocation92_spill] sm:$0xff]  ;;  %v7948_v22 = vld [vmem:[#allocation103_spill] sm:$0xff] }
  0x74   : > { %v2278_v13 = vadd.f32 %v2277_v29, %v7931_v48  ;;  %v2356_v16 = vadd.f32 %v2355_v61, %v7932_v59  ;;  %v7934_v57 = vunpack.c.h.bf16 %v4342_v47  ;;  %v7935_v35 = vunpack.c.h.bf16 %v4380_v54  ;;  %v7998_v44 = vld [vmem:[#allocation29_spill] sm:$0xff]  ;;  %v8017_v47 = vld [vmem:[#allocation48_spill] sm:$0xff]  ;;  %v8023_v26 = vld [vmem:[#allocation54_spill] sm:$0xff] }
  0x75   : > { %v2434_v7 = vadd.f32 %v2433_v37, %v7933_v21  ;;  %v2590_v15 = vadd.f32 %v2589_v25, %v2035_v58  ;;  %v2668_v1 = vadd.f32 %v2667_v56, %v2083_v10  ;;  %v7936_v23 = vunpack.c.h.bf16 %v4407_v41  ;;  %v7944_v58 = vld [vmem:[#allocation81_spill] sm:$0xff]  ;;  %v7950_v56 = vld [vmem:[#allocation111_spill] sm:$0xff]  ;;  %v7954_v21 = vld [vmem:[#allocation74_spill] sm:$0xff] }
  0x76   : > { %v2123_v63 = vadd.f32 %v2122_v31, %v7934_v57  ;;  %v2201_v33 = vadd.f32 %v2200_v40, %v7935_v35  ;;  %v7937_v27 = vunpack.c.h.bf16 %v4433_v3  ;;  %v7939_v12 = vunpack.c.h.bf16 %v7938_v30  ;;  %v7956_v57 = vld [vmem:[#allocation82_spill] sm:$0xff]  ;;  %v7997_v3 = vld [vmem:[#allocation28_spill] sm:$0xff]  ;;  %v8004_v41 = vld [vmem:[#allocation35_spill] sm:$0xff] }
  0x77   : > { %v2279_v14 = vadd.f32 %v2278_v13, %v7936_v23  ;;  %v2513_v2 = vadd.f32 %v2512_v5, %v1993_v50  ;;  %v7941_v38 = vunpack.c.h.bf16 %v7940_v8  ;;  %v7943_v39 = vunpack.c.h.bf16 %v7942_v28  ;;  %v7952_v13 = vld [vmem:[#allocation66_spill] sm:$0xff]  ;;  %v7960_v23 = vld [vmem:[#allocation104_spill] sm:$0xff]  ;;  %v8016_v8 = vld [vmem:[#allocation47_spill] sm:$0xff] }
  0x78   : > { %v2357_v19 = vadd.f32 %v2356_v16, %v7937_v27  ;;  %v2435_v11 = vadd.f32 %v2434_v7, %v7939_v12  ;;  %v2591_v9 = vadd.f32 %v2590_v15, %v2041_v51  ;;  %v2669_v61 = vadd.f32 %v2668_v1, %v2089_v34  ;;  %v8021_v54 = vld [vmem:[#allocation52_spill] sm:$0xff]  ;;  %v8026_v28 = vld [vmem:[#allocation57_spill] sm:$0xff] }
  0x79   : > { %v2124_v24 = vadd.f32 %v2123_v63, %v7941_v38  ;;  %v2202_v29 = vadd.f32 %v2201_v33, %v7943_v39  ;;  %v7945_v10 = vunpack.c.h.bf16 %v7944_v58  ;;  %v7947_v18 = vunpack.c.h.bf16 %v7946_v49  ;;  %v7958_v33 = vld [vmem:[#allocation93_spill] sm:$0xff]  ;;  %v7996_v49 = vld [vmem:[#allocation27_spill] sm:$0xff]  ;;  %v8003_v58 = vld [vmem:[#allocation34_spill] sm:$0xff] }
  0x7a   : > { %v7949_v40 = vunpack.c.h.bf16 %v7948_v22  ;;  %v7951_v48 = vunpack.c.h.bf16 %v7950_v56  ;;  %v7953_v59 = vunpack.c.h.bf16 %v7952_v13  ;;  %v7955_v7 = vunpack.c.h.bf16 %v7954_v21  ;;  %v8008_v21 = vld [vmem:[#allocation39_spill] sm:$0xff]  ;;  %v8015_v13 = vld [vmem:[#allocation46_spill] sm:$0xff] }
  0x7b   : > { %v2280_v37 = vadd.f32 %v2279_v14, %v7945_v10  ;;  %v2358_v31 = vadd.f32 %v2357_v19, %v7947_v18  ;;  %v2592_v51 = vadd.f32 %v2591_v9, %v2047_v46  ;;  %v2670_v34 = vadd.f32 %v2669_v61, %v2095_v60  ;;  %v7962_v19 = vld [vmem:[#allocation112_spill] sm:$0xff] }
  0x7c   : > { %v2436_v25 = vadd.f32 %v2435_v11, %v7949_v40  ;;  %v2514_v50 = vadd.f32 %v2513_v2, %v7951_v48  ;;  %v2125_v16 = vadd.f32 %v2124_v24, %v7953_v59  ;;  %v2203_v5 = vadd.f32 %v2202_v29, %v7955_v7  ;;  %v7964_v24 = vld [vmem:[#allocation120_spill] sm:$0xff] }
  0x7d   : > { %v7957_v63 = vunpack.c.h.bf16 %v7956_v57  ;;  %v7959_v15 = vunpack.c.h.bf16 %v7958_v33  ;;  %v7961_v14 = vunpack.c.h.bf16 %v7960_v23  ;;  %v7963_v12 = vunpack.c.h.bf16 %v7962_v19  ;;  %v7995_v33 = vld [vmem:[#allocation26_spill] sm:$0xff]  ;;  %v8022_v57 = vld [vmem:[#allocation53_spill] sm:$0xff] }
  0x7e   : > { %v2126_v2 = vrot.slane %v2125_v16, 4  ;;  %v2204_v38 = vrot.slane %v2203_v5, 4  ;;  %v7965_v39 = vunpack.c.h.bf16 %v7964_v24  ;;  %v2671_v29 = vadd.f32 %v2670_v34, %v2101_v52 }
  0x7f   : > { %v2281_v35 = vadd.f32 %v2280_v37, %v7957_v63  ;;  %v2359_v1 = vadd.f32 %v2358_v31, %v7959_v15  ;;  %v2437_v27 = vadd.f32 %v2436_v25, %v7961_v14  ;;  %v2515_v11 = vadd.f32 %v2514_v50, %v7963_v12 }
  0x80   : > { %v2593_v10 = vadd.f32 %v2592_v51, %v7965_v39  ;;  %v2127_v37 = vadd.f32 %v2126_v2, %v2125_v16  ;;  %v2205_v18 = vadd.f32 %v2204_v38, %v2203_v5  ;;  %v2672_v31 = vrot.slane %v2671_v29, 4 }
  0x81   : > { %v2282_v46 = vrot.slane %v2281_v35, 4  ;;  %v2360_v60 = vrot.slane %v2359_v1, 4  ;;  %v2438_v9 = vrot.slane %v2437_v27, 4  ;;  %v2516_v61 = vrot.slane %v2515_v11, 4 }
  0x82   : > { %v2594_v40 = vrot.slane %v2593_v10, 4  ;;  %v2128_v63 = vrot.slane %v2127_v37, 2  ;;  %v2206_v50 = vrot.slane %v2205_v18, 2  ;;  %v2673_v14 = vadd.f32 %v2672_v31, %v2671_v29 }
  0x83   : > { %v2283_v48 = vadd.f32 %v2282_v46, %v2281_v35  ;;  %v2361_v59 = vadd.f32 %v2360_v60, %v2359_v1  ;;  %v2439_v25 = vadd.f32 %v2438_v9, %v2437_v27  ;;  %v2517_v7 = vadd.f32 %v2516_v61, %v2515_v11 }
  0x84   : > { %v2595_v15 = vadd.f32 %v2594_v40, %v2593_v10  ;;  %v2129_v34 = vadd.f32 %v2128_v63, %v2127_v37  ;;  %v2207_v39 = vadd.f32 %v2206_v50, %v2205_v18  ;;  %v2674_v56 = vrot.slane %v2673_v14, 2 }
  0x85   : > { %v2284_v12 = vrot.slane %v2283_v48, 2  ;;  %v2362_v24 = vrot.slane %v2361_v59, 2  ;;  %v2440_v51 = vrot.slane %v2439_v25, 2  ;;  %v2518_v52 = vrot.slane %v2517_v7, 2 }
  0x86   : > { %v2596_v19 = vrot.slane %v2595_v15, 2  ;;  %v2130_v35 = vrot.slane %v2129_v34, 1  ;;  %v2208_v1 = vrot.slane %v2207_v39, 1  ;;  %v2675_v11 = vadd.f32 %v2674_v56, %v2673_v14 }
  0x87   : > { %v2285_v16 = vadd.f32 %v2284_v12, %v2283_v48  ;;  %v2363_v5 = vadd.f32 %v2362_v24, %v2361_v59  ;;  %v2441_v2 = vadd.f32 %v2440_v51, %v2439_v25  ;;  %v2519_v38 = vadd.f32 %v2518_v52, %v2517_v7  ;;  %v7966_v51 = vld [vmem:[#allocation58_spill] sm:$0xff] }
  0x88   : > { %v2597_v27 = vadd.f32 %v2596_v19, %v2595_v15  ;;  %v2131_v9 = vadd.f32 %v2130_v35, %v2129_v34  ;;  %v2209_v61 = vadd.f32 %v2208_v1, %v2207_v39  ;;  %v2676_v18 = vrot.slane %v2675_v11, 1  ;;  %v7967_v34 = vld [vmem:[#allocation61_spill] sm:$0xff]  ;;  %v7969_v35 = vld [vmem:[#allocation90_spill] sm:$0xff] }
  0x89   : > { %v2286_v10 = vrot.slane %v2285_v16, 1  ;;  %v2364_v29 = vrot.slane %v2363_v5, 1  ;;  %v2442_v46 = vrot.slane %v2441_v2, 1  ;;  %v2520_v60 = vrot.slane %v2519_v38, 1 }
  0x8a   : > { %v2598_v37 = vrot.slane %v2597_v27, 1  ;;  %v2677_v25 = vadd.f32 %v2676_v18, %v2675_v11  ;;  %v2731_v19 = vmul.f32 0.015625, %v2131_v9  ;;  %v2737_v56 = vmul.f32 0.015625, %v2209_v61  ;;  %v7973_v9 = vld [vmem:[#allocation98_spill] sm:$0xff] }
  0x8b   : > { %v2287_v40 = vadd.f32 %v2286_v10, %v2285_v16  ;;  %v2365_v24 = vadd.f32 %v2364_v29, %v2363_v5  ;;  %v2443_v31 = vadd.f32 %v2442_v46, %v2441_v2  ;;  %v2521_v48 = vadd.f32 %v2520_v60, %v2519_v38  ;;  %v2920_v16 = vld [vmem:[%s7254_s2 + $0x170] sm:$0xff]  ;;  %v2921_v5 = vld [vmem:[%s7254_s2 + $0x178] sm:$0xff] }
  0x8c   : > { %v2599_v59 = vadd.f32 %v2598_v37, %v2597_v27  ;;  %v2773_v12 = vmul.f32 0.015625, %v2677_v25  ;;  %v2779_v52 = vsub.f32 %v7966_v51, %v2731_v19  ;;  %v2785_v39 = vsub.f32 %v7967_v34, %v2737_v56  ;;  %v7968_v2 = vld [vmem:[#allocation89_spill] sm:$0xff]  ;;  %v7970_v27 = vld [vmem:[#allocation91_spill] sm:$0xff]  ;;  %v7971_v10 = vld [vmem:[#allocation96_spill] sm:$0xff] }
  0x8d   : > { %v2743_v7 = vmul.f32 0.015625, %v2287_v40  ;;  %v2749_v63 = vmul.f32 0.015625, %v2365_v24  ;;  %v2755_v50 = vmul.f32 0.015625, %v2443_v31  ;;  %v2761_v15 = vmul.f32 0.015625, %v2521_v48  ;;  %v7972_v46 = vld [vmem:[#allocation97_spill] sm:$0xff]  ;;  %v2954_v40 = vld [vmem:[%s7254_s2 + $0x280] sm:$0xff] }
  0x8e   : > { %v2767_v14 = vmul.f32 0.015625, %v2599_v59  ;;  %v2821_v61 = vsub.f32 %v7973_v9, %v2773_v12  ;;  %v2827_v37 = vand.u32 2147483647, %v2779_v52  ;;  %v2833_v18 = vand.u32 2147483647, %v2785_v39  ;;  %v2955_v24 = vld [vmem:[%s7254_s2 + $0x288] sm:$0xff] }
  0x8f   : > { %v2791_v38 = vsub.f32 %v7968_v2, %v2743_v7  ;;  %v2797_v1 = vsub.f32 %v7969_v35, %v2749_v63  ;;  %v2803_v11 = vsub.f32 %v7970_v27, %v2755_v50  ;;  %v2809_v29 = vsub.f32 %v7971_v10, %v2761_v15  ;;  %v4701_v51 = vld [vmem:[%s3918_s27 + $0x78] sm:$0xff]  ;;  %v4706_v39 = vld [vmem:[%s3918_s27 + $0x90] sm:$0xff] }
  0x90   : > { %v2815_v60 = vsub.f32 %v7972_v46, %v2767_v14  ;;  %v3569_v25 = vpack.c.bf16 %v2921_v5, %v2920_v16  ;;  %v2869_v7 = vand.u32 2147483647, %v2821_v61  ;;  %v3039_v63 = vsel %vm3025_vm0, %v2833_v18, %v2827_v37  ;;  %v4697_v14 = vld [vmem:[%s3918_s27 + $0x60] sm:$0xff]  ;;  %7974 = vst [vmem:[#allocation58_spill] sm:$0xff] %v4706_v39  ;;  %v4710_v5 = vld [vmem:[%s3918_s27 + $0xa8] sm:$0xff]  ;;  %v4719_v27 = vld [vmem:[%s3918_s27 + $0xd8] sm:$0xff] }
  0x91   : > { %v2839_v31 = vand.u32 2147483647, %v2791_v38  ;;  %v2845_v48 = vand.u32 2147483647, %v2797_v1  ;;  %v2851_v59 = vand.u32 2147483647, %v2803_v11  ;;  %v3571_v15 = vpack.c.bf16 %v2955_v24, %v2954_v40 }
  0x92   : > { %v2857_v19 = vand.u32 2147483647, %v2809_v29  ;;  %v2863_v56 = vand.u32 2147483647, %v2815_v60  ;;  %3570 = vmatpush3.bf16.msra.mxu1 %v3569_v25  ;;  %7975 = vst [vmem:[#allocation61_spill] sm:$0xff] %v4710_v5  ;;  %v4714_v38 = vld [vmem:[%s3918_s27 + $0xc0] sm:$0xff]  ;;  %v666_v29 = vunpack.c.l.bf16 %v7995_v33  ;;  %v720_v60 = vunpack.c.l.bf16 %v8004_v41 }
  0x93   : > { %v3040_v50 = vsel %vm3027_vm1, %v2839_v31, %v3039_v63  ;;  %3572 = vmatprep.subr.bf16.mxu0 %v3571_v15  ;;  %v4723_v10 = vld [vmem:[%s3918_s27 + $0xf0] sm:$0xff]  ;;  %v4727_v46 = vld [vmem:[%s3918_s27 + $0x108] sm:$0xff]  ;;  %v4732_v61 = vld [vmem:[%s3918_s27 + $0x120] sm:$0xff]  ;;  %v726_v33 = vunpack.c.l.bf16 %v8005_v36  ;;  %v762_v22 = vunpack.c.l.bf16 %v8011_v32  ;;  %v768_v30 = vunpack.c.l.bf16 %v8012_v6 }
  0x94   : > { %v3041_v34 = vsel %vm3029_vm2, %v2845_v48, %v3040_v50  ;;  %v7976_v18 = vld [vmem:[#allocation7_spill] sm:$0xff]  ;;  %v7979_v63 = vld [vmem:[#allocation10_spill] sm:$0xff]  ;;  %v7981_v16 = vld [vmem:[#allocation12_spill] sm:$0xff]  ;;  %v780_v41 = vunpack.c.l.bf16 %v8014_v4  ;;  %v786_v36 = vunpack.c.l.bf16 %v8015_v13  ;;  %v822_v32 = vunpack.c.l.bf16 %v8021_v54 }
  0x95   : > { %v3042_v1 = vsel %vm3031_vm3, %v2851_v59, %v3041_v34  ;;  %v570_v50 = vunpack.c.l.bf16 %v7979_v63  ;;  %v7980_v15 = vld [vmem:[#allocation11_spill] sm:$0xff]  ;;  %v7983_v12 = vld [vmem:[#allocation14_spill] sm:$0xff]  ;;  %v828_v6 = vunpack.c.l.bf16 %v8022_v57  ;;  %v8025_v59 = vld [vmem:[#allocation56_spill] sm:$0xff] }
  0x96   : > { %v3043_v9 = vsel %vm3033_vm4, %v2857_v19, %v3042_v1  ;;  %v576_v34 = vunpack.c.l.bf16 %v7980_v15  ;;  %v582_v19 = vunpack.c.l.bf16 %v7981_v16  ;;  %v7982_v1 = vld [vmem:[#allocation13_spill] sm:$0xff]  ;;  %v7987_v25 = vld [vmem:[#allocation18_spill] sm:$0xff]  ;;  %v7988_v63 = vld [vmem:[#allocation19_spill] sm:$0xff]  ;;  %v846_v13 = vunpack.c.l.bf16 %v8025_v59 }
  0x97   : > { %v3044_v48 = vsel %vm3035_vm5, %v2863_v56, %v3043_v9  ;;  %v618_v11 = vunpack.c.l.bf16 %v7987_v25  ;;  %v624_v35 = vunpack.c.l.bf16 %v7988_v63  ;;  %v7989_v15 = vld [vmem:[#allocation20_spill] sm:$0xff]  ;;  %v7991_v16 = vld [vmem:[#allocation22_spill] sm:$0xff]  ;;  %v672_v9 = vunpack.c.l.bf16 %v7996_v49  ;;  %v8024_v56 = vld [vmem:[#allocation55_spill] sm:$0xff] }
  0x98   : > { %v3045_v2 = vsel %vm3037_vm6, %v2869_v7, %v3044_v48  ;;  %v630_v23 = vunpack.c.l.bf16 %v7989_v15  ;;  %v7990_v7 = vld [vmem:[#allocation21_spill] sm:$0xff]  ;;  %v678_v25 = vunpack.c.l.bf16 %v7997_v3  ;;  %v684_v63 = vunpack.c.l.bf16 %v7998_v44  ;;  %v8027_v5 = vld [vmem:[#allocation3_spill] sm:$0xff] }
  0x99   : > { %3144 = vmatprep.mubr.f32.mxu0 %v3045_v2  ;;  %v636_v48 = vunpack.c.l.bf16 %v7990_v7  ;;  %v690_v15 = vunpack.c.l.bf16 %v7999_v20  ;;  %v714_v2 = vunpack.c.l.bf16 %v8003_v58  ;;  %v732_v49 = vunpack.c.l.bf16 %v8006_v43 }
  0x9a   : > { %v738_v3 = vunpack.c.l.bf16 %v8007_v55  ;;  %v744_v44 = vunpack.c.l.bf16 %v8008_v21  ;;  %v774_v58 = vunpack.c.l.bf16 %v8013_v53  ;;  %v792_v43 = vunpack.c.l.bf16 %v8016_v8 }
  0x9b   : > { %v798_v55 = vunpack.c.l.bf16 %v8017_v47  ;;  %v810_v20 = vunpack.c.l.bf16 %v8019_v42  ;;  %v816_v7 = vunpack.c.l.bf16 %v8020_v45  ;;  %v834_v53 = vunpack.c.l.bf16 %v8023_v26  ;;  %v8033_v26 = vld [vmem:[#allocation5_spill] sm:$0xff] }
  0x9c   : > { %v840_v4 = vunpack.c.l.bf16 %v8024_v56  ;;  %v852_v8 = vunpack.c.l.bf16 %v8026_v28  ;;  %v8028_v47 = vunpack.c.l.bf16 %v8027_v5  ;;  %v8030_v21 = vunpack.c.l.bf16 %v8029_v62 }
  0x9d   : > { %v8031_v42 = vunpack.c.l.bf16 %v4714_v38  ;;  %v8032_v45 = vunpack.c.l.bf16 %v4719_v27  ;;  %v1014_v37 = vadd.f32 %v576_v34, %v570_v50  ;;  %v1092_v57 = vadd.f32 %v624_v35, %v618_v11 }
  0x9e   : > { %v858_v0 = vadd.f32 %v8030_v21, %v8028_v47  ;;  %v1170_v31 = vadd.f32 %v672_v9, %v666_v29  ;;  %v8034_v24 = vunpack.c.l.bf16 %v8033_v26  ;;  %v1248_v39 = vadd.f32 %v720_v60, %v714_v2  ;;  %v8036_v47 = vld [vmem:[#allocation6_spill] sm:$0xff]  ;;  %v8058_v26 = vld [vmem:[#allocation24_spill] sm:$0xff] }
  0x9f   : > { %v936_v54 = vadd.f32 %v8032_v45, %v8031_v42  ;;  %v1326_v59 = vadd.f32 %v768_v30, %v762_v22  ;;  %v1404_v17 = vadd.f32 %v816_v7, %v810_v20  ;;  %v8035_v28 = vunpack.c.l.bf16 %v4723_v10  ;;  %v8050_v20 = vld [vmem:[#allocation31_spill] sm:$0xff] }
  0xa0   : > { %v859_v56 = vadd.f32 %v858_v0, %v8034_v24  ;;  %v1015_v52 = vadd.f32 %v1014_v37, %v582_v19  ;;  %v1093_v62 = vadd.f32 %v1092_v57, %v630_v23  ;;  %v1171_v21 = vadd.f32 %v1170_v31, %v678_v25 }
  0xa1   : > { %v937_v5 = vadd.f32 %v936_v54, %v8035_v28  ;;  %v8037_v38 = vunpack.c.l.bf16 %v8036_v47  ;;  %v1249_v27 = vadd.f32 %v1248_v39, %v726_v33  ;;  %v1327_v42 = vadd.f32 %v1326_v59, %v774_v58  ;;  %v8048_v33 = vld [vmem:[#allocation23_spill] sm:$0xff]  ;;  %v8060_v28 = vld [vmem:[#allocation32_spill] sm:$0xff] }
  0xa2   : > { %v1405_v50 = vadd.f32 %v1404_v17, %v822_v32  ;;  %v8038_v35 = vunpack.c.l.bf16 %v4727_v46  ;;  %v8039_v0 = vunpack.c.l.bf16 %v7982_v1  ;;  %v1094_v30 = vadd.f32 %v1093_v62, %v636_v48 }
  0xa3   : > { %v860_v40 = vadd.f32 %v859_v56, %v8037_v38  ;;  %v1172_v22 = vadd.f32 %v1171_v21, %v684_v63  ;;  %v8040_v10 = vunpack.c.l.bf16 %v4697_v14  ;;  %v1250_v37 = vadd.f32 %v1249_v27, %v732_v49  ;;  %v8046_v63 = vld [vmem:[#allocation15_spill] sm:$0xff]  ;;  %v8062_v21 = vld [vmem:[#allocation61_spill] sm:$0xff]  ;;  %v8064_v27 = vld [vmem:[#allocation40_spill] sm:$0xff] }
  0xa4   : > { %v938_v11 = vadd.f32 %v937_v5, %v8038_v35  ;;  %v1016_v29 = vadd.f32 %v1015_v52, %v8039_v0  ;;  %v1328_v23 = vadd.f32 %v1327_v42, %v780_v41  ;;  %v1406_v24 = vadd.f32 %v1405_v50, %v828_v6  ;;  %v8052_v41 = vld [vmem:[#allocation58_spill] sm:$0xff]  ;;  %v8066_v50 = vld [vmem:[#allocation9_spill] sm:$0xff] }
  0xa5   : > { %v861_v60 = vadd.f32 %v860_v40, %v8040_v10  ;;  %v8041_v31 = vunpack.c.l.bf16 %v4732_v61  ;;  %v8042_v39 = vunpack.c.l.bf16 %v7983_v12  ;;  %v8043_v46 = vunpack.c.l.bf16 %v7991_v16  ;;  %v8068_v0 = vld [vmem:[#allocation17_spill] sm:$0xff] }
  0xa6   : > { %v1173_v9 = vadd.f32 %v1172_v22, %v690_v15  ;;  %v8044_v52 = vunpack.c.l.bf16 %v4701_v51  ;;  %v1251_v48 = vadd.f32 %v1250_v37, %v738_v3  ;;  %v1329_v2 = vadd.f32 %v1328_v23, %v786_v36  ;;  %v8054_v36 = vld [vmem:[#allocation8_spill] sm:$0xff]  ;;  %v8070_v22 = vld [vmem:[#allocation25_spill] sm:$0xff] }
  0xa7   : > { %v939_v34 = vadd.f32 %v938_v11, %v8041_v31  ;;  %v1017_v17 = vadd.f32 %v1016_v29, %v8042_v39  ;;  %v1095_v19 = vadd.f32 %v1094_v30, %v8043_v46  ;;  %v1407_v14 = vadd.f32 %v1406_v24, %v834_v53  ;;  %v8072_v37 = vld [vmem:[#allocation33_spill] sm:$0xff] }
  0xa8   : > { %v862_v1 = vadd.f32 %v861_v60, %v8044_v52  ;;  %v8045_v40 = vunpack.c.l.bf16 %v7976_v18  ;;  %v8047_v7 = vunpack.c.l.bf16 %v8046_v63  ;;  %v8049_v49 = vunpack.c.l.bf16 %v8048_v33  ;;  %v8056_v18 = vld [vmem:[#allocation16_spill] sm:$0xff]  ;;  %v8076_v46 = vld [vmem:[#allocation49_spill] sm:$0xff] }
  0xa9   : > { %v8051_v58 = vunpack.c.l.bf16 %v8050_v20  ;;  %v8053_v15 = vunpack.c.l.bf16 %v8052_v41  ;;  %v1252_v51 = vadd.f32 %v1251_v48, %v744_v44  ;;  %v1330_v6 = vadd.f32 %v1329_v2, %v792_v43 }
  0xaa   : > { %v940_v25 = vadd.f32 %v939_v34, %v8045_v40  ;;  %v1018_v61 = vadd.f32 %v1017_v17, %v8047_v7  ;;  %v1096_v12 = vadd.f32 %v1095_v19, %v8049_v49  ;;  %v1408_v3 = vadd.f32 %v1407_v14, %v840_v4  ;;  %v8074_v34 = vld [vmem:[#allocation41_spill] sm:$0xff] }
  0xab   : > { %v1174_v16 = vadd.f32 %v1173_v9, %v8051_v58  ;;  %v863_v32 = vadd.f32 %v862_v1, %v8053_v15  ;;  %v8055_v53 = vunpack.c.l.bf16 %v8054_v36  ;;  %v8057_v54 = vunpack.c.l.bf16 %v8056_v18 }
  0xac   : > { %v8059_v56 = vunpack.c.l.bf16 %v8058_v26  ;;  %v8061_v5 = vunpack.c.l.bf16 %v8060_v28  ;;  %v8063_v47 = vunpack.c.l.bf16 %v8062_v21  ;;  %v8065_v42 = vunpack.c.l.bf16 %v8064_v27 }
  0xad   : > { %v941_v45 = vadd.f32 %v940_v25, %v8055_v53  ;;  %v1019_v57 = vadd.f32 %v1018_v61, %v8057_v54  ;;  %v1331_v43 = vadd.f32 %v1330_v6, %v798_v55  ;;  %v1409_v4 = vadd.f32 %v1408_v3, %v846_v13 }
  0xae   : > { %v1097_v59 = vadd.f32 %v1096_v12, %v8059_v56  ;;  %v1175_v62 = vadd.f32 %v1174_v16, %v8061_v5  ;;  %v864_v38 = vadd.f32 %v863_v32, %v8063_v47  ;;  %v1253_v44 = vadd.f32 %v1252_v51, %v8065_v42 }
  0xaf   : > { %v8067_v35 = vunpack.c.l.bf16 %v8066_v50  ;;  %v8069_v29 = vunpack.c.l.bf16 %v8068_v0  ;;  %v8071_v10 = vunpack.c.l.bf16 %v8070_v22  ;;  %v8073_v23 = vunpack.c.l.bf16 %v8072_v37 }
  0xb0   : > { %v865_v31 = vrot.slane %v864_v38, 4  ;;  %v8075_v39 = vunpack.c.l.bf16 %v8074_v34  ;;  %v8077_v19 = vunpack.c.l.bf16 %v8076_v46  ;;  %v1410_v13 = vadd.f32 %v1409_v4, %v852_v8  ;;  %v8086_v34 = vld [vmem:[#allocation59_spill] sm:$0xff]  ;;  %v8128_v46 = vld [vmem:[#allocation108_spill] sm:$0xff] }
  0xb1   : > { %v942_v11 = vadd.f32 %v941_v45, %v8067_v35  ;;  %v1020_v30 = vadd.f32 %v1019_v57, %v8069_v29  ;;  %v1098_v60 = vadd.f32 %v1097_v59, %v8071_v10  ;;  %v1176_v24 = vadd.f32 %v1175_v62, %v8073_v23 }
  0xb2   : > { %v1254_v17 = vadd.f32 %v1253_v44, %v8075_v39  ;;  %v1332_v55 = vadd.f32 %v1331_v43, %v8077_v19  ;;  %v866_v2 = vadd.f32 %v865_v31, %v864_v38  ;;  %v1411_v25 = vrot.slane %v1410_v13, 4  ;;  %v8088_v19 = vld [vmem:[#allocation62_spill] sm:$0xff]  ;;  %v8129_v39 = vld [vmem:[#allocation109_spill] sm:$0xff] }
  0xb3   : > { %v943_v9 = vrot.slane %v942_v11, 4  ;;  %v1021_v52 = vrot.slane %v1020_v30, 4  ;;  %v1099_v1 = vrot.slane %v1098_v60, 4  ;;  %v1177_v48 = vrot.slane %v1176_v24, 4  ;;  %v8130_v31 = vld [vmem:[#allocation110_spill] sm:$0xff] }
  0xb4   : > { %v1255_v14 = vrot.slane %v1254_v17, 4  ;;  %v1333_v40 = vrot.slane %v1332_v55, 4  ;;  %v867_v49 = vrot.slane %v866_v2, 2  ;;  %v1412_v58 = vadd.f32 %v1411_v25, %v1410_v13  ;;  %v8089_v13 = vld [vmem:[#allocation63_spill] sm:$0xff] }
  0xb5   : > { %v944_v63 = vadd.f32 %v943_v9, %v942_v11  ;;  %v1022_v7 = vadd.f32 %v1021_v52, %v1020_v30  ;;  %v1100_v61 = vadd.f32 %v1099_v1, %v1098_v60  ;;  %v1178_v33 = vadd.f32 %v1177_v48, %v1176_v24  ;;  %v4867_v24 = vld [vmem:[%s4278_s14] sm:$0xff]  ;;  %v8090_v52 = vld [vmem:[#allocation64_spill] sm:$0xff] }
  0xb6   : > { %v1256_v12 = vadd.f32 %v1255_v14, %v1254_v17  ;;  %v1334_v20 = vadd.f32 %v1333_v40, %v1332_v55  ;;  %v868_v32 = vadd.f32 %v867_v49, %v866_v2  ;;  %v1413_v3 = vrot.slane %v1412_v58, 2  ;;  %v8087_v17 = vld [vmem:[#allocation60_spill] sm:$0xff]  ;;  %v8093_v25 = vld [vmem:[#allocation67_spill] sm:$0xff]  ;;  %v8117_v2 = vld [vmem:[#allocation94_spill] sm:$0xff] }
  0xb7   : > { %v945_v16 = vrot.slane %v944_v63, 2  ;;  %v1023_v41 = vrot.slane %v1022_v7, 2  ;;  %v1101_v15 = vrot.slane %v1100_v61, 2  ;;  %v1179_v8 = vrot.slane %v1178_v33, 2  ;;  %v8120_v1 = vld [vmem:[#allocation100_spill] sm:$0xff]  ;;  %v8126_v55 = vld [vmem:[#allocation106_spill] sm:$0xff] }
  0xb8   : > { %v1257_v51 = vrot.slane %v1256_v12, 2  ;;  %v1335_v6 = vrot.slane %v1334_v20, 2  ;;  %v869_v54 = vrot.slane %v868_v32, 1  ;;  %v1414_v56 = vadd.f32 %v1413_v3, %v1412_v58  ;;  %v8097_v58 = vld [vmem:[#allocation71_spill] sm:$0xff]  ;;  %v8145_v14 = vld [vmem:[#allocation125_spill] sm:$0xff]  ;;  %v8146_v9 = vld [vmem:[#allocation126_spill] sm:$0xff] }
  0xb9   : > { %v946_v36 = vadd.f32 %v945_v16, %v944_v63  ;;  %v1024_v53 = vadd.f32 %v1023_v41, %v1022_v7  ;;  %v1102_v45 = vadd.f32 %v1101_v15, %v1100_v61  ;;  %v1180_v18 = vadd.f32 %v1179_v8, %v1178_v33  ;;  %v8094_v7 = vld [vmem:[#allocation68_spill] sm:$0xff]  ;;  %v8095_v33 = vld [vmem:[#allocation69_spill] sm:$0xff]  ;;  %v8101_v3 = vld [vmem:[#allocation75_spill] sm:$0xff] }
  0xba   : > { %v1258_v57 = vadd.f32 %v1257_v51, %v1256_v12  ;;  %v1336_v26 = vadd.f32 %v1335_v6, %v1334_v20  ;;  %v870_v21 = vadd.f32 %v869_v54, %v868_v32  ;;  %v1415_v27 = vrot.slane %v1414_v56, 1  ;;  %v8096_v12 = vld [vmem:[#allocation70_spill] sm:$0xff]  ;;  %v8119_v15 = vld [vmem:[#allocation99_spill] sm:$0xff]  ;;  %v8125_v20 = vld [vmem:[#allocation105_spill] sm:$0xff] }
  0xbb   : > { %v947_v59 = vrot.slane %v946_v36, 1  ;;  %v1025_v28 = vrot.slane %v1024_v53, 1  ;;  %v1103_v5 = vrot.slane %v1102_v45, 1  ;;  %v1181_v62 = vrot.slane %v1180_v18, 1  ;;  %v8127_v49 = vld [vmem:[#allocation107_spill] sm:$0xff]  ;;  %v8142_v51 = vld [vmem:[#allocation122_spill] sm:$0xff] }
  0xbc   : > { %v1259_v47 = vrot.slane %v1258_v57, 1  ;;  %v1337_v38 = vrot.slane %v1336_v26, 1  ;;  %v1416_v11 = vadd.f32 %v1415_v27, %v1414_v56  ;;  %v4850_v0 = vmul.f32 0.015625, %v870_v21  ;;  %v8105_v56 = vld [vmem:[#allocation79_spill] sm:$0xff] }
  0xbd   : > { %v948_v42 = vadd.f32 %v947_v59, %v946_v36  ;;  %v1026_v44 = vadd.f32 %v1025_v28, %v1024_v53  ;;  %v1104_v43 = vadd.f32 %v1103_v5, %v1102_v45  ;;  %v1182_v4 = vadd.f32 %v1181_v62, %v1180_v18  ;;  %v8102_v53 = vld [vmem:[#allocation76_spill] sm:$0xff]  ;;  %v8103_v18 = vld [vmem:[#allocation77_spill] sm:$0xff]  ;;  %v8109_v27 = vld [vmem:[#allocation83_spill] sm:$0xff] }
  0xbe   : > { %v1260_v50 = vadd.f32 %v1259_v47, %v1258_v57  ;;  %v1338_v35 = vadd.f32 %v1337_v38, %v1336_v26  ;;  %8078 = vst [vmem:[#allocation89_spill] sm:$0xff] %v4850_v0  ;;  %v4864_v23 = vmul.f32 0.015625, %v1416_v11  ;;  %v1770_v63 = vunpack.c.l.bf16 %v8093_v25  ;;  %v8104_v57 = vld [vmem:[#allocation78_spill] sm:$0xff]  ;;  %v8113_v25 = vld [vmem:[#allocation87_spill] sm:$0xff]  ;;  %v8121_v59 = vld [vmem:[#allocation101_spill] sm:$0xff] }
  0xbf   : > { %v4852_v29 = vmul.f32 0.015625, %v948_v42  ;;  %v4854_v30 = vmul.f32 0.015625, %v1026_v44  ;;  %v4856_v22 = vmul.f32 0.015625, %v1104_v43  ;;  %v4858_v10 = vmul.f32 0.015625, %v1182_v4  ;;  %v8110_v44 = vld [vmem:[#allocation84_spill] sm:$0xff]  ;;  %v8111_v4 = vld [vmem:[#allocation85_spill] sm:$0xff] }
  0xc0   : > { %v4860_v60 = vmul.f32 0.015625, %v1260_v50  ;;  %v4862_v37 = vmul.f32 0.015625, %v1338_v35  ;;  %8085 = vst [vmem:[#allocation10_spill] sm:$0xff] %v4864_v23  ;;  %v1776_v61 = vunpack.c.l.bf16 %v8094_v7  ;;  %v1818_v36 = vunpack.c.l.bf16 %v8101_v3  ;;  %v8112_v35 = vld [vmem:[#allocation86_spill] sm:$0xff]  ;;  %v8118_v5 = vld [vmem:[#allocation95_spill] sm:$0xff]  ;;  %v8141_v47 = vld [vmem:[#allocation121_spill] sm:$0xff] }
  0xc1   : > { %8079 = vst [vmem:[#allocation90_spill] sm:$0xff] %v4852_v29  ;;  %8080 = vst [vmem:[#allocation91_spill] sm:$0xff] %v4854_v30  ;;  %v1824_v45 = vunpack.c.l.bf16 %v8102_v53  ;;  %v1830_v54 = vunpack.c.l.bf16 %v8103_v18  ;;  %v1866_v42 = vunpack.c.l.bf16 %v8109_v27  ;;  %v1872_v43 = vunpack.c.l.bf16 %v8110_v44  ;;  %v8136_v30 = vld [vmem:[#allocation116_spill] sm:$0xff]  ;;  %v8137_v29 = vld [vmem:[#allocation117_spill] sm:$0xff] }
  0xc2   : > { %8081 = vst [vmem:[#allocation96_spill] sm:$0xff] %v4856_v22  ;;  %8082 = vst [vmem:[#allocation97_spill] sm:$0xff] %v4858_v10  ;;  %v1878_v50 = vunpack.c.l.bf16 %v8111_v4  ;;  %v1884_v11 = vunpack.c.l.bf16 %v8112_v35  ;;  %v1914_v21 = vunpack.c.l.bf16 %v8117_v2  ;;  %v1920_v38 = vunpack.c.l.bf16 %v8118_v5  ;;  %v8134_v10 = vld [vmem:[#allocation114_spill] sm:$0xff]  ;;  %v8135_v22 = vld [vmem:[#allocation115_spill] sm:$0xff] }
  0xc3   : > { %8083 = vst [vmem:[#allocation98_spill] sm:$0xff] %v4860_v60  ;;  %8084 = vst [vmem:[#allocation7_spill] sm:$0xff] %v4862_v37  ;;  %v1926_v27 = vunpack.c.l.bf16 %v8119_v15  ;;  %v1932_v44 = vunpack.c.l.bf16 %v8120_v1  ;;  %v1938_v4 = vunpack.c.l.bf16 %v8121_v59  ;;  %v1962_v6 = vunpack.c.l.bf16 %v8125_v20  ;;  %v8133_v60 = vld [vmem:[#allocation113_spill] sm:$0xff]  ;;  %v8138_v0 = vld [vmem:[#allocation118_spill] sm:$0xff] }
  0xc4   : > { %v1968_v32 = vunpack.c.l.bf16 %v8126_v55  ;;  %v1974_v2 = vunpack.c.l.bf16 %v8127_v49  ;;  %v1980_v5 = vunpack.c.l.bf16 %v8128_v46  ;;  %v1986_v15 = vunpack.c.l.bf16 %v8129_v39  ;;  %v8139_v26 = vld [vmem:[#allocation119_spill] sm:$0xff]  ;;  %v8144_v23 = vld [vmem:[#allocation124_spill] sm:$0xff] }
  0xc5   : > { %v1992_v1 = vunpack.c.l.bf16 %v8130_v31  ;;  %v2010_v7 = vunpack.c.l.bf16 %v8133_v60  ;;  %v2016_v53 = vunpack.c.l.bf16 %v8134_v10  ;;  %v2022_v20 = vunpack.c.l.bf16 %v8135_v22  ;;  %v8143_v37 = vld [vmem:[#allocation123_spill] sm:$0xff]  ;;  %v8148_v62 = vld [vmem:[#allocation128_spill] sm:$0xff] }
  0xc6   : > { %v2028_v55 = vunpack.c.l.bf16 %v8136_v30  ;;  %v2034_v49 = vunpack.c.l.bf16 %v8137_v29  ;;  %v2040_v46 = vunpack.c.l.bf16 %v8138_v0  ;;  %v2046_v39 = vunpack.c.l.bf16 %v8139_v26  ;;  %v8147_v18 = vld [vmem:[#allocation127_spill] sm:$0xff] }
  0xc7   : > { %v2058_v59 = vunpack.c.l.bf16 %v8141_v47  ;;  %v2064_v35 = vunpack.c.l.bf16 %v8142_v51  ;;  %v2070_v60 = vunpack.c.l.bf16 %v8143_v37  ;;  %v2076_v10 = vunpack.c.l.bf16 %v8144_v23 }
  0xc8   : > { %v2082_v22 = vunpack.c.l.bf16 %v8145_v14  ;;  %v2088_v30 = vunpack.c.l.bf16 %v8146_v9  ;;  %v2094_v29 = vunpack.c.l.bf16 %v8147_v18  ;;  %v2100_v0 = vunpack.c.l.bf16 %v8148_v62 }
  0xc9   : > { %v8149_v26 = vunpack.c.l.bf16 %v4867_v24  ;;  %v8150_v31 = vunpack.c.l.bf16 %v8086_v34  ;;  %v2184_v47 = vadd.f32 %v1776_v61, %v1770_v63  ;;  %v2262_v8 = vadd.f32 %v1824_v45, %v1818_v36 }
  0xca   : > { %v2340_v51 = vadd.f32 %v1872_v43, %v1866_v42  ;;  %v2418_v48 = vadd.f32 %v1920_v38, %v1914_v21  ;;  %v8151_v37 = vunpack.c.l.bf16 %v8087_v17  ;;  %v2496_v16 = vadd.f32 %v1968_v32, %v1962_v6 }
  0xcb   : > { %v2106_v40 = vadd.f32 %v8150_v31, %v8149_v26  ;;  %v2574_v14 = vadd.f32 %v2016_v53, %v2010_v7  ;;  %v2652_v3 = vadd.f32 %v2064_v35, %v2058_v59  ;;  %v8152_v9 = vunpack.c.l.bf16 %v8095_v33  ;;  %v8161_v7 = vld [vmem:[#allocation72_spill] sm:$0xff]  ;;  %v8173_v26 = vld [vmem:[#allocation81_spill] sm:$0xff] }
  0xcc   : > { %v2263_v28 = vadd.f32 %v2262_v8, %v1830_v54  ;;  %v2341_v62 = vadd.f32 %v2340_v51, %v1878_v50  ;;  %v2419_v41 = vadd.f32 %v2418_v48, %v1926_v27  ;;  %v8153_v24 = vunpack.c.l.bf16 %v8088_v19  ;;  %v8163_v27 = vld [vmem:[#allocation80_spill] sm:$0xff] }
  0xcd   : > { %v2107_v23 = vadd.f32 %v2106_v40, %v8151_v37  ;;  %v2185_v18 = vadd.f32 %v2184_v47, %v8152_v9  ;;  %v2497_v31 = vadd.f32 %v2496_v16, %v1974_v2  ;;  %v2575_v63 = vadd.f32 %v2574_v14, %v2022_v20  ;;  %v8165_v35 = vld [vmem:[#allocation88_spill] sm:$0xff]  ;;  %v8169_v20 = vld [vmem:[#allocation65_spill] sm:$0xff]  ;;  %v8177_v9 = vld [vmem:[#allocation103_spill] sm:$0xff] }
  0xce   : > { %v2653_v61 = vadd.f32 %v2652_v3, %v2070_v60  ;;  %v8154_v36 = vunpack.c.l.bf16 %v8096_v12  ;;  %v8155_v17 = vunpack.c.l.bf16 %v8104_v57  ;;  %v2342_v32 = vadd.f32 %v2341_v62, %v1884_v11  ;;  %v8175_v37 = vld [vmem:[#allocation92_spill] sm:$0xff] }
  0xcf   : > { %v2108_v34 = vadd.f32 %v2107_v23, %v8153_v24  ;;  %v2420_v6 = vadd.f32 %v2419_v41, %v1932_v44  ;;  %v8156_v33 = vunpack.c.l.bf16 %v8089_v13  ;;  %v2498_v8 = vadd.f32 %v2497_v31, %v1980_v5  ;;  %v8167_v5 = vld [vmem:[#allocation102_spill] sm:$0xff] }
  0xd0   : > { %v2186_v45 = vadd.f32 %v2185_v18, %v8154_v36  ;;  %v2264_v40 = vadd.f32 %v2263_v28, %v8155_v17  ;;  %v2576_v54 = vadd.f32 %v2575_v63, %v2028_v55  ;;  %v2654_v48 = vadd.f32 %v2653_v61, %v2076_v10  ;;  %v8179_v24 = vld [vmem:[#allocation66_spill] sm:$0xff]  ;;  %v8181_v63 = vld [vmem:[#allocation111_spill] sm:$0xff] }
  0xd1   : > { %v2109_v21 = vadd.f32 %v2108_v34, %v8156_v33  ;;  %v8157_v19 = vunpack.c.l.bf16 %v8097_v58  ;;  %v8158_v16 = vunpack.c.l.bf16 %v8105_v56  ;;  %v8159_v12 = vunpack.c.l.bf16 %v8113_v25  ;;  %v8183_v36 = vld [vmem:[#allocation74_spill] sm:$0xff]  ;;  %v8187_v33 = vld [vmem:[#allocation93_spill] sm:$0xff] }
  0xd2   : > { %v2421_v50 = vadd.f32 %v2420_v6, %v1938_v4  ;;  %v8160_v57 = vunpack.c.l.bf16 %v8090_v52  ;;  %v2499_v41 = vadd.f32 %v2498_v8, %v1986_v15  ;;  %v2577_v11 = vadd.f32 %v2576_v54, %v2034_v49  ;;  %v8171_v49 = vld [vmem:[#allocation73_spill] sm:$0xff]  ;;  %v8189_v54 = vld [vmem:[#allocation104_spill] sm:$0xff] }
  0xd3   : > { %v2187_v38 = vadd.f32 %v2186_v45, %v8157_v19  ;;  %v2265_v42 = vadd.f32 %v2264_v40, %v8158_v16  ;;  %v2343_v43 = vadd.f32 %v2342_v32, %v8159_v12  ;;  %v2655_v13 = vadd.f32 %v2654_v48, %v2082_v22  ;;  %v8185_v40 = vld [vmem:[#allocation82_spill] sm:$0xff]  ;;  %v8191_v16 = vld [vmem:[#allocation112_spill] sm:$0xff] }
  0xd4   : > { %v2110_v28 = vadd.f32 %v2109_v21, %v8160_v57  ;;  %v8162_v3 = vunpack.c.l.bf16 %v8161_v7  ;;  %v8164_v44 = vunpack.c.l.bf16 %v8163_v27  ;;  %v8166_v2 = vunpack.c.l.bf16 %v8165_v35 }
  0xd5   : > { %v8168_v59 = vunpack.c.l.bf16 %v8167_v5  ;;  %v8170_v4 = vunpack.c.l.bf16 %v8169_v20  ;;  %v2500_v52 = vadd.f32 %v2499_v41, %v1992_v1  ;;  %v2578_v60 = vadd.f32 %v2577_v11, %v2040_v46 }
  0xd6   : > { %v2188_v53 = vadd.f32 %v2187_v38, %v8162_v3  ;;  %v2266_v58 = vadd.f32 %v2265_v42, %v8164_v44  ;;  %v2344_v56 = vadd.f32 %v2343_v43, %v8166_v2  ;;  %v2656_v15 = vadd.f32 %v2655_v13, %v2088_v30  ;;  %v8193_v43 = vld [vmem:[#allocation120_spill] sm:$0xff] }
  0xd7   : > { %v2422_v25 = vadd.f32 %v2421_v50, %v8168_v59  ;;  %v2111_v55 = vadd.f32 %v2110_v28, %v8170_v4  ;;  %v8172_v10 = vunpack.c.l.bf16 %v8171_v49  ;;  %v8174_v47 = vunpack.c.l.bf16 %v8173_v26 }
  0xd8   : > { %v8176_v23 = vunpack.c.l.bf16 %v8175_v37  ;;  %v8178_v18 = vunpack.c.l.bf16 %v8177_v9  ;;  %v8180_v34 = vunpack.c.l.bf16 %v8179_v24  ;;  %v8182_v61 = vunpack.c.l.bf16 %v8181_v63 }
  0xd9   : > { %v2189_v22 = vadd.f32 %v2188_v53, %v8172_v10  ;;  %v2267_v51 = vadd.f32 %v2266_v58, %v8174_v47  ;;  %v2579_v46 = vadd.f32 %v2578_v60, %v2046_v39  ;;  %v2657_v30 = vadd.f32 %v2656_v15, %v2094_v29 }
  0xda   : > { %v2345_v14 = vadd.f32 %v2344_v56, %v8176_v23  ;;  %v2423_v62 = vadd.f32 %v2422_v25, %v8178_v18  ;;  %v2112_v31 = vadd.f32 %v2111_v55, %v8180_v34  ;;  %v2501_v1 = vadd.f32 %v2500_v52, %v8182_v61 }
  0xdb   : > { %v8184_v45 = vunpack.c.l.bf16 %v8183_v36  ;;  %v8186_v32 = vunpack.c.l.bf16 %v8185_v40  ;;  %v8188_v21 = vunpack.c.l.bf16 %v8187_v33  ;;  %v8190_v48 = vunpack.c.l.bf16 %v8189_v54 }
  0xdc   : > { %v2113_v38 = vrot.slane %v2112_v31, 4  ;;  %v8192_v42 = vunpack.c.l.bf16 %v8191_v16  ;;  %v8194_v50 = vunpack.c.l.bf16 %v8193_v43  ;;  %v2658_v29 = vadd.f32 %v2657_v30, %v2100_v0  ;;  %v5006_v43 = vld [vmem:[%s3918_s27 + $0x20] sm:$0xff] }
  0xdd   : > { %v2190_v17 = vadd.f32 %v2189_v22, %v8184_v45  ;;  %v2268_v6 = vadd.f32 %v2267_v51, %v8186_v32  ;;  %v2346_v8 = vadd.f32 %v2345_v14, %v8188_v21  ;;  %v2424_v19 = vadd.f32 %v2423_v62, %v8190_v48 }
  0xde   : > { %v2502_v12 = vadd.f32 %v2501_v1, %v8192_v42  ;;  %v2580_v39 = vadd.f32 %v2579_v46, %v8194_v50  ;;  %v2114_v13 = vadd.f32 %v2113_v38, %v2112_v31  ;;  %v2659_v53 = vrot.slane %v2658_v29, 4  ;;  %v8195_v38 = vld [vmem:[#allocation89_spill] sm:$0xff]  ;;  %v4998_v42 = vld [vmem:[%s7254_s2 + $0x200] sm:$0xff] }
  0xdf   : > { %v2191_v57 = vrot.slane %v2190_v17, 4  ;;  %v2269_v28 = vrot.slane %v2268_v6, 4  ;;  %v2347_v41 = vrot.slane %v2346_v8, 4  ;;  %v2425_v11 = vrot.slane %v2424_v19, 4  ;;  %v5009_v50 = vld [vmem:[%s3918_s27 + $0x38] sm:$0xff] }
  0xe0   : > { %v2503_v7 = vrot.slane %v2502_v12, 4  ;;  %v2581_v3 = vrot.slane %v2580_v39, 4  ;;  %v2115_v2 = vrot.slane %v2114_v13, 2  ;;  %v2660_v59 = vadd.f32 %v2659_v53, %v2658_v29  ;;  %v5019_v53 = vld [vmem:[%s3918_s27 + $0x68] sm:$0xff] }
  0xe1   : > { %v2192_v27 = vadd.f32 %v2191_v57, %v2190_v17  ;;  %v2270_v44 = vadd.f32 %v2269_v28, %v2268_v6  ;;  %v2348_v58 = vadd.f32 %v2347_v41, %v2346_v8  ;;  %v2426_v35 = vadd.f32 %v2425_v11, %v2424_v19  ;;  %v4992_v8 = vld [vmem:[%s3918_s27 + $0x8] sm:$0xff] }
  0xe2   : > { %v2504_v56 = vadd.f32 %v2503_v7, %v2502_v12  ;;  %v2582_v5 = vadd.f32 %v2581_v3, %v2580_v39  ;;  %v2116_v55 = vadd.f32 %v2115_v2, %v2114_v13  ;;  %v2661_v15 = vrot.slane %v2660_v59, 2  ;;  %v5003_v12 = vld [vmem:[%s7254_s2 + $0x208] sm:$0xff]  ;;  %v8196_v39 = vld [vmem:[#allocation90_spill] sm:$0xff]  ;;  %v8199_v13 = vld [vmem:[#allocation97_spill] sm:$0xff] }
  0xe3   : > { %v2193_v25 = vrot.slane %v2192_v27, 2  ;;  %v2271_v20 = vrot.slane %v2270_v44, 2  ;;  %v2349_v4 = vrot.slane %v2348_v58, 2  ;;  %v2427_v0 = vrot.slane %v2426_v35, 2  ;;  %v8197_v57 = vld [vmem:[#allocation91_spill] sm:$0xff]  ;;  %v8198_v41 = vld [vmem:[#allocation96_spill] sm:$0xff] }
  0xe4   : > { %v2505_v52 = vrot.slane %v2504_v56, 2  ;;  %v2583_v60 = vrot.slane %v2582_v5, 2  ;;  %v2117_v47 = vrot.slane %v2116_v55, 1  ;;  %v2662_v23 = vadd.f32 %v2661_v15, %v2660_v59  ;;  %v5016_v3 = vld [vmem:[%s3918_s27 + $0x50] sm:$0xff]  ;;  %v5039_v15 = vld [vmem:[%s3918_s27 + $0xe0] sm:$0xff] }
  0xe5   : > { %v2194_v49 = vadd.f32 %v2193_v25, %v2192_v27  ;;  %v2272_v10 = vadd.f32 %v2271_v20, %v2270_v44  ;;  %v2350_v22 = vadd.f32 %v2349_v4, %v2348_v58  ;;  %v2428_v26 = vadd.f32 %v2427_v0, %v2426_v35  ;;  %v5022_v27 = vld [vmem:[%s3918_s27 + $0x80] sm:$0xff]  ;;  %v5028_v25 = vld [vmem:[%s3918_s27 + $0x98] sm:$0xff]  ;;  %v5031_v20 = vld [vmem:[%s3918_s27 + $0xb0] sm:$0xff] }
  0xe6   : > { %v2506_v51 = vadd.f32 %v2505_v52, %v2504_v56  ;;  %v2584_v37 = vadd.f32 %v2583_v60, %v2582_v5  ;;  %v2118_v24 = vadd.f32 %v2117_v47, %v2116_v55  ;;  %v2663_v63 = vrot.slane %v2662_v23, 1  ;;  %v8200_v44 = vld [vmem:[#allocation98_spill] sm:$0xff]  ;;  %v8201_v35 = vld [vmem:[#allocation7_spill] sm:$0xff]  ;;  %8203 = vst [vmem:[#allocation11_spill] sm:$0xff] %v5028_v25  ;;  %8204 = vst [vmem:[#allocation12_spill] sm:$0xff] %v5031_v20 }
  0xe7   : > { %v2195_v14 = vrot.slane %v2194_v49, 1  ;;  %v2273_v9 = vrot.slane %v2272_v10, 1  ;;  %v2351_v18 = vrot.slane %v2350_v22, 1  ;;  %v2429_v62 = vrot.slane %v2428_v26, 1  ;;  %v8202_v56 = vld [vmem:[#allocation10_spill] sm:$0xff]  ;;  %v5034_v4 = vld [vmem:[%s3918_s27 + $0xc8] sm:$0xff] }
  0xe8   : > { %v2507_v34 = vrot.slane %v2506_v51, 1  ;;  %v2585_v31 = vrot.slane %v2584_v37, 1  ;;  %v2664_v17 = vadd.f32 %v2663_v63, %v2662_v23  ;;  %v2730_v40 = vmul.f32 0.015625, %v2118_v24  ;;  %v5054_v23 = vld [vmem:[%s3918_s27 + $0x158] sm:$0xff]  ;;  %v5062_v24 = vld [vmem:[%s3918_s27 + $0x188] sm:$0xff]  ;;  %v5208_v63 = vld [vmem:[%s3918_s27 + $0x4d0] sm:$0xff] }
  0xe9   : > { %v2196_v61 = vadd.f32 %v2195_v14, %v2194_v49  ;;  %v2274_v1 = vadd.f32 %v2273_v9, %v2272_v10  ;;  %v2352_v46 = vadd.f32 %v2351_v18, %v2350_v22  ;;  %v2430_v30 = vadd.f32 %v2429_v62, %v2428_v26  ;;  %v5042_v49 = vld [vmem:[%s3918_s27 + $0xf8] sm:$0xff]  ;;  %v5045_v10 = vld [vmem:[%s3918_s27 + $0x110] sm:$0xff]  ;;  %8207 = vst [vmem:[#allocation18_spill] sm:$0xff] %v5054_v23  ;;  %v5254_v20 = vld [vmem:[%s3918_s27 + $0x5c0] sm:$0xff] }
  0xea   : > { %v2508_v36 = vadd.f32 %v2507_v34, %v2506_v51  ;;  %v2586_v45 = vadd.f32 %v2585_v31, %v2584_v37  ;;  %v2772_v19 = vmul.f32 0.015625, %v2664_v17  ;;  %v2778_v16 = vsub.f32 %v8195_v38, %v2730_v40  ;;  %v5048_v51 = vld [vmem:[%s3918_s27 + $0x128] sm:$0xff]  ;;  %v5051_v37 = vld [vmem:[%s3918_s27 + $0x140] sm:$0xff]  ;;  %v5059_v62 = vld [vmem:[%s3918_s27 + $0x170] sm:$0xff]  ;;  %8209 = vst [vmem:[#allocation20_spill] sm:$0xff] %v5062_v24 }
  0xeb   : > { %v2736_v32 = vmul.f32 0.015625, %v2196_v61  ;;  %v2742_v6 = vmul.f32 0.015625, %v2274_v1  ;;  %v2748_v33 = vmul.f32 0.015625, %v2352_v46  ;;  %v2754_v21 = vmul.f32 0.015625, %v2430_v30  ;;  %8205 = vst [vmem:[#allocation13_spill] sm:$0xff] %v5048_v51  ;;  %8206 = vst [vmem:[#allocation14_spill] sm:$0xff] %v5051_v37 }
  0xec   : > { %v2760_v54 = vmul.f32 0.015625, %v2508_v36  ;;  %v2766_v48 = vmul.f32 0.015625, %v2586_v45  ;;  %v2820_v5 = vsub.f32 %v8202_v56, %v2772_v19  ;;  %v2826_v59 = vand.u32 2147483647, %v2778_v16  ;;  %8208 = vst [vmem:[#allocation19_spill] sm:$0xff] %v5059_v62  ;;  %v5065_v34 = vld [vmem:[%s3918_s27 + $0x1a0] sm:$0xff] }
  0xed   : > { %v2784_v29 = vsub.f32 %v8196_v39, %v2736_v32  ;;  %v2790_v28 = vsub.f32 %v8197_v57, %v2742_v6  ;;  %v2796_v11 = vsub.f32 %v8198_v41, %v2748_v33  ;;  %v2802_v7 = vsub.f32 %v8199_v13, %v2754_v21  ;;  %8210 = vst [vmem:[#allocation21_spill] sm:$0xff] %v5065_v34  ;;  %v5071_v1 = vld [vmem:[%s3918_s27 + $0x1b8] sm:$0xff]  ;;  %v5074_v46 = vld [vmem:[%s3918_s27 + $0x1d0] sm:$0xff]  ;;  %v5077_v30 = vld [vmem:[%s3918_s27 + $0x1e8] sm:$0xff] }
  0xee   : > { %v2808_v58 = vsub.f32 %v8200_v44, %v2760_v54  ;;  %v2814_v2 = vsub.f32 %v8201_v35, %v2766_v48  ;;  %v3573_v60 = vpack.c.bf16 %v5003_v12, %v4998_v42  ;;  %v2868_v9 = vand.u32 2147483647, %v2820_v5  ;;  %8211 = vst [vmem:[#allocation22_spill] sm:$0xff] %v5071_v1  ;;  %8212 = vst [vmem:[#allocation26_spill] sm:$0xff] %v5074_v46  ;;  %v5084_v32 = vld [vmem:[%s3918_s27 + $0x200] sm:$0xff]  ;;  %v5087_v6 = vld [vmem:[%s3918_s27 + $0x218] sm:$0xff] }
  0xef   : > { %v2832_v0 = vand.u32 2147483647, %v2784_v29  ;;  %v2838_v55 = vand.u32 2147483647, %v2790_v28  ;;  %v2844_v52 = vand.u32 2147483647, %v2796_v11 }
  0xf0   : > { %v2850_v22 = vand.u32 2147483647, %v2802_v7  ;;  %v2856_v26 = vand.u32 2147483647, %v2808_v58  ;;  %v2862_v47 = vand.u32 2147483647, %v2814_v2 }
  0xf1   : > { %v3026_v18 = vsel %vm3025_vm0, %v2832_v0, %v2826_v59  ;;  %8213 = vst [vmem:[#allocation27_spill] sm:$0xff] %v5077_v30  ;;  %8214 = vst [vmem:[#allocation28_spill] sm:$0xff] %v5084_v32  ;;  %v5090_v33 = vld [vmem:[%s3918_s27 + $0x230] sm:$0xff]  ;;  %v5093_v21 = vld [vmem:[%s3918_s27 + $0x248] sm:$0xff] }
  0xf2   : > { %v3028_v61 = vsel %vm3027_vm1, %v2838_v55, %v3026_v18  ;;  %8215 = vst [vmem:[#allocation29_spill] sm:$0xff] %v5087_v6  ;;  %8216 = vst [vmem:[#allocation30_spill] sm:$0xff] %v5090_v33  ;;  %v5100_v16 = vld [vmem:[%s3918_s27 + $0x260] sm:$0xff]  ;;  %v5103_v39 = vld [vmem:[%s3918_s27 + $0x278] sm:$0xff] }
  0xf3   : > { %v3030_v40 = vsel %vm3029_vm2, %v2844_v52, %v3028_v61  ;;  %8217 = vst [vmem:[#allocation34_spill] sm:$0xff] %v5093_v21  ;;  %8218 = vst [vmem:[#allocation35_spill] sm:$0xff] %v5100_v16  ;;  %v5106_v29 = vld [vmem:[%s3918_s27 + $0x290] sm:$0xff]  ;;  %v5109_v57 = vld [vmem:[%s3918_s27 + $0x2a8] sm:$0xff]  ;;  %v627_v56 = vunpack.c.h.bf16 %v5100_v16 }
  0xf4   : > { %v3032_v38 = vsel %vm3031_vm3, %v2850_v22, %v3030_v40  ;;  %8219 = vst [vmem:[#allocation36_spill] sm:$0xff] %v5103_v39  ;;  %8220 = vst [vmem:[#allocation37_spill] sm:$0xff] %v5106_v29  ;;  %v5116_v7 = vld [vmem:[%s3918_s27 + $0x2c0] sm:$0xff]  ;;  %v5119_v44 = vld [vmem:[%s3918_s27 + $0x2d8] sm:$0xff] }
  0xf5   : > { %8221 = vst [vmem:[#allocation38_spill] sm:$0xff] %v5109_v57  ;;  %v3034_v13 = vsel %vm3033_vm4, %v2856_v26, %v3032_v38  ;;  %8222 = vst [vmem:[#allocation39_spill] sm:$0xff] %v5116_v7  ;;  %v5122_v58 = vld [vmem:[%s3918_s27 + $0x2f0] sm:$0xff]  ;;  %v5125_v35 = vld [vmem:[%s3918_s27 + $0x308] sm:$0xff] }
  0xf6   : > { %8223 = vst [vmem:[#allocation42_spill] sm:$0xff] %v5119_v44  ;;  %8224 = vst [vmem:[#allocation43_spill] sm:$0xff] %v5122_v58  ;;  %v3036_v59 = vsel %vm3035_vm5, %v2862_v47, %v3034_v13  ;;  %v5132_v0 = vld [vmem:[%s3918_s27 + $0x320] sm:$0xff]  ;;  %v5135_v55 = vld [vmem:[%s3918_s27 + $0x338] sm:$0xff]  ;;  %v669_v2 = vunpack.c.h.bf16 %v5125_v35  ;;  %v783_v44 = vunpack.c.h.bf16 %v5208_v63 }
  0xf7   : > { %8225 = vst [vmem:[#allocation44_spill] sm:$0xff] %v5125_v35  ;;  %8226 = vst [vmem:[#allocation45_spill] sm:$0xff] %v5132_v0  ;;  %v5138_v52 = vld [vmem:[%s3918_s27 + $0x350] sm:$0xff]  ;;  %v5141_v22 = vld [vmem:[%s3918_s27 + $0x368] sm:$0xff]  ;;  %v3038_v40 = vsel %vm3037_vm6, %v2868_v9, %v3036_v59  ;;  %v675_v45 = vunpack.c.h.bf16 %v5132_v0  ;;  %v681_v61 = vunpack.c.h.bf16 %v5135_v55 }
  0xf8   : > { %8227 = vst [vmem:[#allocation46_spill] sm:$0xff] %v5135_v55  ;;  %8228 = vst [vmem:[#allocation47_spill] sm:$0xff] %v5138_v52  ;;  %v5148_v47 = vld [vmem:[%s3918_s27 + $0x380] sm:$0xff]  ;;  %v5151_v38 = vld [vmem:[%s3918_s27 + $0x398] sm:$0xff]  ;;  %3145 = vmatmul.mubr.f32.vlgmr.msra.gmra.mrb[0].mxu0 %v3038_v40  ;;  %v687_v36 = vunpack.c.h.bf16 %v5138_v52 }
  0xf9   : > { %8229 = vst [vmem:[#allocation48_spill] sm:$0xff] %v5141_v22  ;;  %8230 = vst [vmem:[#allocation50_spill] sm:$0xff] %v5148_v47  ;;  %v5154_v13 = vld [vmem:[%s3918_s27 + $0x3b0] sm:$0xff]  ;;  %v5160_v54 = vld [vmem:[%s3918_s27 + $0x3c8] sm:$0xff]  ;;  %3574 = vmatpush3.bf16.msra.mxu0 %v3573_v60  ;;  %v1209_v25 = vadd.f32 %v675_v45, %v669_v2 }
  0xfa   : > { %8231 = vst [vmem:[#allocation51_spill] sm:$0xff] %v5151_v38  ;;  %8232 = vst [vmem:[#allocation52_spill] sm:$0xff] %v5154_v13  ;;  %v5163_v9 = vld [vmem:[%s3918_s27 + $0x3e0] sm:$0xff]  ;;  %v5166_v59 = vld [vmem:[%s3918_s27 + $0x3f8] sm:$0xff]  ;;  %v717_v52 = vunpack.c.h.bf16 %v5160_v54 }
  0xfb   : > { %8233 = vst [vmem:[#allocation53_spill] sm:$0xff] %v5160_v54  ;;  %8234 = vst [vmem:[#allocation54_spill] sm:$0xff] %v5163_v9  ;;  %v5176_v40 = vld [vmem:[%s3918_s27 + $0x410] sm:$0xff]  ;;  %v5179_v26 = vld [vmem:[%s3918_s27 + $0x428] sm:$0xff]  ;;  %v723_v35 = vunpack.c.h.bf16 %v5163_v9  ;;  %v729_v16 = vunpack.c.h.bf16 %v5166_v59 }
  0xfc   : > { %8235 = vst [vmem:[#allocation55_spill] sm:$0xff] %v5166_v59  ;;  %8236 = vst [vmem:[#allocation56_spill] sm:$0xff] %v5176_v40  ;;  %v5182_v5 = vld [vmem:[%s3918_s27 + $0x440] sm:$0xff]  ;;  %v5189_v42 = vld [vmem:[%s3918_s27 + $0x458] sm:$0xff]  ;;  %v735_v19 = vunpack.c.h.bf16 %v5176_v40  ;;  %v741_v31 = vunpack.c.h.bf16 %v5179_v26 }
  0xfd   : > { %8237 = vst [vmem:[#allocation57_spill] sm:$0xff] %v5179_v26  ;;  %8238 = vst [vmem:[#allocation3_spill] sm:$0xff] %v5182_v5  ;;  %v5192_v12 = vld [vmem:[%s3918_s27 + $0x470] sm:$0xff]  ;;  %v5195_v60 = vld [vmem:[%s3918_s27 + $0x488] sm:$0xff]  ;;  %v747_v58 = vunpack.c.h.bf16 %v5182_v5  ;;  %v1287_v47 = vadd.f32 %v723_v35, %v717_v52  ;;  %v8269_v35 = vunpack.c.h.bf16 %v5045_v10 }
  0xfe   : > { %8239 = vst [vmem:[#allocation4_spill] sm:$0xff] %v5189_v42  ;;  %8240 = vst [vmem:[#allocation5_spill] sm:$0xff] %v5192_v12  ;;  %v5202_v17 = vld [vmem:[%s3918_s27 + $0x4a0] sm:$0xff]  ;;  %v5205_v11 = vld [vmem:[%s3918_s27 + $0x4b8] sm:$0xff]  ;;  %v765_v9 = vunpack.c.h.bf16 %v5195_v60 }
  0xff   : > { %8241 = vst [vmem:[#allocation6_spill] sm:$0xff] %v5195_v60  ;;  %8242 = vst [vmem:[#allocation15_spill] sm:$0xff] %v5202_v17  ;;  %v5215_v48 = vld [vmem:[%s3918_s27 + $0x4e8] sm:$0xff]  ;;  %v5218_v18 = vld [vmem:[%s3918_s27 + $0x500] sm:$0xff]  ;;  %v771_v26 = vunpack.c.h.bf16 %v5202_v17  ;;  %v777_v38 = vunpack.c.h.bf16 %v5205_v11  ;;  %v8258_v60 = vunpack.c.h.bf16 %v5006_v43  ;;  %v1288_v45 = vadd.f32 %v1287_v47, %v729_v16 }
 0x100   : > { %8243 = vst [vmem:[#allocation23_spill] sm:$0xff] %v5205_v11  ;;  %8244 = vst [vmem:[#allocation31_spill] sm:$0xff] %v5208_v63  ;;  %v5221_v28 = vld [vmem:[%s3918_s27 + $0x518] sm:$0xff]  ;;  %v5228_v55 = vld [vmem:[%s3918_s27 + $0x530] sm:$0xff]  ;;  %v789_v5 = vunpack.c.h.bf16 %v5215_v48  ;;  %v795_v33 = vunpack.c.h.bf16 %v5218_v18  ;;  %v843_v63 = vunpack.c.h.bf16 %v5254_v20  ;;  %v8273_v16 = vunpack.c.h.bf16 %v5048_v51 }
 0x101   : > { %8245 = vst [vmem:[#allocation58_spill] sm:$0xff] %v5215_v48  ;;  %8246 = vst [vmem:[#allocation8_spill] sm:$0xff] %v5218_v18  ;;  %v5231_v41 = vld [vmem:[%s3918_s27 + $0x548] sm:$0xff]  ;;  %v5234_v0 = vld [vmem:[%s3918_s27 + $0x560] sm:$0xff]  ;;  %v801_v62 = vunpack.c.h.bf16 %v5221_v28  ;;  %v1365_v43 = vadd.f32 %v771_v26, %v765_v9  ;;  %v8272_v26 = vunpack.c.h.bf16 %v5019_v53 }
 0x102   : > { %8247 = vst [vmem:[#allocation16_spill] sm:$0xff] %v5221_v28  ;;  %8248 = vst [vmem:[#allocation24_spill] sm:$0xff] %v5228_v55  ;;  %v5241_v14 = vld [vmem:[%s3918_s27 + $0x578] sm:$0xff]  ;;  %v5244_v13 = vld [vmem:[%s3918_s27 + $0x590] sm:$0xff]  ;;  %v813_v12 = vunpack.c.h.bf16 %v5231_v41  ;;  %v819_v42 = vunpack.c.h.bf16 %v5234_v0  ;;  %v8257_v28 = vunpack.c.h.bf16 %v4992_v8 }
 0x103   : > { %8249 = vst [vmem:[#allocation32_spill] sm:$0xff] %v5231_v41  ;;  %8250 = vst [vmem:[#allocation61_spill] sm:$0xff] %v5234_v0  ;;  %v5247_v54 = vld [vmem:[%s3918_s27 + $0x5a8] sm:$0xff]  ;;  %v5257_v59 = vld [vmem:[%s3918_s27 + $0x5d8] sm:$0xff]  ;;  %v825_v6 = vunpack.c.h.bf16 %v5241_v14  ;;  %v831_v17 = vunpack.c.h.bf16 %v5244_v13  ;;  %v8259_v41 = vunpack.c.h.bf16 %v5034_v4  ;;  %v8260_v0 = vunpack.c.h.bf16 %v5039_v15 }
 0x104   : > { %8251 = vst [vmem:[#allocation40_spill] sm:$0xff] %v5241_v14  ;;  %8252 = vst [vmem:[#allocation9_spill] sm:$0xff] %v5244_v13  ;;  %v5260_v40 = vld [vmem:[%s3918_s27 + $0x5f0] sm:$0xff]  ;;  %v837_v11 = vunpack.c.h.bf16 %v5247_v54  ;;  %v849_v48 = vunpack.c.h.bf16 %v5257_v59  ;;  %v897_v55 = vadd.f32 %v8258_v60, %v8257_v28  ;;  %v8261_v13 = vunpack.c.h.bf16 %v5062_v24  ;;  %v5550_v24 = vld [vmem:[%s4278_s14 + $0x4a0] sm:$0xff] }
 0x105   : > { %8253 = vst [vmem:[#allocation17_spill] sm:$0xff] %v5247_v54  ;;  %8254 = vst [vmem:[#allocation25_spill] sm:$0xff] %v5254_v20  ;;  %v855_v18 = vunpack.c.h.bf16 %v5260_v40  ;;  %v975_v14 = vadd.f32 %v8260_v0, %v8259_v41  ;;  %v8262_v54 = vunpack.c.h.bf16 %v5065_v34  ;;  %v8263_v20 = vunpack.c.h.bf16 %v5093_v21  ;;  %v5553_v21 = vld [vmem:[%s4278_s14 + $0x4b8] sm:$0xff]  ;;  %v5556_v51 = vld [vmem:[%s4278_s14 + $0x4d0] sm:$0xff] }
 0x106   : > { %8255 = vst [vmem:[#allocation33_spill] sm:$0xff] %v5257_v59  ;;  %8256 = vst [vmem:[#allocation41_spill] sm:$0xff] %v5260_v40  ;;  %v8264_v40 = vunpack.c.h.bf16 %v5009_v50  ;;  %v1443_v28 = vadd.f32 %v819_v42, %v813_v12  ;;  %v8265_v4 = vunpack.c.h.bf16 %v5042_v49  ;;  %v8266_v15 = vunpack.c.h.bf16 %v5071_v1 }
 0x107   : > { %v1053_v23 = vadd.f32 %v8262_v54, %v8261_v13  ;;  %v1131_v59 = vadd.f32 %v627_v56, %v8263_v20  ;;  %v8267_v0 = vunpack.c.h.bf16 %v5103_v39  ;;  %v1210_v54 = vadd.f32 %v1209_v25, %v681_v61  ;;  %v5504_v39 = vld [vmem:[%s4278_s14 + $0x3c8] sm:$0xff]  ;;  %8366 = vst [vmem:[#allocation111_spill] sm:$0xff] %v5550_v24  ;;  %8367 = vst [vmem:[#allocation74_spill] sm:$0xff] %v5553_v21 }
 0x108   : > { %v898_v8 = vadd.f32 %v897_v55, %v8264_v40  ;;  %v976_v60 = vadd.f32 %v975_v14, %v8265_v4  ;;  %v8268_v13 = vunpack.c.h.bf16 %v5016_v3  ;;  %v1366_v2 = vadd.f32 %v1365_v43, %v777_v38  ;;  %8356 = vst [vmem:[#allocation72_spill] sm:$0xff] %v5504_v39  ;;  %8368 = vst [vmem:[#allocation82_spill] sm:$0xff] %v5556_v51 }
 0x109   : > { %v1054_v41 = vadd.f32 %v1053_v23, %v8266_v15  ;;  %v1132_v34 = vadd.f32 %v1131_v59, %v8267_v0  ;;  %v1444_v50 = vadd.f32 %v1443_v28, %v825_v6  ;;  %v8270_v55 = vunpack.c.h.bf16 %v5074_v46  ;;  %v8283_v0 = vld [vmem:[#allocation11_spill] sm:$0xff] }
 0x10a   : > { %v899_v20 = vadd.f32 %v898_v8, %v8268_v13  ;;  %v977_v56 = vadd.f32 %v976_v60, %v8269_v35  ;;  %v8271_v14 = vunpack.c.h.bf16 %v5106_v29  ;;  %v1211_v23 = vadd.f32 %v1210_v54, %v687_v36  ;;  %v8281_v60 = vld [vmem:[#allocation50_spill] sm:$0xff] }
 0x10b   : > { %v1055_v49 = vadd.f32 %v1054_v41, %v8270_v55  ;;  %v1289_v25 = vadd.f32 %v1288_v45, %v735_v19  ;;  %v1367_v61 = vadd.f32 %v1366_v2, %v783_v44  ;;  %v1445_v3 = vadd.f32 %v1444_v50, %v831_v17  ;;  %v8287_v2 = vld [vmem:[#allocation29_spill] sm:$0xff]  ;;  %v5530_v46 = vld [vmem:[%s4278_s14 + $0x440] sm:$0xff] }
 0x10c   : > { %v1133_v52 = vadd.f32 %v1132_v34, %v8271_v14  ;;  %v900_v9 = vadd.f32 %v899_v20, %v8272_v26  ;;  %v978_v47 = vadd.f32 %v977_v56, %v8273_v16  ;;  %v8274_v6 = vunpack.c.h.bf16 %v5077_v30  ;;  %v8289_v56 = vld [vmem:[#allocation42_spill] sm:$0xff]  ;;  %v8291_v14 = vld [vmem:[#allocation51_spill] sm:$0xff]  ;;  %v8293_v26 = vld [vmem:[#allocation12_spill] sm:$0xff]  ;;  %8362 = vst [vmem:[#allocation81_spill] sm:$0xff] %v5530_v46 }
 0x10d   : > { %v8275_v38 = vunpack.c.h.bf16 %v5109_v57  ;;  %v8276_v40 = vunpack.c.h.bf16 %v5141_v22  ;;  %v8277_v34 = vunpack.c.h.bf16 %v5022_v27  ;;  %v1290_v53 = vadd.f32 %v1289_v25, %v741_v31  ;;  %v8297_v16 = vld [vmem:[#allocation19_spill] sm:$0xff]  ;;  %v5482_v22 = vld [vmem:[%s4278_s14 + $0x338] sm:$0xff] }
 0x10e   : > { %v1056_v10 = vadd.f32 %v1055_v49, %v8274_v6  ;;  %v1368_v12 = vadd.f32 %v1367_v61, %v789_v5  ;;  %v1446_v19 = vadd.f32 %v1445_v3, %v837_v11  ;;  %v8278_v17 = vunpack.c.h.bf16 %v5051_v37  ;;  %v8285_v5 = vld [vmem:[#allocation18_spill] sm:$0xff]  ;;  %v8295_v61 = vld [vmem:[#allocation4_spill] sm:$0xff]  ;;  %8350 = vst [vmem:[#allocation123_spill] sm:$0xff] %v5482_v22 }
 0x10f   : > { %v1134_v59 = vadd.f32 %v1133_v52, %v8275_v38  ;;  %v1212_v42 = vadd.f32 %v1211_v23, %v8276_v40  ;;  %v901_v36 = vadd.f32 %v900_v9, %v8277_v34  ;;  %v8279_v8 = vunpack.c.h.bf16 %v5084_v32  ;;  %v8301_v40 = vld [vmem:[#allocation43_spill] sm:$0xff]  ;;  %v5501_v29 = vld [vmem:[%s4278_s14 + $0x398] sm:$0xff] }
 0x110   : > { %v979_v44 = vadd.f32 %v978_v47, %v8278_v17  ;;  %v8280_v28 = vunpack.c.h.bf16 %v5116_v7  ;;  %v8282_v15 = vunpack.c.h.bf16 %v8281_v60  ;;  %v8284_v54 = vunpack.c.h.bf16 %v8283_v0  ;;  %v8305_v17 = vld [vmem:[#allocation5_spill] sm:$0xff]  ;;  %v5479_v60 = vld [vmem:[%s4278_s14 + $0x320] sm:$0xff]  ;;  %8355 = vst [vmem:[#allocation128_spill] sm:$0xff] %v5501_v29  ;;  %v5563_v37 = vld [vmem:[%s4278_s14 + $0x4e8] sm:$0xff] }
 0x111   : > { %v1057_v43 = vadd.f32 %v1056_v10, %v8279_v8  ;;  %v1291_v27 = vadd.f32 %v1290_v53, %v747_v58  ;;  %v1369_v20 = vadd.f32 %v1368_v12, %v795_v33  ;;  %v1447_v31 = vadd.f32 %v1446_v19, %v843_v63  ;;  %v8299_v10 = vld [vmem:[#allocation30_spill] sm:$0xff]  ;;  %8349 = vst [vmem:[#allocation122_spill] sm:$0xff] %v5479_v60  ;;  %v5495_v7 = vld [vmem:[%s4278_s14 + $0x2f0] sm:$0xff] }
 0x112   : > { %v1135_v4 = vadd.f32 %v1134_v59, %v8280_v28  ;;  %v1213_v41 = vadd.f32 %v1212_v42, %v8282_v15  ;;  %v902_v13 = vadd.f32 %v901_v36, %v8284_v54  ;;  %v8286_v11 = vunpack.c.h.bf16 %v8285_v5  ;;  %v8303_v36 = vld [vmem:[#allocation52_spill] sm:$0xff]  ;;  %8353 = vst [vmem:[#allocation126_spill] sm:$0xff] %v5495_v7  ;;  %v5498_v57 = vld [vmem:[%s4278_s14 + $0x380] sm:$0xff]  ;;  %v5537_v30 = vld [vmem:[%s4278_s14 + $0x458] sm:$0xff] }
 0x113   : > { %v8288_v50 = vunpack.c.h.bf16 %v8287_v2  ;;  %v8290_v55 = vunpack.c.h.bf16 %v8289_v56  ;;  %v8292_v52 = vunpack.c.h.bf16 %v8291_v14  ;;  %v8294_v9 = vunpack.c.h.bf16 %v8293_v26  ;;  %v5476_v14 = vld [vmem:[%s4278_s14 + $0x2d8] sm:$0xff]  ;;  %8354 = vst [vmem:[#allocation127_spill] sm:$0xff] %v5498_v57  ;;  %v5511_v56 = vld [vmem:[%s4278_s14 + $0x3b0] sm:$0xff]  ;;  %8363 = vst [vmem:[#allocation92_spill] sm:$0xff] %v5537_v30 }
 0x114   : > { %v980_v45 = vadd.f32 %v979_v44, %v8286_v11  ;;  %v8296_v3 = vunpack.c.h.bf16 %v8295_v61  ;;  %v1370_v33 = vadd.f32 %v1369_v20, %v801_v62  ;;  %v1448_v63 = vadd.f32 %v1447_v31, %v849_v48  ;;  %v5466_v61 = vld [vmem:[%s4278_s14 + $0x308] sm:$0xff]  ;;  %8348 = vst [vmem:[#allocation121_spill] sm:$0xff] %v5476_v14  ;;  %8357 = vst [vmem:[#allocation80_spill] sm:$0xff] %v5511_v56  ;;  %v5517_v2 = vld [vmem:[%s4278_s14 + $0x3f8] sm:$0xff] }
 0x115   : > { %v1058_v35 = vadd.f32 %v1057_v43, %v8288_v50  ;;  %v1136_v49 = vadd.f32 %v1135_v4, %v8290_v55  ;;  %v1214_v23 = vadd.f32 %v1213_v41, %v8292_v52  ;;  %v903_v25 = vadd.f32 %v902_v13, %v8294_v9  ;;  %v8307_v43 = vld [vmem:[#allocation24_spill] sm:$0xff]  ;;  %8346 = vst [vmem:[#allocation118_spill] sm:$0xff] %v5466_v61 }
 0x116   : > { %v1292_v58 = vadd.f32 %v1291_v27, %v8296_v3  ;;  %v8298_v47 = vunpack.c.h.bf16 %v8297_v16  ;;  %v8300_v38 = vunpack.c.h.bf16 %v8299_v10  ;;  %v8302_v42 = vunpack.c.h.bf16 %v8301_v40  ;;  %v5485_v40 = vld [vmem:[%s4278_s14 + $0x350] sm:$0xff]  ;;  %v5514_v10 = vld [vmem:[%s4278_s14 + $0x3e0] sm:$0xff]  ;;  %8359 = vst [vmem:[#allocation102_spill] sm:$0xff] %v5517_v2  ;;  %v5543_v16 = vld [vmem:[%s4278_s14 + $0x488] sm:$0xff] }
 0x117   : > { %v8304_v53 = vunpack.c.h.bf16 %v8303_v36  ;;  %v904_v19 = vrot.slane %v903_v25, 4  ;;  %v8306_v44 = vunpack.c.h.bf16 %v8305_v17  ;;  %v8308_v28 = vunpack.c.h.bf16 %v8307_v43  ;;  %v5460_v43 = vld [vmem:[%s4278_s14 + $0x218] sm:$0xff]  ;;  %v5463_v17 = vld [vmem:[%s4278_s14 + $0x230] sm:$0xff]  ;;  %v5473_v36 = vld [vmem:[%s4278_s14 + $0x2c0] sm:$0xff]  ;;  %8351 = vst [vmem:[#allocation124_spill] sm:$0xff] %v5485_v40 }
 0x118   : > { %v981_v6 = vadd.f32 %v980_v45, %v8298_v47  ;;  %v1059_v59 = vadd.f32 %v1058_v35, %v8300_v38  ;;  %v1137_v34 = vadd.f32 %v1136_v49, %v8302_v42  ;;  %v1449_v48 = vadd.f32 %v1448_v63, %v855_v18  ;;  %8344 = vst [vmem:[#allocation116_spill] sm:$0xff] %v5460_v43  ;;  %v5592_v56 = vld [vmem:[%s4278_s14 + $0x590] sm:$0xff] }
 0x119   : > { %v1215_v12 = vadd.f32 %v1214_v23, %v8304_v53  ;;  %v1293_v8 = vadd.f32 %v1292_v58, %v8306_v44  ;;  %v1371_v62 = vadd.f32 %v1370_v33, %v8308_v28  ;;  %v905_v54 = vadd.f32 %v904_v19, %v903_v25  ;;  %8345 = vst [vmem:[#allocation117_spill] sm:$0xff] %v5463_v17 }
 0x11a   : > { %v982_v4 = vrot.slane %v981_v6, 4  ;;  %v1060_v15 = vrot.slane %v1059_v59, 4  ;;  %v1138_v41 = vrot.slane %v1137_v34, 4  ;;  %v1450_v20 = vrot.slane %v1449_v48, 4  ;;  %8347 = vst [vmem:[#allocation119_spill] sm:$0xff] %v5473_v36  ;;  %8358 = vst [vmem:[#allocation88_spill] sm:$0xff] %v5514_v10 }
 0x11b   : > { %v1216_v0 = vrot.slane %v1215_v12, 4  ;;  %v1294_v13 = vrot.slane %v1293_v8, 4  ;;  %v1372_v27 = vrot.slane %v1371_v62, 4  ;;  %v906_v35 = vrot.slane %v905_v54, 2  ;;  %8365 = vst [vmem:[#allocation66_spill] sm:$0xff] %v5543_v16  ;;  %8369 = vst [vmem:[#allocation93_spill] sm:$0xff] %v5563_v37 }
 0x11c   : > { %v983_v31 = vadd.f32 %v982_v4, %v981_v6  ;;  %v1061_v11 = vadd.f32 %v1060_v15, %v1059_v59  ;;  %v1139_v45 = vadd.f32 %v1138_v41, %v1137_v34  ;;  %v1451_v52 = vadd.f32 %v1450_v20, %v1449_v48  ;;  %v5354_v15 = vld [vmem:[%s4278_s14 + $0x8] sm:$0xff]  ;;  %v5360_v20 = vld [vmem:[%s4278_s14 + $0x38] sm:$0xff]  ;;  %8376 = vst [vmem:[#allocation96_spill] sm:$0xff] %v5592_v56 }
 0x11d   : > { %v1217_v50 = vadd.f32 %v1216_v0, %v1215_v12  ;;  %v1295_v55 = vadd.f32 %v1294_v13, %v1293_v8  ;;  %v1373_v49 = vadd.f32 %v1372_v27, %v1371_v62  ;;  %v907_v3 = vadd.f32 %v906_v35, %v905_v54  ;;  %8309 = vst [vmem:[#allocation49_spill] sm:$0xff] %v5354_v15  ;;  %v5357_v27 = vld [vmem:[%s4278_s14 + $0x20] sm:$0xff] }
 0x11e   : > { %v984_v23 = vrot.slane %v983_v31, 2  ;;  %v1062_v26 = vrot.slane %v1061_v11, 2  ;;  %v1140_v9 = vrot.slane %v1139_v45, 2  ;;  %v1452_v63 = vrot.slane %v1451_v52, 2  ;;  %8310 = vst [vmem:[#allocation59_spill] sm:$0xff] %v5357_v27  ;;  %8311 = vst [vmem:[#allocation60_spill] sm:$0xff] %v5360_v20 }
 0x11f   : > { %v1218_v18 = vrot.slane %v1217_v50, 2  ;;  %v1296_v58 = vrot.slane %v1295_v55, 2  ;;  %v1374_v33 = vrot.slane %v1373_v49, 2  ;;  %v908_v59 = vrot.slane %v907_v3, 1 }
 0x120   : > { %v985_v25 = vadd.f32 %v984_v23, %v983_v31  ;;  %v1063_v47 = vadd.f32 %v1062_v26, %v1061_v11  ;;  %v1141_v38 = vadd.f32 %v1140_v9, %v1139_v45  ;;  %v1453_v53 = vadd.f32 %v1452_v63, %v1451_v52  ;;  %v5363_v31 = vld [vmem:[%s4278_s14 + $0xc8] sm:$0xff]  ;;  %v5374_v52 = vld [vmem:[%s4278_s14 + $0x80] sm:$0xff]  ;;  %v5380_v26 = vld [vmem:[%s4278_s14 + $0xf8] sm:$0xff] }
 0x121   : > { %v1219_v6 = vadd.f32 %v1218_v18, %v1217_v50  ;;  %v1297_v42 = vadd.f32 %v1296_v58, %v1295_v55  ;;  %v1375_v34 = vadd.f32 %v1374_v33, %v1373_v49  ;;  %v909_v28 = vadd.f32 %v908_v59, %v907_v3  ;;  %8312 = vst [vmem:[#allocation62_spill] sm:$0xff] %v5363_v31  ;;  %v5368_v55 = vld [vmem:[%s4278_s14 + $0x50] sm:$0xff]  ;;  %v5371_v49 = vld [vmem:[%s4278_s14 + $0x68] sm:$0xff]  ;;  %v5377_v23 = vld [vmem:[%s4278_s14 + $0xe0] sm:$0xff] }
 0x122   : > { %v986_v12 = vrot.slane %v985_v25, 1  ;;  %v1064_v19 = vrot.slane %v1063_v47, 1  ;;  %v1142_v44 = vrot.slane %v1141_v38, 1  ;;  %v1454_v4 = vrot.slane %v1453_v53, 1  ;;  %8314 = vst [vmem:[#allocation64_spill] sm:$0xff] %v5368_v55  ;;  %8315 = vst [vmem:[#allocation67_spill] sm:$0xff] %v5371_v49 }
 0x123   : > { %v1220_v8 = vrot.slane %v1219_v6, 1  ;;  %v1298_v62 = vrot.slane %v1297_v42, 1  ;;  %v1376_v48 = vrot.slane %v1375_v34, 1  ;;  %v5365_v35 = vmul.f32 0.015625, %v909_v28  ;;  %8316 = vst [vmem:[#allocation68_spill] sm:$0xff] %v5374_v52  ;;  %8317 = vst [vmem:[#allocation69_spill] sm:$0xff] %v5377_v23 }
 0x124   : > { %v987_v41 = vadd.f32 %v986_v12, %v985_v25  ;;  %v1065_v0 = vadd.f32 %v1064_v19, %v1063_v47  ;;  %v1143_v54 = vadd.f32 %v1142_v44, %v1141_v38  ;;  %v1455_v50 = vadd.f32 %v1454_v4, %v1453_v53  ;;  %8318 = vst [vmem:[#allocation70_spill] sm:$0xff] %v5380_v26  ;;  %v5391_v33 = vld [vmem:[%s4278_s14 + $0x98] sm:$0xff]  ;;  %v5394_v63 = vld [vmem:[%s4278_s14 + $0xb0] sm:$0xff]  ;;  %v5397_v25 = vld [vmem:[%s4278_s14 + $0x188] sm:$0xff] }
 0x125   : > { %v1221_v13 = vadd.f32 %v1220_v8, %v1219_v6  ;;  %v1299_v11 = vadd.f32 %v1298_v62, %v1297_v42  ;;  %v1377_v45 = vadd.f32 %v1376_v48, %v1375_v34  ;;  %8313 = vst [vmem:[#allocation63_spill] sm:$0xff] %v5365_v35  ;;  %8323 = vst [vmem:[#allocation78_spill] sm:$0xff] %v5391_v33  ;;  %v5406_v59 = vld [vmem:[%s4278_s14 + $0x110] sm:$0xff]  ;;  %v5409_v42 = vld [vmem:[%s4278_s14 + $0x128] sm:$0xff]  ;;  %v1917_v32 = vunpack.c.h.bf16 %v5466_v61 }
 0x126   : > { %v5382_v9 = vmul.f32 0.015625, %v987_v41  ;;  %v5384_v18 = vmul.f32 0.015625, %v1065_v0  ;;  %v5386_v3 = vmul.f32 0.015625, %v1143_v54  ;;  %8324 = vst [vmem:[#allocation79_spill] sm:$0xff] %v5394_v63  ;;  %8325 = vst [vmem:[#allocation83_spill] sm:$0xff] %v5397_v25  ;;  %v5403_v6 = vmul.f32 0.015625, %v1455_v50 }
 0x127   : > { %v5388_v58 = vmul.f32 0.015625, %v1221_v13  ;;  %v5399_v47 = vmul.f32 0.015625, %v1299_v11  ;;  %v5401_v38 = vmul.f32 0.015625, %v1377_v45  ;;  %8329 = vst [vmem:[#allocation87_spill] sm:$0xff] %v5406_v59  ;;  %8330 = vst [vmem:[#allocation94_spill] sm:$0xff] %v5409_v42  ;;  %v5412_v34 = vld [vmem:[%s4278_s14 + $0x1a0] sm:$0xff]  ;;  %v1935_v5 = vunpack.c.h.bf16 %v5485_v40 }
 0x128   : > { %8319 = vst [vmem:[#allocation71_spill] sm:$0xff] %v5382_v9  ;;  %8320 = vst [vmem:[#allocation75_spill] sm:$0xff] %v5384_v18  ;;  %v5415_v53 = vld [vmem:[%s4278_s14 + $0x1b8] sm:$0xff]  ;;  %v5418_v12 = vld [vmem:[%s4278_s14 + $0x1d0] sm:$0xff]  ;;  %v1965_v40 = vunpack.c.h.bf16 %v5504_v39  ;;  %v1971_v9 = vunpack.c.h.bf16 %v5514_v10  ;;  %v1977_v35 = vunpack.c.h.bf16 %v5517_v2  ;;  %v1995_v7 = vunpack.c.h.bf16 %v5530_v46 }
 0x129   : > { %8321 = vst [vmem:[#allocation76_spill] sm:$0xff] %v5386_v3  ;;  %8322 = vst [vmem:[#allocation77_spill] sm:$0xff] %v5388_v58  ;;  %v5422_v44 = vld [vmem:[%s4278_s14 + $0x140] sm:$0xff]  ;;  %v5425_v8 = vld [vmem:[%s4278_s14 + $0x158] sm:$0xff]  ;;  %v2013_v10 = vunpack.c.h.bf16 %v5543_v16  ;;  %v2025_v29 = vunpack.c.h.bf16 %v5553_v21  ;;  %v2031_v14 = vunpack.c.h.bf16 %v5556_v51  ;;  %v2037_v46 = vunpack.c.h.bf16 %v5563_v37 }
 0x12a   : > { %8326 = vst [vmem:[#allocation84_spill] sm:$0xff] %v5399_v47  ;;  %8327 = vst [vmem:[#allocation85_spill] sm:$0xff] %v5401_v38  ;;  %v5428_v28 = vld [vmem:[%s4278_s14 + $0x170] sm:$0xff]  ;;  %v5431_v62 = vld [vmem:[%s4278_s14 + $0x248] sm:$0xff]  ;;  %v1929_v38 = vunpack.c.h.bf16 %v5482_v22  ;;  %v8382_v16 = vunpack.c.h.bf16 %v5357_v27  ;;  %v2535_v57 = vadd.f32 %v1971_v9, %v1965_v40 }
 0x12b   : > { %8328 = vst [vmem:[#allocation86_spill] sm:$0xff] %v5403_v6  ;;  %8331 = vst [vmem:[#allocation95_spill] sm:$0xff] %v5412_v34  ;;  %v5438_v54 = vld [vmem:[%s4278_s14 + $0x1e8] sm:$0xff]  ;;  %v5441_v13 = vld [vmem:[%s4278_s14 + $0x260] sm:$0xff]  ;;  %v1923_v6 = vunpack.c.h.bf16 %v5479_v60 }
 0x12c   : > { %8332 = vst [vmem:[#allocation99_spill] sm:$0xff] %v5415_v53  ;;  %8333 = vst [vmem:[#allocation100_spill] sm:$0xff] %v5418_v12  ;;  %v5444_v11 = vld [vmem:[%s4278_s14 + $0x278] sm:$0xff]  ;;  %v5447_v45 = vld [vmem:[%s4278_s14 + $0x290] sm:$0xff]  ;;  %v1875_v1 = vunpack.c.h.bf16 %v5441_v13 }
 0x12d   : > { %8334 = vst [vmem:[#allocation101_spill] sm:$0xff] %v5422_v44  ;;  %8335 = vst [vmem:[#allocation105_spill] sm:$0xff] %v5425_v8  ;;  %v5450_v50 = vld [vmem:[%s4278_s14 + $0x2a8] sm:$0xff]  ;;  %v5457_v19 = vld [vmem:[%s4278_s14 + $0x200] sm:$0xff]  ;;  %v2457_v33 = vadd.f32 %v1923_v6, %v1917_v32  ;;  %v2536_v32 = vadd.f32 %v2535_v57, %v1977_v35  ;;  %v8397_v57 = vunpack.c.h.bf16 %v5409_v42 }
 0x12e   : > { %8336 = vst [vmem:[#allocation106_spill] sm:$0xff] %v5428_v28  ;;  %8337 = vst [vmem:[#allocation107_spill] sm:$0xff] %v5431_v62  ;;  %v5488_v4 = vld [vmem:[%s4278_s14 + $0x368] sm:$0xff]  ;;  %v5524_v41 = vld [vmem:[%s4278_s14 + $0x410] sm:$0xff] }
 0x12f   : > { %8338 = vst [vmem:[#allocation108_spill] sm:$0xff] %v5438_v54  ;;  %8339 = vst [vmem:[#allocation109_spill] sm:$0xff] %v5441_v13  ;;  %v5527_v48 = vld [vmem:[%s4278_s14 + $0x428] sm:$0xff]  ;;  %v5540_v0 = vld [vmem:[%s4278_s14 + $0x470] sm:$0xff]  ;;  %v1983_v58 = vunpack.c.h.bf16 %v5524_v41  ;;  %v8400_v35 = vunpack.c.h.bf16 %v5488_v4 }
 0x130   : > { %8340 = vst [vmem:[#allocation110_spill] sm:$0xff] %v5444_v11  ;;  %8341 = vst [vmem:[#allocation113_spill] sm:$0xff] %v5447_v45  ;;  %v5566_v61 = vld [vmem:[%s4278_s14 + $0x500] sm:$0xff]  ;;  %v5569_v47 = vld [vmem:[%s4278_s14 + $0x518] sm:$0xff]  ;;  %v1989_v3 = vunpack.c.h.bf16 %v5527_v48 }
 0x131   : > { %8342 = vst [vmem:[#allocation114_spill] sm:$0xff] %v5450_v50  ;;  %8343 = vst [vmem:[#allocation115_spill] sm:$0xff] %v5457_v19  ;;  %v5576_v22 = vld [vmem:[%s4278_s14 + $0x530] sm:$0xff]  ;;  %v5579_v13 = vld [vmem:[%s4278_s14 + $0x548] sm:$0xff]  ;;  %v2043_v17 = vunpack.c.h.bf16 %v5566_v61  ;;  %v2049_v28 = vunpack.c.h.bf16 %v5569_v47 }
 0x132   : > { %8352 = vst [vmem:[#allocation125_spill] sm:$0xff] %v5488_v4  ;;  %8360 = vst [vmem:[#allocation65_spill] sm:$0xff] %v5524_v41  ;;  %v5582_v18 = vld [vmem:[%s4278_s14 + $0x560] sm:$0xff]  ;;  %v5589_v60 = vld [vmem:[%s4278_s14 + $0x578] sm:$0xff] }
 0x133   : > { %8361 = vst [vmem:[#allocation73_spill] sm:$0xff] %v5527_v48  ;;  %8364 = vst [vmem:[#allocation103_spill] sm:$0xff] %v5540_v0  ;;  %v5595_v39 = vld [vmem:[%s4278_s14 + $0x5a8] sm:$0xff]  ;;  %v5602_v63 = vld [vmem:[%s4278_s14 + $0x5c0] sm:$0xff]  ;;  %v2019_v48 = vunpack.c.h.bf16 %v5550_v24  ;;  %v2061_v0 = vunpack.c.h.bf16 %v5579_v13  ;;  %v2067_v30 = vunpack.c.h.bf16 %v5582_v18  ;;  %v2073_v43 = vunpack.c.h.bf16 %v5589_v60 }
 0x134   : > { %8370 = vst [vmem:[#allocation104_spill] sm:$0xff] %v5566_v61  ;;  %8371 = vst [vmem:[#allocation112_spill] sm:$0xff] %v5569_v47  ;;  %v5605_v2 = vld [vmem:[%s4278_s14 + $0x5d8] sm:$0xff]  ;;  %v5608_v41 = vld [vmem:[%s4278_s14 + $0x5f0] sm:$0xff]  ;;  %v2079_v24 = vunpack.c.h.bf16 %v5592_v56  ;;  %v2085_v21 = vunpack.c.h.bf16 %v5595_v39  ;;  %v2091_v51 = vunpack.c.h.bf16 %v5602_v63  ;;  %v8381_v47 = vunpack.c.h.bf16 %v5354_v15 }
 0x135   : > { %8372 = vst [vmem:[#allocation120_spill] sm:$0xff] %v5576_v22  ;;  %8373 = vst [vmem:[#allocation89_spill] sm:$0xff] %v5579_v13  ;;  %v2097_v37 = vunpack.c.h.bf16 %v5605_v2  ;;  %v2103_v61 = vunpack.c.h.bf16 %v5608_v41  ;;  %v8383_v13 = vunpack.c.h.bf16 %v5363_v31  ;;  %v8385_v56 = vunpack.c.h.bf16 %v5397_v25  ;;  %v8475_v42 = vld [vmem:[#allocation57_spill] sm:$0xff] }
 0x136   : > { %8374 = vst [vmem:[#allocation90_spill] sm:$0xff] %v5582_v18  ;;  %8375 = vst [vmem:[#allocation91_spill] sm:$0xff] %v5589_v60  ;;  %v2145_v22 = vadd.f32 %v8382_v16, %v8381_v47  ;;  %v8384_v18 = vunpack.c.h.bf16 %v5377_v23  ;;  %v2613_v27 = vadd.f32 %v2019_v48, %v2013_v10  ;;  %v2691_v16 = vadd.f32 %v2067_v30, %v2061_v0  ;;  %v8489_v23 = vld [vmem:[#allocation40_spill] sm:$0xff] }
 0x137   : > { %8377 = vst [vmem:[#allocation97_spill] sm:$0xff] %v5595_v39  ;;  %8378 = vst [vmem:[#allocation98_spill] sm:$0xff] %v5602_v63  ;;  %v8386_v39 = vunpack.c.h.bf16 %v5412_v34  ;;  %v8387_v63 = vunpack.c.h.bf16 %v5431_v62  ;;  %v8389_v47 = vunpack.c.h.bf16 %v5380_v26  ;;  %v8391_v25 = vunpack.c.h.bf16 %v5444_v11  ;;  %v8464_v11 = vld [vmem:[#allocation45_spill] sm:$0xff]  ;;  %v8465_v62 = vld [vmem:[#allocation46_spill] sm:$0xff] }
 0x138   : > { %8379 = vst [vmem:[#allocation7_spill] sm:$0xff] %v5605_v2  ;;  %8380 = vst [vmem:[#allocation10_spill] sm:$0xff] %v5608_v41  ;;  %v2223_v60 = vadd.f32 %v8384_v18, %v8383_v13  ;;  %v8388_v41 = vunpack.c.h.bf16 %v5360_v20  ;;  %v8390_v18 = vunpack.c.h.bf16 %v5415_v53  ;;  %v2692_v6 = vadd.f32 %v2691_v16, %v2073_v43  ;;  %v8471_v53 = vld [vmem:[#allocation53_spill] sm:$0xff]  ;;  %v8484_v20 = vld [vmem:[#allocation8_spill] sm:$0xff] }
 0x139   : > { %v2301_v8 = vadd.f32 %v8386_v39, %v8385_v56  ;;  %v2379_v2 = vadd.f32 %v1875_v1, %v8387_v63  ;;  %v2458_v39 = vadd.f32 %v2457_v33, %v1929_v38  ;;  %v8392_v56 = vunpack.c.h.bf16 %v5368_v55  ;;  %v8483_v55 = vld [vmem:[#allocation58_spill] sm:$0xff]  ;;  %v8491_v26 = vld [vmem:[#allocation17_spill] sm:$0xff] }
 0x13a   : > { %v2146_v15 = vadd.f32 %v2145_v22, %v8388_v41  ;;  %v2224_v31 = vadd.f32 %v2223_v60, %v8389_v47  ;;  %v2614_v63 = vadd.f32 %v2613_v27, %v2025_v29  ;;  %v8393_v22 = vunpack.c.h.bf16 %v5406_v59  ;;  %v8476_v59 = vld [vmem:[#allocation3_spill] sm:$0xff] }
 0x13b   : > { %v2302_v13 = vadd.f32 %v2301_v8, %v8390_v18  ;;  %v2380_v34 = vadd.f32 %v2379_v2, %v8391_v25  ;;  %v8394_v30 = vunpack.c.h.bf16 %v5418_v12  ;;  %v8395_v60 = vunpack.c.h.bf16 %v5447_v45  ;;  %v8463_v45 = vld [vmem:[#allocation44_spill] sm:$0xff] }
 0x13c   : > { %v2147_v1 = vadd.f32 %v2146_v15, %v8392_v56  ;;  %v2225_v10 = vadd.f32 %v2224_v31, %v8393_v22  ;;  %v2459_v8 = vadd.f32 %v2458_v39, %v1935_v5  ;;  %v8396_v48 = vunpack.c.h.bf16 %v5371_v49  ;;  %v8405_v56 = vld [vmem:[#allocation127_spill] sm:$0xff]  ;;  %v8485_v12 = vld [vmem:[#allocation16_spill] sm:$0xff] }
 0x13d   : > { %v2303_v40 = vadd.f32 %v2302_v13, %v8394_v30  ;;  %v2381_v9 = vadd.f32 %v2380_v34, %v8395_v60  ;;  %v2537_v33 = vadd.f32 %v2536_v32, %v1983_v58  ;;  %v2615_v25 = vadd.f32 %v2614_v63, %v2031_v14  ;;  %v8407_v63 = vld [vmem:[#allocation78_spill] sm:$0xff]  ;;  %v8411_v60 = vld [vmem:[#allocation116_spill] sm:$0xff]  ;;  %v8482_v49 = vld [vmem:[#allocation31_spill] sm:$0xff] }
 0x13e   : > { %v2148_v2 = vadd.f32 %v2147_v1, %v8396_v48  ;;  %v2693_v38 = vadd.f32 %v2692_v6, %v2079_v24  ;;  %v2226_v29 = vadd.f32 %v2225_v10, %v8397_v57  ;;  %v8398_v43 = vunpack.c.h.bf16 %v5438_v54  ;;  %v8413_v48 = vld [vmem:[#allocation121_spill] sm:$0xff] }
 0x13f   : > { %v8399_v27 = vunpack.c.h.bf16 %v5450_v50  ;;  %v2460_v41 = vadd.f32 %v2459_v8, %v8400_v35  ;;  %v8401_v5 = vunpack.c.h.bf16 %v5374_v52  ;;  %v2538_v0 = vadd.f32 %v2537_v33, %v1989_v3  ;;  %v8421_v35 = vld [vmem:[#allocation106_spill] sm:$0xff]  ;;  %v8481_v52 = vld [vmem:[#allocation23_spill] sm:$0xff]  ;;  %v8492_v54 = vld [vmem:[#allocation25_spill] sm:$0xff] }
 0x140   : > { %v2304_v15 = vadd.f32 %v2303_v40, %v8398_v43  ;;  %v2616_v16 = vadd.f32 %v2615_v25, %v2037_v46  ;;  %v2694_v58 = vadd.f32 %v2693_v38, %v2085_v21  ;;  %v8402_v24 = vunpack.c.h.bf16 %v5422_v44  ;;  %v8409_v46 = vld [vmem:[#allocation105_spill] sm:$0xff]  ;;  %v8415_v25 = vld [vmem:[#allocation128_spill] sm:$0xff] }
 0x141   : > { %v2382_v31 = vadd.f32 %v2381_v9, %v8399_v27  ;;  %v2149_v34 = vadd.f32 %v2148_v2, %v8401_v5  ;;  %v8403_v47 = vunpack.c.h.bf16 %v5457_v19  ;;  %v8404_v13 = vunpack.c.h.bf16 %v5473_v36  ;;  %v8419_v27 = vld [vmem:[#allocation92_spill] sm:$0xff] }
 0x142   : > { %v2227_v14 = vadd.f32 %v2226_v29, %v8402_v24  ;;  %v8406_v1 = vunpack.c.h.bf16 %v8405_v56  ;;  %v8408_v6 = vunpack.c.h.bf16 %v8407_v63  ;;  %v2539_v10 = vadd.f32 %v2538_v0, %v1995_v7  ;;  %v8417_v29 = vld [vmem:[#allocation79_spill] sm:$0xff]  ;;  %v8474_v44 = vld [vmem:[#allocation56_spill] sm:$0xff] }
 0x143   : > { %v2305_v18 = vadd.f32 %v2304_v15, %v8403_v47  ;;  %v2383_v39 = vadd.f32 %v2382_v31, %v8404_v13  ;;  %v2617_v30 = vadd.f32 %v2616_v16, %v2043_v17  ;;  %v2695_v3 = vadd.f32 %v2694_v58, %v2091_v51  ;;  %v8425_v58 = vld [vmem:[#allocation126_spill] sm:$0xff]  ;;  %v8427_v47 = vld [vmem:[#allocation80_spill] sm:$0xff]  ;;  %v8480_v63 = vld [vmem:[#allocation15_spill] sm:$0xff] }
 0x144   : > { %v2461_v32 = vadd.f32 %v2460_v41, %v8406_v1  ;;  %v2150_v22 = vadd.f32 %v2149_v34, %v8408_v6  ;;  %v8410_v21 = vunpack.c.h.bf16 %v8409_v46  ;;  %v8412_v9 = vunpack.c.h.bf16 %v8411_v60  ;;  %v8423_v34 = vld [vmem:[#allocation117_spill] sm:$0xff]  ;;  %v8429_v1 = vld [vmem:[#allocation103_spill] sm:$0xff]  ;;  %v8467_v60 = vld [vmem:[#allocation48_spill] sm:$0xff] }
 0x145   : > { %v8414_v2 = vunpack.c.h.bf16 %v8413_v48  ;;  %v8416_v38 = vunpack.c.h.bf16 %v8415_v25  ;;  %v8418_v43 = vunpack.c.h.bf16 %v8417_v29  ;;  %v8420_v31 = vunpack.c.h.bf16 %v8419_v27  ;;  %v8473_v46 = vld [vmem:[#allocation55_spill] sm:$0xff]  ;;  %v8479_v29 = vld [vmem:[#allocation6_spill] sm:$0xff] }
 0x146   : > { %v2228_v40 = vadd.f32 %v2227_v14, %v8410_v21  ;;  %v2306_v8 = vadd.f32 %v2305_v18, %v8412_v9  ;;  %v2618_v17 = vadd.f32 %v2617_v30, %v2049_v28  ;;  %v2696_v51 = vadd.f32 %v2695_v3, %v2097_v37 }
 0x147   : > { %v2384_v33 = vadd.f32 %v2383_v39, %v8414_v2  ;;  %v2462_v57 = vadd.f32 %v2461_v32, %v8416_v38  ;;  %v2151_v15 = vadd.f32 %v2150_v22, %v8418_v43  ;;  %v2540_v7 = vadd.f32 %v2539_v10, %v8420_v31  ;;  %v8431_v22 = vld [vmem:[#allocation120_spill] sm:$0xff] }
 0x148   : > { %v8422_v41 = vunpack.c.h.bf16 %v8421_v35  ;;  %v8424_v0 = vunpack.c.h.bf16 %v8423_v34  ;;  %v8426_v24 = vunpack.c.h.bf16 %v8425_v58  ;;  %v8428_v18 = vunpack.c.h.bf16 %v8427_v47  ;;  %v8466_v34 = vld [vmem:[#allocation47_spill] sm:$0xff]  ;;  %v8472_v35 = vld [vmem:[#allocation54_spill] sm:$0xff] }
 0x149   : > { %v2152_v39 = vrot.slane %v2151_v15, 4  ;;  %v8430_v32 = vunpack.c.h.bf16 %v8429_v1  ;;  %v8432_v10 = vunpack.c.h.bf16 %v8431_v22  ;;  %v2697_v37 = vadd.f32 %v2696_v51, %v2103_v61 }
 0x14a   : > { %v2229_v5 = vadd.f32 %v2228_v40, %v8422_v41  ;;  %v2307_v16 = vadd.f32 %v2306_v8, %v8424_v0  ;;  %v2385_v14 = vadd.f32 %v2384_v33, %v8426_v24  ;;  %v2463_v13 = vadd.f32 %v2462_v57, %v8428_v18 }
 0x14b   : > { %v2541_v6 = vadd.f32 %v2540_v7, %v8430_v32  ;;  %v2619_v28 = vadd.f32 %v2618_v17, %v8432_v10  ;;  %v2153_v9 = vadd.f32 %v2152_v39, %v2151_v15  ;;  %v2698_v38 = vrot.slane %v2697_v37, 4 }
 0x14c   : > { %v2230_v30 = vrot.slane %v2229_v5, 4  ;;  %v2308_v3 = vrot.slane %v2307_v16, 4  ;;  %v2386_v21 = vrot.slane %v2385_v14, 4  ;;  %v2464_v40 = vrot.slane %v2463_v13, 4 }
 0x14d   : > { %v2542_v8 = vrot.slane %v2541_v6, 4  ;;  %v2620_v2 = vrot.slane %v2619_v28, 4  ;;  %v2154_v41 = vrot.slane %v2153_v9, 2  ;;  %v2699_v7 = vadd.f32 %v2698_v38, %v2697_v37 }
 0x14e   : > { %v2231_v33 = vadd.f32 %v2230_v30, %v2229_v5  ;;  %v2309_v43 = vadd.f32 %v2308_v3, %v2307_v16  ;;  %v2387_v31 = vadd.f32 %v2386_v21, %v2385_v14  ;;  %v2465_v57 = vadd.f32 %v2464_v40, %v2463_v13 }
 0x14f   : > { %v2543_v0 = vadd.f32 %v2542_v8, %v2541_v6  ;;  %v2621_v24 = vadd.f32 %v2620_v2, %v2619_v28  ;;  %v2155_v51 = vadd.f32 %v2154_v41, %v2153_v9  ;;  %v2700_v1 = vrot.slane %v2699_v7, 2 }
 0x150   : > { %v2232_v18 = vrot.slane %v2231_v33, 2  ;;  %v2310_v32 = vrot.slane %v2309_v43, 2  ;;  %v2388_v17 = vrot.slane %v2387_v31, 2  ;;  %v2466_v61 = vrot.slane %v2465_v57, 2 }
 0x151   : > { %v2544_v10 = vrot.slane %v2543_v0, 2  ;;  %v2622_v22 = vrot.slane %v2621_v24, 2  ;;  %v2156_v5 = vrot.slane %v2155_v51, 1  ;;  %v2701_v13 = vadd.f32 %v2700_v1, %v2699_v7 }
 0x152   : > { %v2233_v15 = vadd.f32 %v2232_v18, %v2231_v33  ;;  %v2311_v39 = vadd.f32 %v2310_v32, %v2309_v43  ;;  %v2389_v27 = vadd.f32 %v2388_v17, %v2387_v31  ;;  %v2467_v47 = vadd.f32 %v2466_v61, %v2465_v57  ;;  %v8433_v17 = vld [vmem:[#allocation63_spill] sm:$0xff] }
 0x153   : > { %v2545_v16 = vadd.f32 %v2544_v10, %v2543_v0  ;;  %v2623_v14 = vadd.f32 %v2622_v22, %v2621_v24  ;;  %v2157_v3 = vadd.f32 %v2156_v5, %v2155_v51  ;;  %v2702_v8 = vrot.slane %v2701_v13, 1  ;;  %v8434_v51 = vld [vmem:[#allocation71_spill] sm:$0xff]  ;;  %v8437_v5 = vld [vmem:[#allocation77_spill] sm:$0xff] }
 0x154   : > { %v2234_v30 = vrot.slane %v2233_v15, 1  ;;  %v2312_v6 = vrot.slane %v2311_v39, 1  ;;  %v2390_v28 = vrot.slane %v2389_v27, 1  ;;  %v2468_v37 = vrot.slane %v2467_v47, 1 }
 0x155   : > { %v2546_v21 = vrot.slane %v2545_v16, 1  ;;  %v2624_v40 = vrot.slane %v2623_v14, 1  ;;  %v2703_v31 = vadd.f32 %v2702_v8, %v2701_v13  ;;  %v2733_v57 = vmul.f32 0.015625, %v2157_v3 }
 0x156   : > { %v2235_v9 = vadd.f32 %v2234_v30, %v2233_v15  ;;  %v2313_v2 = vadd.f32 %v2312_v6, %v2311_v39  ;;  %v2391_v38 = vadd.f32 %v2390_v28, %v2389_v27  ;;  %v2469_v41 = vadd.f32 %v2468_v37, %v2467_v47  ;;  %v8435_v15 = vld [vmem:[#allocation75_spill] sm:$0xff]  ;;  %v8436_v47 = vld [vmem:[#allocation76_spill] sm:$0xff]  ;;  %v8439_v30 = vld [vmem:[#allocation85_spill] sm:$0xff] }
 0x157   : > { %v2547_v33 = vadd.f32 %v2546_v21, %v2545_v16  ;;  %v2625_v43 = vadd.f32 %v2624_v40, %v2623_v14  ;;  %v2775_v32 = vmul.f32 0.015625, %v2703_v31  ;;  %v2781_v61 = vsub.f32 %v8433_v17, %v2733_v57  ;;  %v8438_v14 = vld [vmem:[#allocation84_spill] sm:$0xff]  ;;  %v8440_v28 = vld [vmem:[#allocation86_spill] sm:$0xff] }
 0x158   : > { %v2739_v18 = vmul.f32 0.015625, %v2235_v9  ;;  %v2745_v0 = vmul.f32 0.015625, %v2313_v2  ;;  %v2751_v22 = vmul.f32 0.015625, %v2391_v38  ;;  %v2757_v1 = vmul.f32 0.015625, %v2469_v41  ;;  %v5710_v9 = vld [vmem:[%s3918_s27 + $0x8] sm:$0xff]  ;;  %v8450_v31 = vld [vmem:[#allocation26_spill] sm:$0xff] }
 0x159   : > { %v2763_v24 = vmul.f32 0.015625, %v2547_v33  ;;  %v2769_v7 = vmul.f32 0.015625, %v2625_v43  ;;  %v2823_v37 = vsub.f32 %v8440_v28, %v2775_v32  ;;  %v2829_v3 = vand.u32 2147483647, %v2781_v61  ;;  %v5714_v43 = vld [vmem:[%s3918_s27 + $0x20] sm:$0xff]  ;;  %v5728_v32 = vld [vmem:[%s3918_s27 + $0x68] sm:$0xff] }
 0x15a   : > { %v2787_v10 = vsub.f32 %v8434_v51, %v2739_v18  ;;  %v2793_v27 = vsub.f32 %v8435_v15, %v2745_v0  ;;  %v2799_v39 = vsub.f32 %v8436_v47, %v2751_v22  ;;  %v2805_v16 = vsub.f32 %v8437_v5, %v2757_v1  ;;  %v5719_v0 = vld [vmem:[%s3918_s27 + $0x38] sm:$0xff]  ;;  %v5723_v1 = vld [vmem:[%s3918_s27 + $0x50] sm:$0xff]  ;;  %v5732_v61 = vld [vmem:[%s3918_s27 + $0x80] sm:$0xff] }
 0x15b   : > { %v2811_v13 = vsub.f32 %v8438_v14, %v2763_v24  ;;  %v2817_v6 = vsub.f32 %v8439_v30, %v2769_v7  ;;  %v2871_v57 = vand.u32 2147483647, %v2823_v37  ;;  %v5741_v47 = vld [vmem:[%s3918_s27 + $0xb0] sm:$0xff]  ;;  %v5745_v5 = vld [vmem:[%s3918_s27 + $0xc8] sm:$0xff]  ;;  %v5749_v14 = vld [vmem:[%s3918_s27 + $0xe0] sm:$0xff]  ;;  %v668_v25 = vunpack.c.l.bf16 %v8463_v45 }
 0x15c   : > { %v2835_v21 = vand.u32 2147483647, %v2787_v10  ;;  %v2841_v40 = vand.u32 2147483647, %v2793_v27  ;;  %v2847_v8 = vand.u32 2147483647, %v2799_v39  ;;  %v674_v56 = vunpack.c.l.bf16 %v8464_v11 }
 0x15d   : > { %v2853_v38 = vand.u32 2147483647, %v2805_v16  ;;  %v2859_v41 = vand.u32 2147483647, %v2811_v13  ;;  %v2865_v33 = vand.u32 2147483647, %v2817_v6  ;;  %v716_v50 = vunpack.c.l.bf16 %v8471_v53 }
 0x15e   : > { %v3053_v18 = vsel %vm3025_vm0, %v2835_v21, %v2829_v3  ;;  %v5736_v10 = vld [vmem:[%s3918_s27 + $0x98] sm:$0xff]  ;;  %8442 = vst [vmem:[#allocation12_spill] sm:$0xff] %v5741_v47  ;;  %v5758_v37 = vld [vmem:[%s3918_s27 + $0x110] sm:$0xff]  ;;  %v8451_v2 = vld [vmem:[#allocation27_spill] sm:$0xff]  ;;  %v728_v45 = vunpack.c.l.bf16 %v8473_v46  ;;  %v734_v11 = vunpack.c.l.bf16 %v8474_v44  ;;  %v770_v36 = vunpack.c.l.bf16 %v8480_v63 }
 0x15f   : > { %v3054_v7 = vsel %vm3027_vm1, %v2841_v40, %v3053_v18  ;;  %8441 = vst [vmem:[#allocation11_spill] sm:$0xff] %v5736_v10  ;;  %v5754_v6 = vld [vmem:[%s3918_s27 + $0xf8] sm:$0xff]  ;;  %v776_v53 = vunpack.c.l.bf16 %v8481_v52  ;;  %v788_v46 = vunpack.c.l.bf16 %v8483_v55  ;;  %v794_v44 = vunpack.c.l.bf16 %v8484_v20  ;;  %v8487_v17 = vld [vmem:[#allocation32_spill] sm:$0xff] }
 0x160   : > { %v3055_v27 = vsel %vm3029_vm2, %v2847_v8, %v3054_v7  ;;  %v8443_v21 = vld [vmem:[#allocation13_spill] sm:$0xff]  ;;  %v8444_v18 = vld [vmem:[#allocation14_spill] sm:$0xff]  ;;  %v836_v52 = vunpack.c.l.bf16 %v8491_v26  ;;  %v1196_v10 = vadd.f32 %v674_v56, %v668_v25  ;;  %v8503_v25 = vunpack.c.l.bf16 %v8450_v31 }
 0x161   : > { %v3056_v30 = vsel %vm3031_vm3, %v2853_v38, %v3055_v27  ;;  %v8447_v27 = vld [vmem:[#allocation20_spill] sm:$0xff]  ;;  %v8448_v22 = vld [vmem:[#allocation21_spill] sm:$0xff]  ;;  %v8449_v13 = vld [vmem:[#allocation22_spill] sm:$0xff] }
 0x162   : > { %v3057_v8 = vsel %vm3033_vm4, %v2859_v41, %v3056_v30  ;;  %v572_v24 = vunpack.c.l.bf16 %v8447_v27  ;;  %v578_v28 = vunpack.c.l.bf16 %v8448_v22  ;;  %v584_v16 = vunpack.c.l.bf16 %v8449_v13  ;;  %v8456_v27 = vld [vmem:[#allocation35_spill] sm:$0xff]  ;;  %v8457_v22 = vld [vmem:[#allocation36_spill] sm:$0xff]  ;;  %v8458_v13 = vld [vmem:[#allocation37_spill] sm:$0xff] }
 0x163   : > { %v3058_v38 = vsel %vm3035_vm5, %v2865_v33, %v3057_v8  ;;  %v8455_v33 = vld [vmem:[#allocation34_spill] sm:$0xff]  ;;  %v626_v4 = vunpack.c.l.bf16 %v8456_v27  ;;  %v632_v58 = vunpack.c.l.bf16 %v8457_v22  ;;  %v638_v48 = vunpack.c.l.bf16 %v8458_v13  ;;  %v8488_v51 = vld [vmem:[#allocation61_spill] sm:$0xff] }
 0x164   : > { %v3059_v3 = vsel %vm3037_vm6, %v2871_v57, %v3058_v38  ;;  %v620_v8 = vunpack.c.l.bf16 %v8455_v33  ;;  %v8459_v57 = vld [vmem:[#allocation38_spill] sm:$0xff]  ;;  %v680_v33 = vunpack.c.l.bf16 %v8465_v62  ;;  %v686_v27 = vunpack.c.l.bf16 %v8466_v34  ;;  %v8490_v47 = vld [vmem:[#allocation9_spill] sm:$0xff] }
 0x165   : > { %3214 = vmatprep.mubr.f32.mxu1 %v3059_v3  ;;  %v692_v22 = vunpack.c.l.bf16 %v8467_v60  ;;  %v722_v3 = vunpack.c.l.bf16 %v8472_v35  ;;  %v740_v62 = vunpack.c.l.bf16 %v8475_v42  ;;  %v746_v34 = vunpack.c.l.bf16 %v8476_v59  ;;  %v8493_v41 = vld [vmem:[#allocation33_spill] sm:$0xff] }
 0x166   : > { %v764_v38 = vunpack.c.l.bf16 %v8479_v29  ;;  %v782_v35 = vunpack.c.l.bf16 %v8482_v49  ;;  %v800_v42 = vunpack.c.l.bf16 %v8485_v12  ;;  %v812_v60 = vunpack.c.l.bf16 %v8487_v17  ;;  %v8494_v15 = vld [vmem:[#allocation41_spill] sm:$0xff] }
 0x167   : > { %v818_v13 = vunpack.c.l.bf16 %v8488_v51  ;;  %v824_v29 = vunpack.c.l.bf16 %v8489_v23  ;;  %v830_v63 = vunpack.c.l.bf16 %v8490_v47  ;;  %v842_v49 = vunpack.c.l.bf16 %v8492_v54 }
 0x168   : > { %v848_v55 = vunpack.c.l.bf16 %v8493_v41  ;;  %v854_v20 = vunpack.c.l.bf16 %v8494_v15  ;;  %v8495_v12 = vunpack.c.l.bf16 %v5710_v9  ;;  %v8496_v59 = vunpack.c.l.bf16 %v5714_v43 }
 0x169   : > { %v8497_v17 = vunpack.c.l.bf16 %v5745_v5  ;;  %v8498_v51 = vunpack.c.l.bf16 %v5749_v14  ;;  %v1040_v39 = vadd.f32 %v578_v28, %v572_v24  ;;  %v1118_v47 = vadd.f32 %v626_v4, %v620_v8 }
 0x16a   : > { %v884_v7 = vadd.f32 %v8496_v59, %v8495_v12  ;;  %v1274_v26 = vadd.f32 %v722_v3, %v716_v50  ;;  %v8499_v54 = vunpack.c.l.bf16 %v5719_v0  ;;  %v8500_v41 = vunpack.c.l.bf16 %v5754_v6 }
 0x16b   : > { %v962_v23 = vadd.f32 %v8498_v51, %v8497_v17  ;;  %v1352_v40 = vadd.f32 %v770_v36, %v764_v38  ;;  %v1430_v9 = vadd.f32 %v818_v13, %v812_v60  ;;  %v1041_v30 = vadd.f32 %v1040_v39, %v584_v16 }
 0x16c   : > { %v885_v19 = vadd.f32 %v884_v7, %v8499_v54  ;;  %v1119_v43 = vadd.f32 %v1118_v47, %v632_v58  ;;  %v1197_v59 = vadd.f32 %v1196_v10, %v680_v33  ;;  %v1275_v12 = vadd.f32 %v1274_v26, %v728_v45  ;;  %v8522_v26 = vld [vmem:[#allocation42_spill] sm:$0xff] }
 0x16d   : > { %v963_v15 = vadd.f32 %v962_v23, %v8500_v41  ;;  %v8501_v5 = vunpack.c.l.bf16 %v5723_v1  ;;  %v8502_v24 = vunpack.c.l.bf16 %v5758_v37  ;;  %v1353_v56 = vadd.f32 %v1352_v40, %v776_v53  ;;  %v8514_v53 = vld [vmem:[#allocation50_spill] sm:$0xff] }
 0x16e   : > { %v1431_v50 = vadd.f32 %v1430_v9, %v824_v29  ;;  %v1042_v0 = vadd.f32 %v1041_v30, %v8503_v25  ;;  %v1120_v28 = vadd.f32 %v1119_v43, %v638_v48  ;;  %v1198_v6 = vadd.f32 %v1197_v59, %v686_v27  ;;  %v8526_v59 = vld [vmem:[#allocation4_spill] sm:$0xff]  ;;  %v8532_v25 = vld [vmem:[#allocation30_spill] sm:$0xff] }
 0x16f   : > { %v886_v14 = vadd.f32 %v885_v19, %v8501_v5  ;;  %v964_v4 = vadd.f32 %v963_v15, %v8502_v24  ;;  %v1276_v7 = vadd.f32 %v1275_v12, %v734_v11  ;;  %v8504_v36 = vunpack.c.l.bf16 %v5728_v32  ;;  %v8512_v11 = vld [vmem:[#allocation39_spill] sm:$0xff]  ;;  %v8528_v5 = vld [vmem:[#allocation12_spill] sm:$0xff] }
 0x170   : > { %v8505_v58 = vunpack.c.l.bf16 %v8443_v21  ;;  %v1354_v16 = vadd.f32 %v1353_v56, %v782_v35  ;;  %v1432_v1 = vadd.f32 %v1431_v50, %v830_v63  ;;  %v8506_v19 = vunpack.c.l.bf16 %v8451_v2  ;;  %v8510_v21 = vld [vmem:[#allocation28_spill] sm:$0xff]  ;;  %v8524_v15 = vld [vmem:[#allocation51_spill] sm:$0xff] }
 0x171   : > { %v887_v39 = vadd.f32 %v886_v14, %v8504_v36  ;;  %v8507_v40 = vunpack.c.l.bf16 %v8459_v57  ;;  %v1199_v38 = vadd.f32 %v1198_v6, %v692_v22  ;;  %v1277_v31 = vadd.f32 %v1276_v7, %v740_v62  ;;  %v8516_v22 = vld [vmem:[#allocation11_spill] sm:$0xff] }
 0x172   : > { %v965_v10 = vadd.f32 %v964_v4, %v8505_v58  ;;  %v1043_v37 = vadd.f32 %v1042_v0, %v8506_v19  ;;  %v8508_v48 = vunpack.c.l.bf16 %v5732_v61  ;;  %v8509_v3 = vunpack.c.l.bf16 %v8444_v18  ;;  %v8518_v61 = vld [vmem:[#allocation18_spill] sm:$0xff]  ;;  %v8530_v4 = vld [vmem:[#allocation19_spill] sm:$0xff] }
 0x173   : > { %v1121_v8 = vadd.f32 %v1120_v28, %v8507_v40  ;;  %v1355_v33 = vadd.f32 %v1354_v16, %v788_v46  ;;  %v1433_v27 = vadd.f32 %v1432_v1, %v836_v52  ;;  %v8511_v13 = vunpack.c.l.bf16 %v8510_v21  ;;  %v8520_v46 = vld [vmem:[#allocation29_spill] sm:$0xff]  ;;  %v8534_v6 = vld [vmem:[#allocation43_spill] sm:$0xff] }
 0x174   : > { %v888_v30 = vadd.f32 %v887_v39, %v8508_v48  ;;  %v966_v32 = vadd.f32 %v965_v10, %v8509_v3  ;;  %v8513_v60 = vunpack.c.l.bf16 %v8512_v11  ;;  %v8515_v35 = vunpack.c.l.bf16 %v8514_v53  ;;  %v8536_v39 = vld [vmem:[#allocation52_spill] sm:$0xff]  ;;  %v8538_v16 = vld [vmem:[#allocation5_spill] sm:$0xff] }
 0x175   : > { %v1044_v45 = vadd.f32 %v1043_v37, %v8511_v13  ;;  %v1278_v29 = vadd.f32 %v1277_v31, %v746_v34  ;;  %v8517_v62 = vunpack.c.l.bf16 %v8516_v22  ;;  %v8519_v17 = vunpack.c.l.bf16 %v8518_v61 }
 0x176   : > { %v1122_v2 = vadd.f32 %v1121_v8, %v8513_v60  ;;  %v1200_v57 = vadd.f32 %v1199_v38, %v8515_v35  ;;  %v1356_v18 = vadd.f32 %v1355_v33, %v794_v44  ;;  %v1434_v23 = vadd.f32 %v1433_v27, %v842_v49  ;;  %v8540_v8 = vld [vmem:[#allocation24_spill] sm:$0xff] }
 0x177   : > { %v889_v63 = vadd.f32 %v888_v30, %v8517_v62  ;;  %v967_v51 = vadd.f32 %v966_v32, %v8519_v17  ;;  %v8521_v52 = vunpack.c.l.bf16 %v8520_v46  ;;  %v8523_v54 = vunpack.c.l.bf16 %v8522_v26 }
 0x178   : > { %v8525_v9 = vunpack.c.l.bf16 %v8524_v15  ;;  %v8527_v12 = vunpack.c.l.bf16 %v8526_v59  ;;  %v8529_v14 = vunpack.c.l.bf16 %v8528_v5  ;;  %v8531_v56 = vunpack.c.l.bf16 %v8530_v4 }
 0x179   : > { %v1045_v47 = vadd.f32 %v1044_v45, %v8521_v52  ;;  %v1123_v41 = vadd.f32 %v1122_v2, %v8523_v54  ;;  %v1357_v44 = vadd.f32 %v1356_v18, %v800_v42  ;;  %v1435_v49 = vadd.f32 %v1434_v23, %v848_v55 }
 0x17a   : > { %v1201_v43 = vadd.f32 %v1200_v57, %v8525_v9  ;;  %v1279_v34 = vadd.f32 %v1278_v29, %v8527_v12  ;;  %v890_v24 = vadd.f32 %v889_v63, %v8529_v14  ;;  %v968_v50 = vadd.f32 %v967_v51, %v8531_v56 }
 0x17b   : > { %v8533_v0 = vunpack.c.l.bf16 %v8532_v25  ;;  %v8535_v7 = vunpack.c.l.bf16 %v8534_v6  ;;  %v8537_v58 = vunpack.c.l.bf16 %v8536_v39  ;;  %v8539_v1 = vunpack.c.l.bf16 %v8538_v16  ;;  %v8595_v16 = vld [vmem:[#allocation81_spill] sm:$0xff] }
 0x17c   : > { %v891_v37 = vrot.slane %v890_v24, 4  ;;  %v969_v40 = vrot.slane %v968_v50, 4  ;;  %v8541_v38 = vunpack.c.l.bf16 %v8540_v8  ;;  %v1436_v48 = vadd.f32 %v1435_v49, %v854_v20  ;;  %v8553_v8 = vld [vmem:[#allocation64_spill] sm:$0xff] }
 0x17d   : > { %v1046_v28 = vadd.f32 %v1045_v47, %v8533_v0  ;;  %v1124_v36 = vadd.f32 %v1123_v41, %v8535_v7  ;;  %v1202_v10 = vadd.f32 %v1201_v43, %v8537_v58  ;;  %v1280_v19 = vadd.f32 %v1279_v34, %v8539_v1  ;;  %v8551_v1 = vld [vmem:[#allocation59_spill] sm:$0xff] }
 0x17e   : > { %v1358_v31 = vadd.f32 %v1357_v44, %v8541_v38  ;;  %v892_v32 = vadd.f32 %v891_v37, %v890_v24  ;;  %v970_v33 = vadd.f32 %v969_v40, %v968_v50  ;;  %v1437_v21 = vrot.slane %v1436_v48, 4  ;;  %v8552_v37 = vld [vmem:[#allocation60_spill] sm:$0xff]  ;;  %v8592_v38 = vld [vmem:[#allocation102_spill] sm:$0xff]  ;;  %v8593_v40 = vld [vmem:[#allocation65_spill] sm:$0xff] }
 0x17f   : > { %v1047_v42 = vrot.slane %v1046_v28, 4  ;;  %v1125_v55 = vrot.slane %v1124_v36, 4  ;;  %v1203_v30 = vrot.slane %v1202_v10, 4  ;;  %v1281_v3 = vrot.slane %v1280_v19, 4 }
 0x180   : > { %v1359_v27 = vrot.slane %v1358_v31, 4  ;;  %v893_v2 = vrot.slane %v892_v32, 2  ;;  %v971_v53 = vrot.slane %v970_v33, 2  ;;  %v1438_v57 = vadd.f32 %v1437_v21, %v1436_v48  ;;  %v8604_v48 = vld [vmem:[#allocation112_spill] sm:$0xff] }
 0x181   : > { %v1048_v13 = vadd.f32 %v1047_v42, %v1046_v28  ;;  %v1126_v45 = vadd.f32 %v1125_v55, %v1124_v36  ;;  %v1204_v11 = vadd.f32 %v1203_v30, %v1202_v10  ;;  %v1282_v60 = vadd.f32 %v1281_v3, %v1280_v19  ;;  %v8550_v10 = vld [vmem:[#allocation49_spill] sm:$0xff]  ;;  %v8583_v3 = vld [vmem:[#allocation122_spill] sm:$0xff] }
 0x182   : > { %v1360_v35 = vadd.f32 %v1359_v27, %v1358_v31  ;;  %v894_v63 = vadd.f32 %v893_v2, %v892_v32  ;;  %v972_v61 = vadd.f32 %v971_v53, %v970_v33  ;;  %v1439_v51 = vrot.slane %v1438_v57, 2  ;;  %v8554_v31 = vld [vmem:[#allocation67_spill] sm:$0xff]  ;;  %v8558_v27 = vld [vmem:[#allocation62_spill] sm:$0xff]  ;;  %v8586_v55 = vld [vmem:[#allocation125_spill] sm:$0xff] }
 0x183   : > { %v1049_v29 = vrot.slane %v1048_v13, 2  ;;  %v1127_v22 = vrot.slane %v1126_v45, 2  ;;  %v1205_v62 = vrot.slane %v1204_v11, 2  ;;  %v1283_v20 = vrot.slane %v1282_v60, 2  ;;  %v8561_v2 = vld [vmem:[#allocation87_spill] sm:$0xff]  ;;  %v8591_v53 = vld [vmem:[#allocation88_spill] sm:$0xff] }
 0x184   : > { %v1361_v17 = vrot.slane %v1360_v35, 2  ;;  %v895_v47 = vrot.slane %v894_v63, 1  ;;  %v973_v26 = vrot.slane %v972_v61, 1  ;;  %v1440_v41 = vadd.f32 %v1439_v51, %v1438_v57  ;;  %v8594_v19 = vld [vmem:[#allocation73_spill] sm:$0xff]  ;;  %v8609_v32 = vld [vmem:[#allocation96_spill] sm:$0xff]  ;;  %v8611_v57 = vld [vmem:[#allocation98_spill] sm:$0xff] }
 0x185   : > { %v1050_v18 = vadd.f32 %v1049_v29, %v1048_v13  ;;  %v1128_v23 = vadd.f32 %v1127_v22, %v1126_v45  ;;  %v1206_v46 = vadd.f32 %v1205_v62, %v1204_v11  ;;  %v1284_v52 = vadd.f32 %v1283_v20, %v1282_v60  ;;  %v8559_v13 = vld [vmem:[#allocation69_spill] sm:$0xff]  ;;  %v8560_v11 = vld [vmem:[#allocation70_spill] sm:$0xff]  ;;  %v8585_v22 = vld [vmem:[#allocation124_spill] sm:$0xff] }
 0x186   : > { %v1362_v54 = vadd.f32 %v1361_v17, %v1360_v35  ;;  %v896_v12 = vadd.f32 %v895_v47, %v894_v63  ;;  %v974_v34 = vadd.f32 %v973_v26, %v972_v61  ;;  %v1441_v14 = vrot.slane %v1440_v41, 1  ;;  %v8562_v35 = vld [vmem:[#allocation94_spill] sm:$0xff]  ;;  %v8566_v17 = vld [vmem:[#allocation83_spill] sm:$0xff]  ;;  %v8569_v47 = vld [vmem:[#allocation100_spill] sm:$0xff] }
 0x187   : > { %v1051_v15 = vrot.slane %v1050_v18, 1  ;;  %v1129_v9 = vrot.slane %v1128_v23, 1  ;;  %v1207_v43 = vrot.slane %v1206_v46, 1  ;;  %v1285_v59 = vrot.slane %v1284_v52, 1  ;;  %v8582_v20 = vld [vmem:[#allocation118_spill] sm:$0xff]  ;;  %v8590_v26 = vld [vmem:[#allocation72_spill] sm:$0xff] }
 0x188   : > { %v1363_v5 = vrot.slane %v1362_v54, 1  ;;  %v1442_v49 = vadd.f32 %v1441_v14, %v1440_v41  ;;  %v5878_v25 = vmul.f32 0.015625, %v896_v12  ;;  %v5880_v0 = vmul.f32 0.015625, %v974_v34  ;;  %v8606_v12 = vld [vmem:[#allocation89_spill] sm:$0xff]  ;;  %v8607_v63 = vld [vmem:[#allocation90_spill] sm:$0xff] }
 0x189   : > { %v1052_v24 = vadd.f32 %v1051_v15, %v1050_v18  ;;  %v1130_v4 = vadd.f32 %v1129_v9, %v1128_v23  ;;  %v1208_v56 = vadd.f32 %v1207_v43, %v1206_v46  ;;  %v1286_v50 = vadd.f32 %v1285_v59, %v1284_v52  ;;  %v8567_v18 = vld [vmem:[#allocation95_spill] sm:$0xff]  ;;  %v8613_v43 = vld [vmem:[#allocation10_spill] sm:$0xff] }
 0x18a   : > { %v1364_v44 = vadd.f32 %v1363_v5, %v1362_v54  ;;  %8542 = vst [vmem:[#allocation63_spill] sm:$0xff] %v5878_v25  ;;  %8543 = vst [vmem:[#allocation71_spill] sm:$0xff] %v5880_v0  ;;  %v5892_v58 = vmul.f32 0.015625, %v1442_v49  ;;  %v1772_v21 = vunpack.c.l.bf16 %v8558_v27  ;;  %v1778_v45 = vunpack.c.l.bf16 %v8559_v13  ;;  %v8568_v46 = vld [vmem:[#allocation99_spill] sm:$0xff]  ;;  %v8570_v54 = vld [vmem:[#allocation108_spill] sm:$0xff] }
 0x18b   : > { %v5882_v28 = vmul.f32 0.015625, %v1052_v24  ;;  %v5884_v6 = vmul.f32 0.015625, %v1130_v4  ;;  %v5886_v7 = vmul.f32 0.015625, %v1208_v56  ;;  %v5888_v36 = vmul.f32 0.015625, %v1286_v50  ;;  %v8574_v5 = vld [vmem:[#allocation107_spill] sm:$0xff]  ;;  %v8575_v24 = vld [vmem:[#allocation109_spill] sm:$0xff] }
 0x18c   : > { %v5890_v39 = vmul.f32 0.015625, %v1364_v44  ;;  %8549 = vst [vmem:[#allocation86_spill] sm:$0xff] %v5892_v58  ;;  %v1784_v60 = vunpack.c.l.bf16 %v8560_v11  ;;  %v1820_v51 = vunpack.c.l.bf16 %v8566_v17  ;;  %v1826_v23 = vunpack.c.l.bf16 %v8567_v18  ;;  %v8576_v56 = vld [vmem:[#allocation110_spill] sm:$0xff]  ;;  %v8577_v44 = vld [vmem:[#allocation113_spill] sm:$0xff]  ;;  %v8584_v9 = vld [vmem:[#allocation123_spill] sm:$0xff] }
 0x18d   : > { %8544 = vst [vmem:[#allocation75_spill] sm:$0xff] %v5882_v28  ;;  %8545 = vst [vmem:[#allocation76_spill] sm:$0xff] %v5884_v6  ;;  %v1832_v52 = vunpack.c.l.bf16 %v8568_v46  ;;  %v1868_v14 = vunpack.c.l.bf16 %v8574_v5  ;;  %v1874_v4 = vunpack.c.l.bf16 %v8575_v24  ;;  %v1880_v50 = vunpack.c.l.bf16 %v8576_v56  ;;  %v8578_v27 = vld [vmem:[#allocation114_spill] sm:$0xff]  ;;  %v8602_v0 = vld [vmem:[#allocation93_spill] sm:$0xff] }
 0x18e   : > { %8546 = vst [vmem:[#allocation77_spill] sm:$0xff] %v5886_v7  ;;  %8547 = vst [vmem:[#allocation84_spill] sm:$0xff] %v5888_v36  ;;  %v1886_v49 = vunpack.c.l.bf16 %v8577_v44  ;;  %v1916_v59 = vunpack.c.l.bf16 %v8582_v20  ;;  %v1922_v34 = vunpack.c.l.bf16 %v8583_v3  ;;  %v1928_v5 = vunpack.c.l.bf16 %v8584_v9  ;;  %v8598_v36 = vld [vmem:[#allocation66_spill] sm:$0xff]  ;;  %v8599_v7 = vld [vmem:[#allocation111_spill] sm:$0xff] }
 0x18f   : > { %8548 = vst [vmem:[#allocation85_spill] sm:$0xff] %v5890_v39  ;;  %v1934_v24 = vunpack.c.l.bf16 %v8585_v22  ;;  %v1940_v56 = vunpack.c.l.bf16 %v8586_v55  ;;  %v1964_v46 = vunpack.c.l.bf16 %v8590_v26  ;;  %v1970_v33 = vunpack.c.l.bf16 %v8591_v53  ;;  %v8600_v6 = vld [vmem:[#allocation74_spill] sm:$0xff]  ;;  %v8603_v25 = vld [vmem:[#allocation104_spill] sm:$0xff]  ;;  %v8608_v39 = vld [vmem:[#allocation91_spill] sm:$0xff] }
 0x190   : > { %v1976_v20 = vunpack.c.l.bf16 %v8592_v38  ;;  %v1982_v3 = vunpack.c.l.bf16 %v8593_v40  ;;  %v1988_v9 = vunpack.c.l.bf16 %v8594_v19  ;;  %v1994_v22 = vunpack.c.l.bf16 %v8595_v16  ;;  %v8601_v28 = vld [vmem:[#allocation82_spill] sm:$0xff]  ;;  %v8610_v58 = vld [vmem:[#allocation97_spill] sm:$0xff]  ;;  %v8612_v18 = vld [vmem:[#allocation7_spill] sm:$0xff] }
 0x191   : > { %v2012_v13 = vunpack.c.l.bf16 %v8598_v36  ;;  %v2018_v17 = vunpack.c.l.bf16 %v8599_v7  ;;  %v2024_v26 = vunpack.c.l.bf16 %v8600_v6  ;;  %v2030_v53 = vunpack.c.l.bf16 %v8601_v28 }
 0x192   : > { %v2036_v38 = vunpack.c.l.bf16 %v8602_v0  ;;  %v2042_v40 = vunpack.c.l.bf16 %v8603_v25  ;;  %v2048_v19 = vunpack.c.l.bf16 %v8604_v48  ;;  %v2060_v55 = vunpack.c.l.bf16 %v8606_v12 }
 0x193   : > { %v2066_v44 = vunpack.c.l.bf16 %v8607_v63  ;;  %v2072_v36 = vunpack.c.l.bf16 %v8608_v39  ;;  %v2078_v7 = vunpack.c.l.bf16 %v8609_v32  ;;  %v2084_v6 = vunpack.c.l.bf16 %v8610_v58 }
 0x194   : > { %v2090_v28 = vunpack.c.l.bf16 %v8611_v57  ;;  %v2096_v0 = vunpack.c.l.bf16 %v8612_v18  ;;  %v2102_v25 = vunpack.c.l.bf16 %v8613_v43  ;;  %v8614_v48 = vunpack.c.l.bf16 %v8550_v10 }
 0x195   : > { %v8615_v16 = vunpack.c.l.bf16 %v8551_v1  ;;  %v2210_v12 = vadd.f32 %v1778_v45, %v1772_v21  ;;  %v2288_v62 = vadd.f32 %v1826_v23, %v1820_v51  ;;  %v2366_v63 = vadd.f32 %v1874_v4, %v1868_v14 }
 0x196   : > { %v2444_v30 = vadd.f32 %v1922_v34, %v1916_v59  ;;  %v2522_v39 = vadd.f32 %v1970_v33, %v1964_v46  ;;  %v8616_v32 = vunpack.c.l.bf16 %v8552_v37  ;;  %v2600_v11 = vadd.f32 %v2018_v17, %v2012_v13  ;;  %v8626_v13 = vld [vmem:[#allocation101_spill] sm:$0xff] }
 0x197   : > { %v2132_v61 = vadd.f32 %v8615_v16, %v8614_v48  ;;  %v2211_v58 = vadd.f32 %v2210_v12, %v1784_v60  ;;  %v2678_v57 = vadd.f32 %v2066_v44, %v2060_v55  ;;  %v2289_v15 = vadd.f32 %v2288_v62, %v1832_v52 }
 0x198   : > { %v2367_v18 = vadd.f32 %v2366_v63, %v1880_v50  ;;  %v2445_v29 = vadd.f32 %v2444_v30, %v1928_v5  ;;  %v2523_v43 = vadd.f32 %v2522_v39, %v1976_v20  ;;  %v8617_v10 = vunpack.c.l.bf16 %v8553_v8  ;;  %v8632_v20 = vld [vmem:[#allocation127_spill] sm:$0xff]  ;;  %v8640_v63 = vld [vmem:[#allocation121_spill] sm:$0xff] }
 0x199   : > { %v2133_v41 = vadd.f32 %v2132_v61, %v8616_v32  ;;  %v8618_v1 = vunpack.c.l.bf16 %v8561_v2  ;;  %v2601_v45 = vadd.f32 %v2600_v11, %v2024_v26  ;;  %v2679_v51 = vadd.f32 %v2678_v57, %v2072_v36 }
 0x19a   : > { %v8619_v33 = vunpack.c.l.bf16 %v8569_v47  ;;  %v2368_v37 = vadd.f32 %v2367_v18, %v1886_v49  ;;  %v2446_v61 = vadd.f32 %v2445_v29, %v1934_v24  ;;  %v2524_v60 = vadd.f32 %v2523_v43, %v1982_v3  ;;  %v8630_v24 = vld [vmem:[#allocation119_spill] sm:$0xff]  ;;  %v8644_v43 = vld [vmem:[#allocation92_spill] sm:$0xff] }
 0x19b   : > { %v2134_v42 = vadd.f32 %v2133_v41, %v8617_v10  ;;  %v2212_v21 = vadd.f32 %v2211_v58, %v8618_v1  ;;  %v8620_v59 = vunpack.c.l.bf16 %v8554_v31  ;;  %v8621_v30 = vunpack.c.l.bf16 %v8562_v35  ;;  %v8628_v35 = vld [vmem:[#allocation115_spill] sm:$0xff]  ;;  %v8642_v58 = vld [vmem:[#allocation128_spill] sm:$0xff] }
 0x19c   : > { %v2290_v23 = vadd.f32 %v2289_v15, %v8619_v33  ;;  %v2602_v34 = vadd.f32 %v2601_v45, %v2030_v53  ;;  %v2680_v8 = vadd.f32 %v2679_v51, %v2078_v7  ;;  %v8622_v41 = vunpack.c.l.bf16 %v8570_v54  ;;  %v8624_v15 = vld [vmem:[#allocation68_spill] sm:$0xff]  ;;  %v8636_v53 = vld [vmem:[#allocation105_spill] sm:$0xff]  ;;  %v8646_v1 = vld [vmem:[#allocation79_spill] sm:$0xff] }
 0x19d   : > { %v2135_v62 = vadd.f32 %v2134_v42, %v8620_v59  ;;  %v2213_v52 = vadd.f32 %v2212_v21, %v8621_v30  ;;  %v8623_v14 = vunpack.c.l.bf16 %v8578_v27  ;;  %v2447_v50 = vadd.f32 %v2446_v61, %v1940_v56  ;;  %v8634_v56 = vld [vmem:[#allocation78_spill] sm:$0xff] }
 0x19e   : > { %v2291_v2 = vadd.f32 %v2290_v23, %v8622_v41  ;;  %v2525_v47 = vadd.f32 %v2524_v60, %v1988_v9  ;;  %v8625_v49 = vunpack.c.l.bf16 %v8624_v15  ;;  %v8627_v11 = vunpack.c.l.bf16 %v8626_v13  ;;  %v8648_v51 = vld [vmem:[#allocation106_spill] sm:$0xff]  ;;  %v8656_v41 = vld [vmem:[#allocation103_spill] sm:$0xff] }
 0x19f   : > { %v2369_v4 = vadd.f32 %v2368_v37, %v8623_v14  ;;  %v2603_v42 = vadd.f32 %v2602_v34, %v2036_v38  ;;  %v2681_v17 = vadd.f32 %v2680_v8, %v2084_v6  ;;  %v8629_v46 = vunpack.c.l.bf16 %v8628_v35  ;;  %v8638_v38 = vld [vmem:[#allocation116_spill] sm:$0xff]  ;;  %v8650_v37 = vld [vmem:[#allocation117_spill] sm:$0xff]  ;;  %v8652_v59 = vld [vmem:[#allocation126_spill] sm:$0xff] }
 0x1a0   : > { %v2136_v29 = vadd.f32 %v2135_v62, %v8625_v49  ;;  %v2214_v31 = vadd.f32 %v2213_v52, %v8627_v11  ;;  %v8631_v44 = vunpack.c.l.bf16 %v8630_v24  ;;  %v8633_v3 = vunpack.c.l.bf16 %v8632_v20  ;;  %v8654_v52 = vld [vmem:[#allocation80_spill] sm:$0xff] }
 0x1a1   : > { %v2292_v5 = vadd.f32 %v2291_v2, %v8629_v46  ;;  %v2526_v55 = vadd.f32 %v2525_v47, %v1994_v22  ;;  %v8635_v9 = vunpack.c.l.bf16 %v8634_v56  ;;  %v8637_v16 = vunpack.c.l.bf16 %v8636_v53  ;;  %v8658_v47 = vld [vmem:[#allocation120_spill] sm:$0xff] }
 0x1a2   : > { %v2370_v54 = vadd.f32 %v2369_v4, %v8631_v44  ;;  %v2448_v27 = vadd.f32 %v2447_v50, %v8633_v3  ;;  %v2604_v7 = vadd.f32 %v2603_v42, %v2042_v40  ;;  %v2682_v48 = vadd.f32 %v2681_v17, %v2090_v28 }
 0x1a3   : > { %v2137_v26 = vadd.f32 %v2136_v29, %v8635_v9  ;;  %v2215_v36 = vadd.f32 %v2214_v31, %v8637_v16  ;;  %v8639_v6 = vunpack.c.l.bf16 %v8638_v38  ;;  %v8641_v39 = vunpack.c.l.bf16 %v8640_v63 }
 0x1a4   : > { %v8643_v57 = vunpack.c.l.bf16 %v8642_v58  ;;  %v8645_v10 = vunpack.c.l.bf16 %v8644_v43  ;;  %v8647_v21 = vunpack.c.l.bf16 %v8646_v1  ;;  %v8649_v33 = vunpack.c.l.bf16 %v8648_v51 }
 0x1a5   : > { %v2293_v12 = vadd.f32 %v2292_v5, %v8639_v6  ;;  %v2371_v32 = vadd.f32 %v2370_v54, %v8641_v39  ;;  %v2605_v40 = vadd.f32 %v2604_v7, %v2048_v19  ;;  %v2683_v28 = vadd.f32 %v2682_v48, %v2096_v0 }
 0x1a6   : > { %v2449_v18 = vadd.f32 %v2448_v27, %v8643_v57  ;;  %v2527_v22 = vadd.f32 %v2526_v55, %v8645_v10  ;;  %v2138_v45 = vadd.f32 %v2137_v26, %v8647_v21  ;;  %v2216_v23 = vadd.f32 %v2215_v36, %v8649_v33 }
 0x1a7   : > { %v8651_v61 = vunpack.c.l.bf16 %v8650_v37  ;;  %v8653_v62 = vunpack.c.l.bf16 %v8652_v59  ;;  %v8655_v34 = vunpack.c.l.bf16 %v8654_v52  ;;  %v8657_v2 = vunpack.c.l.bf16 %v8656_v41  ;;  %v2956_v52 = vld [vmem:[%s7254_s2 + $0x290] sm:$0xff] }
 0x1a8   : > { %v2139_v4 = vrot.slane %v2138_v45, 4  ;;  %v2217_v50 = vrot.slane %v2216_v23, 4  ;;  %v8659_v15 = vunpack.c.l.bf16 %v8658_v47  ;;  %v2684_v29 = vadd.f32 %v2683_v28, %v2102_v25  ;;  %v2940_v47 = vld [vmem:[%s7254_s2 + $0x210] sm:$0xff] }
 0x1a9   : > { %v2294_v60 = vadd.f32 %v2293_v12, %v8651_v61  ;;  %v2372_v30 = vadd.f32 %v2371_v32, %v8653_v62  ;;  %v2450_v8 = vadd.f32 %v2449_v18, %v8655_v34  ;;  %v2528_v14 = vadd.f32 %v2527_v22, %v8657_v2  ;;  %v2957_v34 = vld [vmem:[%s7254_s2 + $0x298] sm:$0xff]  ;;  %v8660_v2 = vld [vmem:[#allocation63_spill] sm:$0xff] }
 0x1aa   : > { %v2606_v49 = vadd.f32 %v2605_v40, %v8659_v15  ;;  %v2140_v31 = vadd.f32 %v2139_v4, %v2138_v45  ;;  %v2218_v42 = vadd.f32 %v2217_v50, %v2216_v23  ;;  %v2685_v35 = vrot.slane %v2684_v29, 4  ;;  %v8661_v4 = vld [vmem:[#allocation71_spill] sm:$0xff]  ;;  %v2941_v15 = vld [vmem:[%s7254_s2 + $0x218] sm:$0xff] }
 0x1ab   : > { %v2295_v19 = vrot.slane %v2294_v60, 4  ;;  %v2373_v0 = vrot.slane %v2372_v30, 4  ;;  %v2451_v13 = vrot.slane %v2450_v8, 4  ;;  %v2529_v11 = vrot.slane %v2528_v14, 4 }
 0x1ac   : > { %v2607_v17 = vrot.slane %v2606_v49, 4  ;;  %v2141_v54 = vrot.slane %v2140_v31, 2  ;;  %v2219_v20 = vrot.slane %v2218_v42, 2  ;;  %v2686_v27 = vadd.f32 %v2685_v35, %v2684_v29  ;;  %v6036_v29 = vld [vmem:[%s7254_s2 + $0x2a8] sm:$0xff] }
 0x1ad   : > { %v2296_v46 = vadd.f32 %v2295_v19, %v2294_v60  ;;  %v2374_v5 = vadd.f32 %v2373_v0, %v2372_v30  ;;  %v2452_v24 = vadd.f32 %v2451_v13, %v2450_v8  ;;  %v2530_v44 = vadd.f32 %v2529_v11, %v2528_v14  ;;  %v6041_v19 = vld [vmem:[%s7254_s2 + $0x220] sm:$0xff]  ;;  %v6046_v0 = vld [vmem:[%s7254_s2 + $0x228] sm:$0xff] }
 0x1ae   : > { %v2608_v3 = vadd.f32 %v2607_v17, %v2606_v49  ;;  %v2142_v26 = vadd.f32 %v2141_v54, %v2140_v31  ;;  %v2220_v53 = vadd.f32 %v2219_v20, %v2218_v42  ;;  %v2687_v36 = vrot.slane %v2686_v27, 2  ;;  %v6031_v49 = vld [vmem:[%s7254_s2 + $0x2a0] sm:$0xff]  ;;  %v8663_v31 = vld [vmem:[#allocation76_spill] sm:$0xff]  ;;  %v8664_v17 = vld [vmem:[#allocation77_spill] sm:$0xff] }
 0x1af   : > { %v2297_v55 = vrot.slane %v2296_v46, 2  ;;  %v2375_v56 = vrot.slane %v2374_v5, 2  ;;  %v2453_v9 = vrot.slane %v2452_v24, 2  ;;  %v2531_v25 = vrot.slane %v2530_v44, 2  ;;  %v8662_v13 = vld [vmem:[#allocation75_spill] sm:$0xff]  ;;  %v6065_v54 = vld [vmem:[%s7254_s2 + $0x230] sm:$0xff] }
 0x1b0   : > { %v2609_v16 = vrot.slane %v2608_v3, 2  ;;  %v2143_v12 = vrot.slane %v2142_v26, 1  ;;  %v2221_v63 = vrot.slane %v2220_v53, 1  ;;  %v2688_v32 = vadd.f32 %v2687_v36, %v2686_v27  ;;  %v6070_v20 = vld [vmem:[%s7254_s2 + $0x238] sm:$0xff]  ;;  %v6080_v27 = vld [vmem:[%s7254_s2 + $0x2c8] sm:$0xff] }
 0x1b1   : > { %v2298_v7 = vadd.f32 %v2297_v55, %v2296_v46  ;;  %v2376_v48 = vadd.f32 %v2375_v56, %v2374_v5  ;;  %v2454_v38 = vadd.f32 %v2453_v9, %v2452_v24  ;;  %v2532_v6 = vadd.f32 %v2531_v25, %v2530_v44  ;;  %v8665_v46 = vld [vmem:[#allocation84_spill] sm:$0xff]  ;;  %v6060_v44 = vld [vmem:[%s7254_s2 + $0x2b8] sm:$0xff] }
 0x1b2   : > { %v2610_v39 = vadd.f32 %v2609_v16, %v2608_v3  ;;  %v2144_v10 = vadd.f32 %v2143_v12, %v2142_v26  ;;  %v2222_v22 = vadd.f32 %v2221_v63, %v2220_v53  ;;  %v2689_v21 = vrot.slane %v2688_v32, 1  ;;  %v6055_v24 = vld [vmem:[%s7254_s2 + $0x2b0] sm:$0xff]  ;;  %v6075_v3 = vld [vmem:[%s7254_s2 + $0x2c0] sm:$0xff]  ;;  %v6092_v36 = vld [vmem:[%s7254_s2 + $0x248] sm:$0xff] }
 0x1b3   : > { %v2299_v58 = vrot.slane %v2298_v7, 1  ;;  %v2377_v57 = vrot.slane %v2376_v48, 1  ;;  %v2455_v18 = vrot.slane %v2454_v38, 1  ;;  %v2533_v43 = vrot.slane %v2532_v6, 1  ;;  %v8666_v55 = vld [vmem:[#allocation85_spill] sm:$0xff]  ;;  %v8667_v9 = vld [vmem:[#allocation86_spill] sm:$0xff] }
 0x1b4   : > { %v2611_v1 = vrot.slane %v2610_v39, 1  ;;  %v2690_v28 = vadd.f32 %v2689_v21, %v2688_v32  ;;  %v2732_v37 = vmul.f32 0.015625, %v2144_v10  ;;  %v2738_v61 = vmul.f32 0.015625, %v2222_v22  ;;  %v6087_v16 = vld [vmem:[%s7254_s2 + $0x240] sm:$0xff]  ;;  %v6131_v21 = vld [vmem:[%s3918_s27 + $0x10] sm:$0xff] }
 0x1b5   : > { %v2300_v45 = vadd.f32 %v2299_v58, %v2298_v7  ;;  %v2378_v51 = vadd.f32 %v2377_v57, %v2376_v48  ;;  %v2456_v33 = vadd.f32 %v2455_v18, %v2454_v38  ;;  %v2534_v23 = vadd.f32 %v2533_v43, %v2532_v6  ;;  %v6097_v7 = vld [vmem:[%s7254_s2 + $0x2d0] sm:$0xff]  ;;  %v6102_v48 = vld [vmem:[%s7254_s2 + $0x2d8] sm:$0xff]  ;;  %v6117_v58 = vld [vmem:[%s7254_s2 + $0x2e0] sm:$0xff] }
 0x1b6   : > { %v2612_v40 = vadd.f32 %v2611_v1, %v2610_v39  ;;  %v2774_v41 = vmul.f32 0.015625, %v2690_v28  ;;  %v2780_v14 = vsub.f32 %v8660_v2, %v2732_v37  ;;  %v2786_v50 = vsub.f32 %v8661_v4, %v2738_v61  ;;  %v6107_v38 = vld [vmem:[%s7254_s2 + $0x250] sm:$0xff]  ;;  %v6112_v6 = vld [vmem:[%s7254_s2 + $0x258] sm:$0xff]  ;;  %v6122_v57 = vld [vmem:[%s7254_s2 + $0x2e8] sm:$0xff] }
 0x1b7   : > { %v2744_v60 = vmul.f32 0.015625, %v2300_v45  ;;  %v2750_v59 = vmul.f32 0.015625, %v2378_v51  ;;  %v2756_v62 = vmul.f32 0.015625, %v2456_v33  ;;  %v2762_v30 = vmul.f32 0.015625, %v2534_v23  ;;  %v6127_v18 = vld [vmem:[%s7254_s2 + $0x260] sm:$0xff]  ;;  %v6134_v45 = vld [vmem:[%s3918_s27 + $0x28] sm:$0xff] }
 0x1b8   : > { %v2768_v8 = vmul.f32 0.015625, %v2612_v40  ;;  %v2822_v25 = vsub.f32 %v8667_v9, %v2774_v41  ;;  %v2828_v26 = vand.u32 2147483647, %v2780_v14  ;;  %v2834_v53 = vand.u32 2147483647, %v2786_v50  ;;  %v6144_v28 = vld [vmem:[%s7254_s2 + $0x268] sm:$0xff] }
 0x1b9   : > { %v2792_v11 = vsub.f32 %v8662_v13, %v2744_v60  ;;  %v2798_v42 = vsub.f32 %v8663_v31, %v2750_v59  ;;  %v2804_v35 = vsub.f32 %v8664_v17, %v2756_v62  ;;  %v2810_v5 = vsub.f32 %v8665_v46, %v2762_v30  ;;  %v6149_v37 = vld [vmem:[%s7254_s2 + $0x2f0] sm:$0xff]  ;;  %v6154_v61 = vld [vmem:[%s7254_s2 + $0x2f8] sm:$0xff]  ;;  %v6206_v31 = vld [vmem:[%s3918_s27 + $0x88] sm:$0xff] }
 0x1ba   : > { %v2816_v56 = vsub.f32 %v8666_v55, %v2768_v8  ;;  %v3575_v32 = vpack.c.bf16 %v2957_v34, %v2956_v52  ;;  %v2870_v22 = vand.u32 2147483647, %v2822_v25  ;;  %v3046_v1 = vsel %vm3025_vm0, %v2834_v53, %v2828_v26  ;;  %v6166_v52 = vld [vmem:[%s7254_s2 + $0x270] sm:$0xff]  ;;  %v6171_v34 = vld [vmem:[%s7254_s2 + $0x278] sm:$0xff]  ;;  %v6174_v8 = vld [vmem:[%s3918_s27 + $0x40] sm:$0xff]  ;;  %8668 = vst [vmem:[#allocation13_spill] sm:$0xff] %v6206_v31 }
 0x1bb   : > { %v2840_v12 = vand.u32 2147483647, %v2792_v11  ;;  %v2846_v63 = vand.u32 2147483647, %v2798_v42  ;;  %v2852_v39 = vand.u32 2147483647, %v2804_v35  ;;  %v3577_v33 = vpack.c.bf16 %v2941_v15, %v2940_v47 }
 0x1bc   : > { %v2858_v43 = vand.u32 2147483647, %v2810_v5  ;;  %v2864_v10 = vand.u32 2147483647, %v2816_v56  ;;  %3576 = vmatprep.subr.bf16.mxu0 %v3575_v32  ;;  %v3579_v23 = vpack.c.bf16 %v6036_v29, %v6031_v49  ;;  %v3581_v40 = vpack.c.bf16 %v6046_v0, %v6041_v19  ;;  %v6177_v41 = vld [vmem:[%s3918_s27 + $0xd0] sm:$0xff]  ;;  %v6187_v47 = vld [vmem:[%s3918_s27 + $0x58] sm:$0xff] }
 0x1bd   : > { %v3047_v51 = vsel %vm3027_vm1, %v2840_v12, %v3046_v1  ;;  %v3583_v59 = vpack.c.bf16 %v6060_v44, %v6055_v24  ;;  %v3585_v62 = vpack.c.bf16 %v6070_v20, %v6065_v54  ;;  %3578 = vmatpush3.bf16.msra.mxu0 %v3577_v33  ;;  %v6190_v15 = vld [vmem:[%s3918_s27 + $0x70] sm:$0xff]  ;;  %v6193_v49 = vld [vmem:[%s3918_s27 + $0xe8] sm:$0xff]  ;;  %v6196_v29 = vld [vmem:[%s3918_s27 + $0x100] sm:$0xff]  ;;  %v8694_v20 = vpack.c.bf16 %v6080_v27, %v6075_v3 }
 0x1be   : > { %v3048_v60 = vsel %vm3029_vm2, %v2846_v63, %v3047_v51  ;;  %3580 = vmatprep.subr.bf16.mxu0 %v3579_v23  ;;  %v6209_v42 = vld [vmem:[%s3918_s27 + $0xa0] sm:$0xff]  ;;  %v6212_v17 = vld [vmem:[%s3918_s27 + $0xb8] sm:$0xff]  ;;  %v6215_v35 = vld [vmem:[%s3918_s27 + $0x190] sm:$0xff] }
 0x1bf   : > { %v3049_v2 = vsel %vm3031_vm3, %v2852_v39, %v3048_v60  ;;  %8669 = vst [vmem:[#allocation14_spill] sm:$0xff] %v6209_v42  ;;  %8670 = vst [vmem:[#allocation20_spill] sm:$0xff] %v6212_v17  ;;  %v6221_v24 = vld [vmem:[%s3918_s27 + $0x118] sm:$0xff]  ;;  %v6224_v44 = vld [vmem:[%s3918_s27 + $0x130] sm:$0xff] }
 0x1c0   : > { %v3050_v19 = vsel %vm3033_vm4, %v2858_v43, %v3049_v2  ;;  %v6227_v55 = vld [vmem:[%s3918_s27 + $0x1a8] sm:$0xff]  ;;  %v6230_v56 = vld [vmem:[%s3918_s27 + $0x1c0] sm:$0xff]  ;;  %v6242_v63 = vld [vmem:[%s3918_s27 + $0x178] sm:$0xff]  ;;  %v8704_v2 = vpack.c.bf16 %v6092_v36, %v6087_v16  ;;  %v8708_v16 = vpack.c.bf16 %v6102_v48, %v6097_v7 }
 0x1c1   : > { %v3051_v46 = vsel %vm3035_vm5, %v2864_v10, %v3050_v19  ;;  %v6236_v53 = vld [vmem:[%s3918_s27 + $0x148] sm:$0xff]  ;;  %v6239_v12 = vld [vmem:[%s3918_s27 + $0x160] sm:$0xff]  ;;  %8673 = vst [vmem:[#allocation26_spill] sm:$0xff] %v6242_v63  ;;  %v6245_v39 = vld [vmem:[%s3918_s27 + $0x250] sm:$0xff]  ;;  %3582 = vmatpush3.bf16.msra.mxu0 %v3581_v40 }
 0x1c2   : > { %v3052_v26 = vsel %vm3037_vm6, %v2870_v22, %v3051_v46  ;;  %8671 = vst [vmem:[#allocation21_spill] sm:$0xff] %v6236_v53  ;;  %8672 = vst [vmem:[#allocation22_spill] sm:$0xff] %v6239_v12  ;;  %v6251_v22 = vld [vmem:[%s3918_s27 + $0x1d8] sm:$0xff]  ;;  %v6254_v1 = vld [vmem:[%s3918_s27 + $0x1f0] sm:$0xff]  ;;  %3584 = vmatprep.subr.bf16.mxu0 %v3583_v59 }
 0x1c3   : > { %3215 = vmatmul.mubr.f32.vlgmr.msra.gmra.mrb[0].mxu1 %v3052_v26  ;;  %8674 = vst [vmem:[#allocation27_spill] sm:$0xff] %v6251_v22  ;;  %8675 = vst [vmem:[#allocation34_spill] sm:$0xff] %v6254_v1  ;;  %v6257_v51 = vld [vmem:[%s3918_s27 + $0x268] sm:$0xff]  ;;  %v6260_v33 = vld [vmem:[%s3918_s27 + $0x280] sm:$0xff] }
 0x1c4   : > { %v6263_v23 = vld [vmem:[%s3918_s27 + $0x298] sm:$0xff]  ;;  %v6270_v46 = vld [vmem:[%s3918_s27 + $0x208] sm:$0xff]  ;;  %v6273_v26 = vld [vmem:[%s3918_s27 + $0x220] sm:$0xff] }
 0x1c5   : > { %8676 = vst [vmem:[#allocation35_spill] sm:$0xff] %v6270_v46  ;;  %8677 = vst [vmem:[#allocation36_spill] sm:$0xff] %v6273_v26  ;;  %v6276_v10 = vld [vmem:[%s3918_s27 + $0x238] sm:$0xff]  ;;  %v6279_v5 = vld [vmem:[%s3918_s27 + $0x310] sm:$0xff]  ;;  %3586 = vmatpush3.bf16.msra.mxu0 %v3585_v62 }
 0x1c6   : > { %8678 = vst [vmem:[#allocation37_spill] sm:$0xff] %v6276_v10  ;;  %8679 = vst [vmem:[#allocation38_spill] sm:$0xff] %v6279_v5  ;;  %v6286_v43 = vld [vmem:[%s3918_s27 + $0x2b0] sm:$0xff]  ;;  %v6289_v11 = vld [vmem:[%s3918_s27 + $0x2c8] sm:$0xff]  ;;  %3588 = vmatprep.subr.bf16.mxu0 %v8694_v20  ;;  %v671_v59 = vunpack.c.h.bf16 %v6279_v5 }
 0x1c7   : > { %8680 = vst [vmem:[#allocation44_spill] sm:$0xff] %v6286_v43  ;;  %8681 = vst [vmem:[#allocation45_spill] sm:$0xff] %v6289_v11  ;;  %v6292_v32 = vld [vmem:[%s3918_s27 + $0x328] sm:$0xff]  ;;  %v6295_v13 = vld [vmem:[%s3918_s27 + $0x340] sm:$0xff] }
 0x1c8   : > { %8682 = vst [vmem:[#allocation46_spill] sm:$0xff] %v6292_v32  ;;  %8683 = vst [vmem:[#allocation47_spill] sm:$0xff] %v6295_v13  ;;  %v6298_v19 = vld [vmem:[%s3918_s27 + $0x358] sm:$0xff]  ;;  %v6301_v60 = vld [vmem:[%s3918_s27 + $0x370] sm:$0xff]  ;;  %v677_v46 = vunpack.c.h.bf16 %v6292_v32  ;;  %v683_v53 = vunpack.c.h.bf16 %v6295_v13 }
 0x1c9   : > { %8684 = vst [vmem:[#allocation48_spill] sm:$0xff] %v6298_v19  ;;  %8685 = vst [vmem:[#allocation53_spill] sm:$0xff] %v6301_v60  ;;  %v6308_v9 = vld [vmem:[%s3918_s27 + $0x2e0] sm:$0xff]  ;;  %v6311_v0 = vld [vmem:[%s3918_s27 + $0x2f8] sm:$0xff]  ;;  %3590 = vmatpush3.bf16.msra.mxu0 %v8704_v2 }
 0x1ca   : > { %8686 = vst [vmem:[#allocation54_spill] sm:$0xff] %v6308_v9  ;;  %8687 = vst [vmem:[#allocation55_spill] sm:$0xff] %v6311_v0  ;;  %v6314_v50 = vld [vmem:[%s3918_s27 + $0x388] sm:$0xff]  ;;  %v6317_v4 = vld [vmem:[%s3918_s27 + $0x3d0] sm:$0xff]  ;;  %3592 = vmatprep.subr.bf16.mxu0 %v8708_v16 }
 0x1cb   : > { %8688 = vst [vmem:[#allocation56_spill] sm:$0xff] %v6314_v50  ;;  %8689 = vst [vmem:[#allocation57_spill] sm:$0xff] %v6317_v4  ;;  %v6327_v25 = vld [vmem:[%s3918_s27 + $0x3a0] sm:$0xff]  ;;  %v6330_v30 = vld [vmem:[%s3918_s27 + $0x3b8] sm:$0xff]  ;;  %v719_v26 = vunpack.c.h.bf16 %v6317_v4 }
 0x1cc   : > { %8690 = vst [vmem:[#allocation3_spill] sm:$0xff] %v6327_v25  ;;  %8691 = vst [vmem:[#allocation6_spill] sm:$0xff] %v6330_v30  ;;  %v6333_v63 = vld [vmem:[%s3918_s27 + $0x3e8] sm:$0xff]  ;;  %v6336_v14 = vld [vmem:[%s3918_s27 + $0x400] sm:$0xff]  ;;  %v8718_v25 = vpack.c.bf16 %v6112_v6, %v6107_v38 }
 0x1cd   : > { %8692 = vst [vmem:[#allocation15_spill] sm:$0xff] %v6333_v63  ;;  %8693 = vst [vmem:[#allocation23_spill] sm:$0xff] %v6336_v14  ;;  %v6346_v62 = vld [vmem:[%s3918_s27 + $0x418] sm:$0xff]  ;;  %v6349_v17 = vld [vmem:[%s3918_s27 + $0x430] sm:$0xff]  ;;  %v725_v32 = vunpack.c.h.bf16 %v6333_v63  ;;  %v731_v13 = vunpack.c.h.bf16 %v6336_v14 }
 0x1ce   : > { %8695 = vst [vmem:[#allocation31_spill] sm:$0xff] %v6346_v62  ;;  %8696 = vst [vmem:[#allocation58_spill] sm:$0xff] %v6349_v17  ;;  %v6352_v12 = vld [vmem:[%s3918_s27 + $0x448] sm:$0xff]  ;;  %v6359_v3 = vld [vmem:[%s3918_s27 + $0x460] sm:$0xff]  ;;  %v737_v10 = vunpack.c.h.bf16 %v6346_v62  ;;  %v743_v4 = vunpack.c.h.bf16 %v6349_v17  ;;  %3594 = vmatpush3.bf16.msra.mxu0 %v8718_v25 }
 0x1cf   : > { %8697 = vst [vmem:[#allocation8_spill] sm:$0xff] %v6352_v12  ;;  %8698 = vst [vmem:[#allocation16_spill] sm:$0xff] %v6359_v3  ;;  %v6362_v27 = vld [vmem:[%s3918_s27 + $0x478] sm:$0xff]  ;;  %v6365_v20 = vld [vmem:[%s3918_s27 + $0x490] sm:$0xff] }
 0x1d0   : > { %8699 = vst [vmem:[#allocation32_spill] sm:$0xff] %v6362_v27  ;;  %8700 = vst [vmem:[#allocation61_spill] sm:$0xff] %v6365_v20  ;;  %v6372_v40 = vld [vmem:[%s3918_s27 + $0x4a8] sm:$0xff]  ;;  %v6375_v54 = vld [vmem:[%s3918_s27 + $0x4c0] sm:$0xff]  ;;  %v767_v63 = vunpack.c.h.bf16 %v6365_v20 }
 0x1d1   : > { %8701 = vst [vmem:[#allocation40_spill] sm:$0xff] %v6372_v40  ;;  %8702 = vst [vmem:[#allocation9_spill] sm:$0xff] %v6375_v54  ;;  %v6378_v42 = vld [vmem:[%s3918_s27 + $0x4d8] sm:$0xff]  ;;  %v6388_v5 = vld [vmem:[%s3918_s27 + $0x4f0] sm:$0xff]  ;;  %v773_v17 = vunpack.c.h.bf16 %v6372_v40  ;;  %v779_v60 = vunpack.c.h.bf16 %v6375_v54  ;;  %v8719_v40 = vpack.c.bf16 %v6122_v57, %v6117_v58  ;;  %v8722_v57 = vunpack.c.h.bf16 %v6177_v41 }
 0x1d2   : > { %8703 = vst [vmem:[#allocation17_spill] sm:$0xff] %v6378_v42  ;;  %8705 = vst [vmem:[#allocation25_spill] sm:$0xff] %v6388_v5  ;;  %v6391_v0 = vld [vmem:[%s3918_s27 + $0x508] sm:$0xff]  ;;  %v6394_v9 = vld [vmem:[%s3918_s27 + $0x520] sm:$0xff]  ;;  %v785_v43 = vunpack.c.h.bf16 %v6378_v42  ;;  %v791_v16 = vunpack.c.h.bf16 %v6388_v5 }
 0x1d3   : > { %8706 = vst [vmem:[#allocation33_spill] sm:$0xff] %v6391_v0  ;;  %8707 = vst [vmem:[#allocation41_spill] sm:$0xff] %v6394_v9  ;;  %v6404_v36 = vld [vmem:[%s3918_s27 + $0x538] sm:$0xff]  ;;  %v6407_v2 = vld [vmem:[%s3918_s27 + $0x550] sm:$0xff]  ;;  %v797_v50 = vunpack.c.h.bf16 %v6391_v0  ;;  %v803_v20 = vunpack.c.h.bf16 %v6394_v9  ;;  %3596 = vmatprep.subr.bf16.mxu0 %v8719_v40  ;;  %v8721_v9 = vunpack.c.h.bf16 %v6134_v45  ;;  %v8723_v40 = vunpack.c.h.bf16 %v6193_v49 }
 0x1d4   : > { %8709 = vst [vmem:[#allocation28_spill] sm:$0xff] %v6404_v36  ;;  %8710 = vst [vmem:[#allocation39_spill] sm:$0xff] %v6407_v2  ;;  %v6410_v11 = vld [vmem:[%s3918_s27 + $0x568] sm:$0xff]  ;;  %v6417_v30 = vld [vmem:[%s3918_s27 + $0x580] sm:$0xff]  ;;  %v815_v3 = vunpack.c.h.bf16 %v6407_v2  ;;  %v8720_v2 = vunpack.c.h.bf16 %v6131_v21  ;;  %v1235_v0 = vadd.f32 %v677_v46, %v671_v59  ;;  %v8728_v21 = vpack.c.bf16 %v6144_v28, %v6127_v18 }
 0x1d5   : > { %8711 = vst [vmem:[#allocation50_spill] sm:$0xff] %v6410_v11  ;;  %8712 = vst [vmem:[#allocation11_spill] sm:$0xff] %v6417_v30  ;;  %v6420_v7 = vld [vmem:[%s3918_s27 + $0x598] sm:$0xff]  ;;  %v6423_v48 = vld [vmem:[%s3918_s27 + $0x5b0] sm:$0xff]  ;;  %v821_v42 = vunpack.c.h.bf16 %v6410_v11  ;;  %v827_v5 = vunpack.c.h.bf16 %v6417_v30  ;;  %v1001_v30 = vadd.f32 %v8723_v40, %v8722_v57  ;;  %v8729_v45 = vunpack.c.h.bf16 %v6174_v8 }
 0x1d6   : > { %8713 = vst [vmem:[#allocation18_spill] sm:$0xff] %v6420_v7  ;;  %8714 = vst [vmem:[#allocation29_spill] sm:$0xff] %v6423_v48  ;;  %v6430_v31 = vld [vmem:[%s3918_s27 + $0x5c8] sm:$0xff]  ;;  %v6433_v14 = vld [vmem:[%s3918_s27 + $0x5e0] sm:$0xff]  ;;  %v833_v54 = vunpack.c.h.bf16 %v6420_v7  ;;  %v839_v38 = vunpack.c.h.bf16 %v6423_v48  ;;  %v923_v58 = vadd.f32 %v8721_v9, %v8720_v2  ;;  %v8724_v7 = vunpack.c.h.bf16 %v6215_v35  ;;  %3598 = vmatpush3.bf16.msra.mxu0 %v8728_v21 }
 0x1d7   : > { %8715 = vst [vmem:[#allocation42_spill] sm:$0xff] %v6430_v31  ;;  %8716 = vst [vmem:[#allocation51_spill] sm:$0xff] %v6433_v14  ;;  %v6436_v62 = vld [vmem:[%s3918_s27 + $0x5f8] sm:$0xff]  ;;  %v845_v6 = vunpack.c.h.bf16 %v6430_v31  ;;  %v851_v25 = vunpack.c.h.bf16 %v6433_v14  ;;  %v8725_v48 = vunpack.c.h.bf16 %v6227_v55  ;;  %v8726_v31 = vunpack.c.h.bf16 %v6245_v39 }
 0x1d8   : > { %8717 = vst [vmem:[#allocation4_spill] sm:$0xff] %v6436_v62  ;;  %v857_v27 = vunpack.c.h.bf16 %v6436_v62  ;;  %v8727_v14 = vunpack.c.h.bf16 %v6257_v51  ;;  %v924_v41 = vadd.f32 %v923_v58, %v8729_v45  ;;  %v1313_v49 = vadd.f32 %v725_v32, %v719_v26 }
 0x1d9   : > { %v1079_v11 = vadd.f32 %v8725_v48, %v8724_v7  ;;  %v1391_v9 = vadd.f32 %v773_v17, %v767_v63  ;;  %v1469_v2 = vadd.f32 %v821_v42, %v815_v3  ;;  %v8730_v35 = vpack.c.bf16 %v6154_v61, %v6149_v37  ;;  %v8745_v48 = vld [vmem:[#allocation53_spill] sm:$0xff] }
 0x1da   : > { %v1157_v62 = vadd.f32 %v8727_v14, %v8726_v31  ;;  %v8731_v55 = vunpack.c.h.bf16 %v6196_v29  ;;  %v8732_v14 = vunpack.c.h.bf16 %v6230_v56  ;;  %v8733_v51 = vunpack.c.h.bf16 %v6260_v33 }
 0x1db   : > { %3600 = vmatprep.subr.bf16.mxu0 %v8730_v35  ;;  %v1236_v28 = vadd.f32 %v1235_v0, %v683_v53  ;;  %v8734_v8 = vunpack.c.h.bf16 %v6187_v47  ;;  %v1314_v32 = vadd.f32 %v1313_v49, %v731_v13  ;;  %v1392_v17 = vadd.f32 %v1391_v9, %v779_v60  ;;  %v8753_v9 = vld [vmem:[#allocation45_spill] sm:$0xff] }
 0x1dc   : > { %v1002_v39 = vadd.f32 %v1001_v30, %v8731_v55  ;;  %v1080_v31 = vadd.f32 %v1079_v11, %v8732_v14  ;;  %v1158_v18 = vadd.f32 %v1157_v62, %v8733_v51  ;;  %v1470_v42 = vadd.f32 %v1469_v2, %v827_v5  ;;  %v8743_v62 = vld [vmem:[#allocation44_spill] sm:$0xff] }
 0x1dd   : > { %v925_v46 = vadd.f32 %v924_v41, %v8734_v8  ;;  %v8735_v63 = vunpack.c.h.bf16 %v6221_v24  ;;  %v8736_v61 = vunpack.c.h.bf16 %v6251_v22  ;;  %v8737_v30 = vunpack.c.h.bf16 %v6263_v23  ;;  %v8755_v55 = vld [vmem:[#allocation56_spill] sm:$0xff]  ;;  %v8760_v8 = vld [vmem:[#allocation22_spill] sm:$0xff] }
 0x1de   : > { %v8738_v11 = vunpack.c.h.bf16 %v6298_v19  ;;  %v8739_v0 = vpack.c.bf16 %v6171_v34, %v6166_v52  ;;  %v8740_v47 = vunpack.c.h.bf16 %v6190_v15  ;;  %v1315_v5 = vadd.f32 %v1314_v32, %v737_v10  ;;  %v8747_v52 = vld [vmem:[#allocation13_spill] sm:$0xff] }
 0x1df   : > { %v1003_v37 = vadd.f32 %v1002_v39, %v8735_v63  ;;  %v1081_v29 = vadd.f32 %v1080_v31, %v8736_v61  ;;  %v1159_v56 = vadd.f32 %v1158_v18, %v8737_v30  ;;  %v1393_v53 = vadd.f32 %v1392_v17, %v785_v43  ;;  %v8749_v43 = vld [vmem:[#allocation21_spill] sm:$0xff]  ;;  %v8757_v31 = vld [vmem:[#allocation14_spill] sm:$0xff]  ;;  %v8762_v17 = vld [vmem:[#allocation36_spill] sm:$0xff] }
 0x1e0   : > { %v1237_v33 = vadd.f32 %v1236_v28, %v8738_v11  ;;  %3602 = vmatpush3.bf16.msra.mxu0 %v8739_v0  ;;  %v926_v13 = vadd.f32 %v925_v46, %v8740_v47  ;;  %v1471_v24 = vadd.f32 %v1470_v42, %v833_v54  ;;  %v8741_v60 = vunpack.c.h.bf16 %v6224_v44  ;;  %v8751_v44 = vld [vmem:[#allocation35_spill] sm:$0xff]  ;;  %v6701_v19 = vld [vmem:[%s4278_s14 + $0x3b8] sm:$0xff]  ;;  %v6740_v22 = vld [vmem:[%s4278_s14 + $0x490] sm:$0xff] }
 0x1e1   : > { %v8742_v59 = vunpack.c.h.bf16 %v6254_v1  ;;  %v8744_v3 = vunpack.c.h.bf16 %v8743_v62  ;;  %v8746_v58 = vunpack.c.h.bf16 %v8745_v48  ;;  %v8748_v34 = vunpack.c.h.bf16 %v8747_v52  ;;  %v8766_v30 = vld [vmem:[#allocation3_spill] sm:$0xff]  ;;  %v8778_v52 = vld [vmem:[#allocation6_spill] sm:$0xff]  ;;  %8830 = vst [vmem:[#allocation91_spill] sm:$0xff] %v6701_v19  ;;  %8839 = vst [vmem:[#allocation119_spill] sm:$0xff] %v6740_v22 }
 0x1e2   : > { %v1004_v26 = vadd.f32 %v1003_v37, %v8741_v60  ;;  %v1316_v15 = vadd.f32 %v1315_v5, %v743_v4  ;;  %v1394_v21 = vadd.f32 %v1393_v53, %v791_v16  ;;  %v1472_v10 = vadd.f32 %v1471_v24, %v839_v38  ;;  %v8764_v37 = vld [vmem:[#allocation54_spill] sm:$0xff]  ;;  %v6747_v1 = vld [vmem:[%s4278_s14 + $0x4a8] sm:$0xff] }
 0x1e3   : > { %v1082_v23 = vadd.f32 %v1081_v29, %v8742_v59  ;;  %v1160_v7 = vadd.f32 %v1159_v56, %v8744_v3  ;;  %v1238_v57 = vadd.f32 %v1237_v33, %v8746_v58  ;;  %v927_v40 = vadd.f32 %v926_v13, %v8748_v34  ;;  %v8768_v33 = vld [vmem:[#allocation20_spill] sm:$0xff]  ;;  %v8772_v24 = vld [vmem:[#allocation26_spill] sm:$0xff]  ;;  %v8774_v59 = vld [vmem:[#allocation37_spill] sm:$0xff]  ;;  %8840 = vst [vmem:[#allocation127_spill] sm:$0xff] %v6747_v1 }
 0x1e4   : > { %v8750_v54 = vunpack.c.h.bf16 %v8749_v43  ;;  %v8752_v41 = vunpack.c.h.bf16 %v8751_v44  ;;  %v8754_v2 = vunpack.c.h.bf16 %v8753_v9  ;;  %v8756_v39 = vunpack.c.h.bf16 %v8755_v55  ;;  %v8770_v13 = vld [vmem:[#allocation16_spill] sm:$0xff]  ;;  %v6698_v48 = vld [vmem:[%s4278_s14 + $0x3a0] sm:$0xff]  ;;  %v6737_v55 = vld [vmem:[%s4278_s14 + $0x478] sm:$0xff] }
 0x1e5   : > { %v8758_v51 = vunpack.c.h.bf16 %v8757_v31  ;;  %v8759_v28 = vunpack.c.h.bf16 %v6352_v12  ;;  %v1395_v16 = vadd.f32 %v1394_v21, %v797_v50  ;;  %v1473_v38 = vadd.f32 %v1472_v10, %v845_v6  ;;  %v8780_v21 = vld [vmem:[#allocation32_spill] sm:$0xff]  ;;  %v6682_v12 = vld [vmem:[%s4278_s14 + $0x340] sm:$0xff]  ;;  %8829 = vst [vmem:[#allocation90_spill] sm:$0xff] %v6698_v48  ;;  %8838 = vst [vmem:[#allocation115_spill] sm:$0xff] %v6737_v55 }
 0x1e6   : > { %v1005_v45 = vadd.f32 %v1004_v26, %v8750_v54  ;;  %v1083_v49 = vadd.f32 %v1082_v23, %v8752_v41  ;;  %v1161_v35 = vadd.f32 %v1160_v7, %v8754_v2  ;;  %v1239_v14 = vadd.f32 %v1238_v57, %v8756_v39  ;;  %v8776_v7 = vld [vmem:[#allocation55_spill] sm:$0xff]  ;;  %8825 = vst [vmem:[#allocation93_spill] sm:$0xff] %v6682_v12  ;;  %v6753_v43 = vld [vmem:[%s4278_s14 + $0x4d8] sm:$0xff] }
 0x1e7   : > { %v928_v18 = vadd.f32 %v927_v40, %v8758_v51  ;;  %v1317_v4 = vadd.f32 %v1316_v15, %v8759_v28  ;;  %v8761_v46 = vunpack.c.h.bf16 %v8760_v8  ;;  %v8763_v42 = vunpack.c.h.bf16 %v8762_v17  ;;  %v6714_v9 = vld [vmem:[%s4278_s14 + $0x400] sm:$0xff]  ;;  %v6727_v17 = vld [vmem:[%s4278_s14 + $0x448] sm:$0xff]  ;;  %8842 = vst [vmem:[#allocation105_spill] sm:$0xff] %v6753_v43  ;;  %v6760_v8 = vld [vmem:[%s4278_s14 + $0x4f0] sm:$0xff] }
 0x1e8   : > { %v8765_v61 = vunpack.c.h.bf16 %v8764_v37  ;;  %v8767_v56 = vunpack.c.h.bf16 %v8766_v30  ;;  %v8769_v0 = vunpack.c.h.bf16 %v8768_v33  ;;  %v8771_v5 = vunpack.c.h.bf16 %v8770_v13  ;;  %v6688_v30 = vld [vmem:[%s4278_s14 + $0x370] sm:$0xff]  ;;  %8833 = vst [vmem:[#allocation98_spill] sm:$0xff] %v6714_v9  ;;  %v6721_v37 = vld [vmem:[%s4278_s14 + $0x418] sm:$0xff]  ;;  %8836 = vst [vmem:[#allocation68_spill] sm:$0xff] %v6727_v17 }
 0x1e9   : > { %v1006_v32 = vadd.f32 %v1005_v45, %v8761_v46  ;;  %v1084_v63 = vadd.f32 %v1083_v49, %v8763_v42  ;;  %v1396_v50 = vadd.f32 %v1395_v16, %v803_v20  ;;  %v1474_v6 = vadd.f32 %v1473_v38, %v851_v25  ;;  %8827 = vst [vmem:[#allocation112_spill] sm:$0xff] %v6688_v30  ;;  %v6708_v13 = vld [vmem:[%s4278_s14 + $0x3d0] sm:$0xff]  ;;  %v6789_v19 = vld [vmem:[%s4278_s14 + $0x598] sm:$0xff] }
 0x1ea   : > { %v1162_v29 = vadd.f32 %v1161_v35, %v8765_v61  ;;  %v1240_v11 = vadd.f32 %v1239_v14, %v8767_v56  ;;  %v929_v47 = vadd.f32 %v928_v18, %v8769_v0  ;;  %v1318_v53 = vadd.f32 %v1317_v4, %v8771_v5  ;;  %8831 = vst [vmem:[#allocation96_spill] sm:$0xff] %v6708_v13 }
 0x1eb   : > { %v8773_v60 = vunpack.c.h.bf16 %v8772_v24  ;;  %v8775_v23 = vunpack.c.h.bf16 %v8774_v59  ;;  %v8777_v58 = vunpack.c.h.bf16 %v8776_v7  ;;  %v8779_v34 = vunpack.c.h.bf16 %v8778_v52  ;;  %v6685_v52 = vld [vmem:[%s4278_s14 + $0x358] sm:$0xff]  ;;  %8834 = vst [vmem:[#allocation7_spill] sm:$0xff] %v6721_v37  ;;  %v6734_v59 = vld [vmem:[%s4278_s14 + $0x460] sm:$0xff]  ;;  %8843 = vst [vmem:[#allocation116_spill] sm:$0xff] %v6760_v8 }
 0x1ec   : > { %v930_v15 = vrot.slane %v929_v47, 4  ;;  %v8781_v10 = vunpack.c.h.bf16 %v8780_v21  ;;  %v8782_v45 = vunpack.c.h.bf16 %v6404_v36  ;;  %v1475_v25 = vadd.f32 %v1474_v6, %v857_v27  ;;  %v6669_v36 = vld [vmem:[%s4278_s14 + $0x2f8] sm:$0xff]  ;;  %v6672_v21 = vld [vmem:[%s4278_s14 + $0x310] sm:$0xff]  ;;  %8826 = vst [vmem:[#allocation104_spill] sm:$0xff] %v6685_v52  ;;  %8837 = vst [vmem:[#allocation101_spill] sm:$0xff] %v6734_v59 }
 0x1ed   : > { %v1007_v26 = vadd.f32 %v1006_v32, %v8773_v60  ;;  %v1085_v3 = vadd.f32 %v1084_v63, %v8775_v23  ;;  %v1163_v57 = vadd.f32 %v1162_v29, %v8777_v58  ;;  %v1241_v40 = vadd.f32 %v1240_v11, %v8779_v34  ;;  %8822 = vst [vmem:[#allocation111_spill] sm:$0xff] %v6669_v36  ;;  %v6750_v7 = vld [vmem:[%s4278_s14 + $0x4c0] sm:$0xff] }
 0x1ee   : > { %v1319_v54 = vadd.f32 %v1318_v53, %v8781_v10  ;;  %v1397_v20 = vadd.f32 %v1396_v50, %v8782_v45  ;;  %v931_v39 = vadd.f32 %v930_v15, %v929_v47  ;;  %v1476_v51 = vrot.slane %v1475_v25, 4  ;;  %8823 = vst [vmem:[#allocation74_spill] sm:$0xff] %v6672_v21  ;;  %8841 = vst [vmem:[#allocation78_spill] sm:$0xff] %v6750_v7 }
 0x1ef   : > { %v1008_v41 = vrot.slane %v1007_v26, 4  ;;  %v1086_v49 = vrot.slane %v1085_v3, 4  ;;  %v1164_v2 = vrot.slane %v1163_v57, 4  ;;  %v1242_v35 = vrot.slane %v1241_v40, 4  ;;  %8850 = vst [vmem:[#allocation126_spill] sm:$0xff] %v6789_v19 }
 0x1f0   : > { %v1320_v14 = vrot.slane %v1319_v54, 4  ;;  %v1398_v31 = vrot.slane %v1397_v20, 4  ;;  %v932_v38 = vrot.slane %v931_v39, 2  ;;  %v1477_v42 = vadd.f32 %v1476_v51, %v1475_v25  ;;  %v6557_v25 = vld [vmem:[%s4278_s14 + $0x40] sm:$0xff]  ;;  %v6569_v51 = vld [vmem:[%s4278_s14 + $0xd0] sm:$0xff] }
 0x1f1   : > { %v1009_v18 = vadd.f32 %v1008_v41, %v1007_v26  ;;  %v1087_v28 = vadd.f32 %v1086_v49, %v1085_v3  ;;  %v1165_v4 = vadd.f32 %v1164_v2, %v1163_v57  ;;  %v1243_v16 = vadd.f32 %v1242_v35, %v1241_v40  ;;  %v6551_v40 = vld [vmem:[%s4278_s14 + $0x10] sm:$0xff]  ;;  %8785 = vst [vmem:[#allocation30_spill] sm:$0xff] %v6557_v25  ;;  %v6560_v41 = vld [vmem:[%s4278_s14 + $0x58] sm:$0xff] }
 0x1f2   : > { %v1321_v46 = vadd.f32 %v1320_v14, %v1319_v54  ;;  %v1399_v32 = vadd.f32 %v1398_v31, %v1397_v20  ;;  %v933_v56 = vadd.f32 %v932_v38, %v931_v39  ;;  %v1478_v0 = vrot.slane %v1477_v42, 2  ;;  %8783 = vst [vmem:[#allocation12_spill] sm:$0xff] %v6551_v40  ;;  %v6554_v20 = vld [vmem:[%s4278_s14 + $0x28] sm:$0xff]  ;;  %8786 = vst [vmem:[#allocation43_spill] sm:$0xff] %v6560_v41  ;;  %v6563_v14 = vld [vmem:[%s4278_s14 + $0x70] sm:$0xff] }
 0x1f3   : > { %v1010_v63 = vrot.slane %v1009_v18, 2  ;;  %v1088_v61 = vrot.slane %v1087_v28, 2  ;;  %v1166_v29 = vrot.slane %v1165_v4, 2  ;;  %v1244_v27 = vrot.slane %v1243_v16, 2  ;;  %8784 = vst [vmem:[#allocation19_spill] sm:$0xff] %v6554_v20  ;;  %8787 = vst [vmem:[#allocation52_spill] sm:$0xff] %v6563_v14 }
 0x1f4   : > { %v1322_v11 = vrot.slane %v1321_v46, 2  ;;  %v1400_v33 = vrot.slane %v1399_v32, 2  ;;  %v934_v6 = vrot.slane %v933_v56, 1  ;;  %v1479_v23 = vadd.f32 %v1478_v0, %v1477_v42  ;;  %v6566_v31 = vld [vmem:[%s4278_s14 + $0x88] sm:$0xff]  ;;  %8789 = vst [vmem:[#allocation24_spill] sm:$0xff] %v6569_v51  ;;  %v6574_v38 = vld [vmem:[%s4278_s14 + $0xa0] sm:$0xff] }
 0x1f5   : > { %v1011_v47 = vadd.f32 %v1010_v63, %v1009_v18  ;;  %v1089_v5 = vadd.f32 %v1088_v61, %v1087_v28  ;;  %v1167_v53 = vadd.f32 %v1166_v29, %v1165_v4  ;;  %v1245_v50 = vadd.f32 %v1244_v27, %v1243_v16  ;;  %8788 = vst [vmem:[#allocation5_spill] sm:$0xff] %v6566_v31  ;;  %v6583_v42 = vld [vmem:[%s4278_s14 + $0x118] sm:$0xff]  ;;  %v6586_v63 = vld [vmem:[%s4278_s14 + $0x130] sm:$0xff]  ;;  %v6603_v0 = vld [vmem:[%s4278_s14 + $0x160] sm:$0xff] }
 0x1f6   : > { %v1323_v60 = vadd.f32 %v1322_v11, %v1321_v46  ;;  %v1401_v26 = vadd.f32 %v1400_v33, %v1399_v32  ;;  %v935_v15 = vadd.f32 %v934_v6, %v933_v56  ;;  %v1480_v45 = vrot.slane %v1479_v23, 1  ;;  %8791 = vst [vmem:[#allocation59_spill] sm:$0xff] %v6574_v38  ;;  %v6577_v46 = vld [vmem:[%s4278_s14 + $0xe8] sm:$0xff]  ;;  %v6580_v32 = vld [vmem:[%s4278_s14 + $0x100] sm:$0xff]  ;;  %8794 = vst [vmem:[#allocation67_spill] sm:$0xff] %v6583_v42 }
 0x1f7   : > { %v1012_v3 = vrot.slane %v1011_v47, 1  ;;  %v1090_v58 = vrot.slane %v1089_v5, 1  ;;  %v1168_v57 = vrot.slane %v1167_v53, 1  ;;  %v1246_v34 = vrot.slane %v1245_v50, 1  ;;  %8792 = vst [vmem:[#allocation60_spill] sm:$0xff] %v6577_v46  ;;  %8793 = vst [vmem:[#allocation64_spill] sm:$0xff] %v6580_v32 }
 0x1f8   : > { %v1324_v10 = vrot.slane %v1323_v60, 1  ;;  %v1402_v54 = vrot.slane %v1401_v26, 1  ;;  %v1481_v4 = vadd.f32 %v1480_v45, %v1479_v23  ;;  %v6571_v16 = vmul.f32 0.015625, %v935_v15  ;;  %8795 = vst [vmem:[#allocation62_spill] sm:$0xff] %v6586_v63  ;;  %v6597_v11 = vld [vmem:[%s4278_s14 + $0xb8] sm:$0xff]  ;;  %v6600_v33 = vld [vmem:[%s4278_s14 + $0x148] sm:$0xff] }
 0x1f9   : > { %v1013_v49 = vadd.f32 %v1012_v3, %v1011_v47  ;;  %v1091_v2 = vadd.f32 %v1090_v58, %v1089_v5  ;;  %v1169_v35 = vadd.f32 %v1168_v57, %v1167_v53  ;;  %v1247_v39 = vadd.f32 %v1246_v34, %v1245_v50  ;;  %8800 = vst [vmem:[#allocation83_spill] sm:$0xff] %v6597_v11  ;;  %v6606_v47 = vld [vmem:[%s4278_s14 + $0x190] sm:$0xff]  ;;  %v6615_v6 = vld [vmem:[%s4278_s14 + $0x178] sm:$0xff]  ;;  %v6631_v57 = vld [vmem:[%s4278_s14 + $0x208] sm:$0xff] }
 0x1fa   : > { %v1325_v18 = vadd.f32 %v1324_v10, %v1323_v60  ;;  %v1403_v28 = vadd.f32 %v1402_v54, %v1401_v26  ;;  %8790 = vst [vmem:[#allocation49_spill] sm:$0xff] %v6571_v16  ;;  %8801 = vst [vmem:[#allocation95_spill] sm:$0xff] %v6600_v33  ;;  %v6612_v50 = vmul.f32 0.015625, %v1481_v4  ;;  %v6618_v60 = vld [vmem:[%s4278_s14 + $0x1a8] sm:$0xff]  ;;  %v6621_v26 = vld [vmem:[%s4278_s14 + $0x1c0] sm:$0xff]  ;;  %v1919_v62 = vunpack.c.h.bf16 %v6672_v21 }
 0x1fb   : > { %v6588_v61 = vmul.f32 0.015625, %v1013_v49  ;;  %v6590_v29 = vmul.f32 0.015625, %v1091_v2  ;;  %v6592_v27 = vmul.f32 0.015625, %v1169_v35  ;;  %v6594_v56 = vmul.f32 0.015625, %v1247_v39  ;;  %8802 = vst [vmem:[#allocation99_spill] sm:$0xff] %v6603_v0  ;;  %8803 = vst [vmem:[#allocation100_spill] sm:$0xff] %v6606_v47 }
 0x1fc   : > { %v6608_v5 = vmul.f32 0.015625, %v1325_v18  ;;  %v6610_v53 = vmul.f32 0.015625, %v1403_v28  ;;  %8806 = vst [vmem:[#allocation109_spill] sm:$0xff] %v6612_v50  ;;  %8807 = vst [vmem:[#allocation110_spill] sm:$0xff] %v6615_v6  ;;  %v6624_v23 = vld [vmem:[%s4278_s14 + $0x1d8] sm:$0xff]  ;;  %v6627_v3 = vld [vmem:[%s4278_s14 + $0x1f0] sm:$0xff]  ;;  %v1937_v24 = vunpack.c.h.bf16 %v6685_v52  ;;  %v1967_v52 = vunpack.c.h.bf16 %v6708_v13 }
 0x1fd   : > { %8796 = vst [vmem:[#allocation69_spill] sm:$0xff] %v6588_v61  ;;  %8797 = vst [vmem:[#allocation70_spill] sm:$0xff] %v6590_v29  ;;  %v6634_v34 = vld [vmem:[%s4278_s14 + $0x220] sm:$0xff]  ;;  %v6637_v15 = vld [vmem:[%s4278_s14 + $0x238] sm:$0xff]  ;;  %v1979_v16 = vunpack.c.h.bf16 %v6714_v9  ;;  %v1997_v36 = vunpack.c.h.bf16 %v6727_v17  ;;  %v2027_v48 = vunpack.c.h.bf16 %v6750_v7  ;;  %v2039_v17 = vunpack.c.h.bf16 %v6760_v8 }
 0x1fe   : > { %8798 = vst [vmem:[#allocation87_spill] sm:$0xff] %v6592_v27  ;;  %8799 = vst [vmem:[#allocation94_spill] sm:$0xff] %v6594_v56  ;;  %v6640_v10 = vld [vmem:[%s4278_s14 + $0x250] sm:$0xff]  ;;  %v6647_v35 = vld [vmem:[%s4278_s14 + $0x268] sm:$0xff]  ;;  %v1985_v56 = vunpack.c.h.bf16 %v6721_v37 }
 0x1ff   : > { %8804 = vst [vmem:[#allocation108_spill] sm:$0xff] %v6608_v5  ;;  %8805 = vst [vmem:[#allocation107_spill] sm:$0xff] %v6610_v53  ;;  %v6650_v39 = vld [vmem:[%s4278_s14 + $0x280] sm:$0xff]  ;;  %v6653_v18 = vld [vmem:[%s4278_s14 + $0x298] sm:$0xff]  ;;  %v1877_v44 = vunpack.c.h.bf16 %v6647_v35  ;;  %v1931_v53 = vunpack.c.h.bf16 %v6682_v12 }
 0x200   : > { %8808 = vst [vmem:[#allocation113_spill] sm:$0xff] %v6618_v60  ;;  %8809 = vst [vmem:[#allocation114_spill] sm:$0xff] %v6621_v26  ;;  %v6656_v28 = vld [vmem:[%s4278_s14 + $0x2b0] sm:$0xff]  ;;  %v6663_v54 = vld [vmem:[%s4278_s14 + $0x2c8] sm:$0xff] }
 0x201   : > { %8810 = vst [vmem:[#allocation118_spill] sm:$0xff] %v6624_v23  ;;  %8811 = vst [vmem:[#allocation122_spill] sm:$0xff] %v6627_v3  ;;  %v6666_v58 = vld [vmem:[%s4278_s14 + $0x2e0] sm:$0xff]  ;;  %v6679_v2 = vld [vmem:[%s4278_s14 + $0x328] sm:$0xff] }
 0x202   : > { %8812 = vst [vmem:[#allocation123_spill] sm:$0xff] %v6631_v57  ;;  %8813 = vst [vmem:[#allocation124_spill] sm:$0xff] %v6634_v34  ;;  %v6695_v45 = vld [vmem:[%s4278_s14 + $0x388] sm:$0xff]  ;;  %v6724_v4 = vld [vmem:[%s4278_s14 + $0x430] sm:$0xff]  ;;  %v1925_v50 = vunpack.c.h.bf16 %v6679_v2 }
 0x203   : > { %8814 = vst [vmem:[#allocation125_spill] sm:$0xff] %v6637_v15  ;;  %8815 = vst [vmem:[#allocation72_spill] sm:$0xff] %v6640_v10  ;;  %v6711_v49 = vld [vmem:[%s4278_s14 + $0x3e8] sm:$0xff]  ;;  %v6766_v5 = vld [vmem:[%s4278_s14 + $0x520] sm:$0xff]  ;;  %v1991_v27 = vunpack.c.h.bf16 %v6724_v4 }
 0x204   : > { %8816 = vst [vmem:[#allocation88_spill] sm:$0xff] %v6647_v35  ;;  %8817 = vst [vmem:[#allocation102_spill] sm:$0xff] %v6650_v39  ;;  %v6763_v21 = vld [vmem:[%s4278_s14 + $0x508] sm:$0xff]  ;;  %v6773_v12 = vld [vmem:[%s4278_s14 + $0x538] sm:$0xff]  ;;  %v1973_v61 = vunpack.c.h.bf16 %v6711_v49  ;;  %v2051_v6 = vunpack.c.h.bf16 %v6766_v5  ;;  %v2483_v38 = vadd.f32 %v1925_v50, %v1919_v62 }
 0x205   : > { %8818 = vst [vmem:[#allocation65_spill] sm:$0xff] %v6653_v18  ;;  %8819 = vst [vmem:[#allocation73_spill] sm:$0xff] %v6656_v28  ;;  %v6776_v35 = vld [vmem:[%s4278_s14 + $0x550] sm:$0xff]  ;;  %v6779_v29 = vld [vmem:[%s4278_s14 + $0x568] sm:$0xff]  ;;  %v2045_v15 = vunpack.c.h.bf16 %v6763_v21 }
 0x206   : > { %8820 = vst [vmem:[#allocation81_spill] sm:$0xff] %v6663_v54  ;;  %8821 = vst [vmem:[#allocation66_spill] sm:$0xff] %v6666_v58  ;;  %v6792_v13 = vld [vmem:[%s4278_s14 + $0x5b0] sm:$0xff]  ;;  %v6799_v11 = vld [vmem:[%s4278_s14 + $0x5c8] sm:$0xff]  ;;  %v2033_v58 = vunpack.c.h.bf16 %v6753_v43  ;;  %v2063_v55 = vunpack.c.h.bf16 %v6776_v35  ;;  %v2069_v59 = vunpack.c.h.bf16 %v6779_v29 }
 0x207   : > { %8824 = vst [vmem:[#allocation82_spill] sm:$0xff] %v6679_v2  ;;  %8828 = vst [vmem:[#allocation89_spill] sm:$0xff] %v6695_v45  ;;  %v6786_v2 = vld [vmem:[%s4278_s14 + $0x580] sm:$0xff]  ;;  %v6805_v37 = vld [vmem:[%s4278_s14 + $0x5f8] sm:$0xff]  ;;  %v2087_v7 = vunpack.c.h.bf16 %v6792_v13  ;;  %v2093_v43 = vunpack.c.h.bf16 %v6799_v11  ;;  %v2561_v45 = vadd.f32 %v1973_v61, %v1967_v52  ;;  %v8869_v52 = vunpack.c.h.bf16 %v6653_v18 }
 0x208   : > { %8832 = vst [vmem:[#allocation97_spill] sm:$0xff] %v6711_v49  ;;  %8835 = vst [vmem:[#allocation10_spill] sm:$0xff] %v6724_v4  ;;  %v2015_v49 = vunpack.c.h.bf16 %v6740_v22  ;;  %v6802_v9 = vld [vmem:[%s4278_s14 + $0x5e0] sm:$0xff]  ;;  %v2021_v4 = vunpack.c.h.bf16 %v6747_v1  ;;  %v2075_v34 = vunpack.c.h.bf16 %v6786_v2  ;;  %v2081_v1 = vunpack.c.h.bf16 %v6789_v19 }
 0x209   : > { %8844 = vst [vmem:[#allocation121_spill] sm:$0xff] %v6763_v21  ;;  %8845 = vst [vmem:[#allocation128_spill] sm:$0xff] %v6766_v5  ;;  %v2099_v8 = vunpack.c.h.bf16 %v6802_v9  ;;  %v2105_v21 = vunpack.c.h.bf16 %v6805_v37  ;;  %v8855_v5 = vunpack.c.h.bf16 %v6551_v40  ;;  %v8856_v22 = vunpack.c.h.bf16 %v6554_v20  ;;  %v8931_v18 = vld [vmem:[#allocation38_spill] sm:$0xff] }
 0x20a   : > { %8846 = vst [vmem:[#allocation92_spill] sm:$0xff] %v6773_v12  ;;  %8847 = vst [vmem:[#allocation79_spill] sm:$0xff] %v6776_v35  ;;  %v8857_v35 = vunpack.c.h.bf16 %v6569_v51  ;;  %v8859_v19 = vunpack.c.h.bf16 %v6606_v47  ;;  %v2639_v20 = vadd.f32 %v2021_v4, %v2015_v49  ;;  %v8865_v47 = vunpack.c.h.bf16 %v6650_v39  ;;  %v6852_v49 = vpop.f32.mrb[0].mxu0  ;;  %v8932_v39 = vld [vmem:[#allocation46_spill] sm:$0xff] }
 0x20b   : > { %8848 = vst [vmem:[#allocation106_spill] sm:$0xff] %v6779_v29  ;;  %8849 = vst [vmem:[#allocation117_spill] sm:$0xff] %v6786_v2  ;;  %v2171_v12 = vadd.f32 %v8856_v22, %v8855_v5  ;;  %v8858_v29 = vunpack.c.h.bf16 %v6577_v46  ;;  %v2717_v22 = vadd.f32 %v2069_v59, %v2063_v55  ;;  %v8863_v5 = vunpack.c.h.bf16 %v6580_v32  ;;  %v8957_v46 = vld [vmem:[#allocation11_spill] sm:$0xff]  ;;  %v8959_v32 = vld [vmem:[#allocation29_spill] sm:$0xff] }
 0x20c   : > { %8851 = vst [vmem:[#allocation80_spill] sm:$0xff] %v6792_v13  ;;  %8852 = vst [vmem:[#allocation103_spill] sm:$0xff] %v6799_v11  ;;  %v8860_v13 = vunpack.c.h.bf16 %v6618_v60  ;;  %v8861_v11 = vunpack.c.h.bf16 %v6640_v10  ;;  %v2562_v62 = vadd.f32 %v2561_v45, %v1979_v16  ;;  %v8868_v55 = vunpack.c.h.bf16 %v6624_v23  ;;  %v8933_v10 = vld [vmem:[#allocation47_spill] sm:$0xff]  ;;  %v8953_v23 = vld [vmem:[#allocation41_spill] sm:$0xff] }
 0x20d   : > { %8853 = vst [vmem:[#allocation120_spill] sm:$0xff] %v6802_v9  ;;  %8854 = vst [vmem:[#allocation63_spill] sm:$0xff] %v6805_v37  ;;  %v2249_v2 = vadd.f32 %v8858_v29, %v8857_v35  ;;  %v8862_v37 = vunpack.c.h.bf16 %v6557_v25  ;;  %v8864_v29 = vunpack.c.h.bf16 %v6621_v26  ;;  %v2718_v50 = vadd.f32 %v2717_v22, %v2075_v34  ;;  %v8939_v26 = vld [vmem:[#allocation57_spill] sm:$0xff] }
 0x20e   : > { %v2327_v0 = vadd.f32 %v8860_v13, %v8859_v19  ;;  %v2405_v9 = vadd.f32 %v1877_v44, %v8861_v11  ;;  %v2484_v19 = vadd.f32 %v2483_v38, %v1931_v53  ;;  %v8866_v13 = vunpack.c.h.bf16 %v6560_v41  ;;  %8870 = vst [vmem:[#allocation71_spill] sm:$0xff] %v6852_v49  ;;  %v8951_v41 = vld [vmem:[#allocation25_spill] sm:$0xff] }
 0x20f   : > { %v2172_v40 = vadd.f32 %v2171_v12, %v8862_v37  ;;  %v2250_v51 = vadd.f32 %v2249_v2, %v8863_v5  ;;  %v2640_v11 = vadd.f32 %v2639_v20, %v2027_v48  ;;  %v8867_v12 = vunpack.c.h.bf16 %v6583_v42  ;;  %v6856_v48 = vpop.f32.mrb[1].mxu0  ;;  %v8944_v42 = vld [vmem:[#allocation8_spill] sm:$0xff]  ;;  %v8952_v25 = vld [vmem:[#allocation33_spill] sm:$0xff] }
 0x210   : > { %v2328_v35 = vadd.f32 %v2327_v0, %v8864_v29  ;;  %v2406_v60 = vadd.f32 %v2405_v9, %v8865_v47  ;;  %v2485_v0 = vadd.f32 %v2484_v19, %v1937_v24  ;;  %v8871_v9 = vunpack.c.h.bf16 %v6563_v14  ;;  %8872 = vst [vmem:[#allocation75_spill] sm:$0xff] %v6856_v48  ;;  %v8950_v14 = vld [vmem:[#allocation17_spill] sm:$0xff] }
 0x211   : > { %v2173_v44 = vadd.f32 %v2172_v40, %v8866_v13  ;;  %v2251_v37 = vadd.f32 %v2250_v51, %v8867_v12  ;;  %v2563_v47 = vadd.f32 %v2562_v62, %v1985_v56  ;;  %v2641_v40 = vadd.f32 %v2640_v11, %v2033_v58  ;;  %v8881_v62 = vld [vmem:[#allocation89_spill] sm:$0xff]  ;;  %v8883_v12 = vld [vmem:[#allocation59_spill] sm:$0xff] }
 0x212   : > { %v2329_v59 = vadd.f32 %v2328_v35, %v8868_v55  ;;  %v2407_v61 = vadd.f32 %v2406_v60, %v8869_v52  ;;  %v2719_v16 = vadd.f32 %v2718_v50, %v2081_v1  ;;  %v8873_v20 = vunpack.c.h.bf16 %v6586_v63  ;;  %v8943_v63 = vld [vmem:[#allocation58_spill] sm:$0xff] }
 0x213   : > { %v2174_v38 = vadd.f32 %v2173_v44, %v8871_v9  ;;  %v8874_v53 = vunpack.c.h.bf16 %v6627_v3  ;;  %v8875_v45 = vunpack.c.h.bf16 %v6656_v28  ;;  %v8876_v24 = vunpack.c.h.bf16 %v6688_v30  ;;  %v3658_v30 = vld [vmem:[%s3918_s27 + $0x280] sm:$0xff] }
 0x214   : > { %v2252_v51 = vadd.f32 %v2251_v37, %v8873_v20  ;;  %v8877_v4 = vunpack.c.h.bf16 %v6566_v31  ;;  %v2564_v56 = vadd.f32 %v2563_v47, %v1991_v27  ;;  %v2642_v58 = vadd.f32 %v2641_v40, %v2039_v17  ;;  %v8885_v17 = vld [vmem:[#allocation99_spill] sm:$0xff]  ;;  %v8889_v47 = vld [vmem:[#allocation66_spill] sm:$0xff]  ;;  %v8949_v31 = vld [vmem:[#allocation9_spill] sm:$0xff] }
 0x215   : > { %v2330_v34 = vadd.f32 %v2329_v59, %v8874_v53  ;;  %v2408_v60 = vadd.f32 %v2407_v61, %v8875_v45  ;;  %v2486_v2 = vadd.f32 %v2485_v0, %v8876_v24  ;;  %v2720_v1 = vadd.f32 %v2719_v16, %v2087_v7  ;;  %v8887_v0 = vld [vmem:[#allocation124_spill] sm:$0xff]  ;;  %v8891_v20 = vld [vmem:[#allocation90_spill] sm:$0xff]  ;;  %v8895_v24 = vld [vmem:[#allocation101_spill] sm:$0xff] }
 0x216   : > { %v2175_v22 = vadd.f32 %v2174_v38, %v8877_v4  ;;  %v8878_v5 = vunpack.c.h.bf16 %v6600_v33  ;;  %v8879_v35 = vunpack.c.h.bf16 %v6631_v57  ;;  %v8880_v13 = vunpack.c.h.bf16 %v6663_v54  ;;  %v8897_v4 = vld [vmem:[#allocation110_spill] sm:$0xff]  ;;  %v8942_v33 = vld [vmem:[#allocation31_spill] sm:$0xff] }
 0x217   : > { %v8882_v11 = vunpack.c.h.bf16 %v8881_v62  ;;  %v8884_v37 = vunpack.c.h.bf16 %v8883_v12  ;;  %v2565_v59 = vadd.f32 %v2564_v56, %v1997_v36  ;;  %v2643_v52 = vadd.f32 %v2642_v58, %v2045_v15  ;;  %v8899_v58 = vld [vmem:[#allocation125_spill] sm:$0xff]  ;;  %v8948_v12 = vld [vmem:[#allocation40_spill] sm:$0xff]  ;;  %v8960_v3 = vld [vmem:[#allocation42_spill] sm:$0xff] }
 0x218   : > { %v2253_v29 = vadd.f32 %v2252_v51, %v8878_v5  ;;  %v2331_v19 = vadd.f32 %v2330_v34, %v8879_v35  ;;  %v2409_v44 = vadd.f32 %v2408_v60, %v8880_v13  ;;  %v2721_v27 = vadd.f32 %v2720_v1, %v2093_v43  ;;  %v8893_v34 = vld [vmem:[#allocation83_spill] sm:$0xff] }
 0x219   : > { %v2487_v50 = vadd.f32 %v2486_v2, %v8882_v11  ;;  %v2176_v55 = vadd.f32 %v2175_v22, %v8884_v37  ;;  %v8886_v7 = vunpack.c.h.bf16 %v8885_v17  ;;  %v8888_v9 = vunpack.c.h.bf16 %v8887_v0  ;;  %v8903_v13 = vld [vmem:[#allocation91_spill] sm:$0xff]  ;;  %v8935_v0 = vld [vmem:[#allocation53_spill] sm:$0xff] }
 0x21a   : > { %v8890_v40 = vunpack.c.h.bf16 %v8889_v47  ;;  %v8892_v51 = vunpack.c.h.bf16 %v8891_v20  ;;  %v8894_v45 = vunpack.c.h.bf16 %v8893_v34  ;;  %v8896_v2 = vunpack.c.h.bf16 %v8895_v24  ;;  %v8905_v37 = vld [vmem:[#allocation115_spill] sm:$0xff]  ;;  %v8947_v34 = vld [vmem:[#allocation61_spill] sm:$0xff] }
 0x21b   : > { %v2254_v61 = vadd.f32 %v2253_v29, %v8886_v7  ;;  %v2332_v38 = vadd.f32 %v2331_v19, %v8888_v9  ;;  %v2644_v15 = vadd.f32 %v2643_v52, %v2051_v6  ;;  %v2722_v43 = vadd.f32 %v2721_v27, %v2099_v8  ;;  %v8901_v29 = vld [vmem:[#allocation111_spill] sm:$0xff]  ;;  %v8907_v9 = vld [vmem:[#allocation92_spill] sm:$0xff] }
 0x21c   : > { %v2410_v16 = vadd.f32 %v2409_v44, %v8890_v40  ;;  %v2488_v53 = vadd.f32 %v2487_v50, %v8892_v51  ;;  %v2177_v60 = vadd.f32 %v2176_v55, %v8894_v45  ;;  %v2566_v36 = vadd.f32 %v2565_v59, %v8896_v2  ;;  %v3657_v20 = vld [vmem:[%s3918_s27 + $0x268] sm:$0xff] }
 0x21d   : > { %v8898_v22 = vunpack.c.h.bf16 %v8897_v4  ;;  %v8900_v1 = vunpack.c.h.bf16 %v8899_v58  ;;  %v8902_v35 = vunpack.c.h.bf16 %v8901_v29  ;;  %v8904_v44 = vunpack.c.h.bf16 %v8903_v13  ;;  %v8934_v58 = vld [vmem:[#allocation48_spill] sm:$0xff]  ;;  %v8940_v4 = vld [vmem:[#allocation15_spill] sm:$0xff] }
 0x21e   : > { %v2178_v50 = vrot.slane %v2177_v60, 4  ;;  %v8906_v55 = vunpack.c.h.bf16 %v8905_v37  ;;  %v8908_v59 = vunpack.c.h.bf16 %v8907_v9  ;;  %v2723_v8 = vadd.f32 %v2722_v43, %v2105_v21  ;;  %v8941_v17 = vld [vmem:[#allocation23_spill] sm:$0xff] }
 0x21f   : > { %v2255_v56 = vadd.f32 %v2254_v61, %v8898_v22  ;;  %v2333_v5 = vadd.f32 %v2332_v38, %v8900_v1  ;;  %v2411_v19 = vadd.f32 %v2410_v16, %v8902_v35  ;;  %v2489_v11 = vadd.f32 %v2488_v53, %v8904_v44 }
 0x220   : > { %v2567_v7 = vadd.f32 %v2566_v36, %v8906_v55  ;;  %v2645_v6 = vadd.f32 %v2644_v15, %v8908_v59  ;;  %v2179_v51 = vadd.f32 %v2178_v50, %v2177_v60  ;;  %v2724_v2 = vrot.slane %v2723_v8, 4 }
 0x221   : > { %v2256_v52 = vrot.slane %v2255_v56, 4  ;;  %v2334_v27 = vrot.slane %v2333_v5, 4  ;;  %v2412_v61 = vrot.slane %v2411_v19, 4  ;;  %v2490_v40 = vrot.slane %v2489_v11, 4 }
 0x222   : > { %v2568_v38 = vrot.slane %v2567_v7, 4  ;;  %v2646_v45 = vrot.slane %v2645_v6, 4  ;;  %v2180_v35 = vrot.slane %v2179_v51, 2  ;;  %v2725_v36 = vadd.f32 %v2724_v2, %v2723_v8 }
 0x223   : > { %v2257_v16 = vadd.f32 %v2256_v52, %v2255_v56  ;;  %v2335_v22 = vadd.f32 %v2334_v27, %v2333_v5  ;;  %v2413_v1 = vadd.f32 %v2412_v61, %v2411_v19  ;;  %v2491_v53 = vadd.f32 %v2490_v40, %v2489_v11 }
 0x224   : > { %v2569_v44 = vadd.f32 %v2568_v38, %v2567_v7  ;;  %v2647_v48 = vadd.f32 %v2646_v45, %v2645_v6  ;;  %v2181_v43 = vadd.f32 %v2180_v35, %v2179_v51  ;;  %v2726_v37 = vrot.slane %v2725_v36, 2 }
 0x225   : > { %v2258_v55 = vrot.slane %v2257_v16, 2  ;;  %v2336_v49 = vrot.slane %v2335_v22, 2  ;;  %v2414_v15 = vrot.slane %v2413_v1, 2  ;;  %v2492_v21 = vrot.slane %v2491_v53, 2 }
 0x226   : > { %v2570_v59 = vrot.slane %v2569_v44, 2  ;;  %v2648_v9 = vrot.slane %v2647_v48, 2  ;;  %v2182_v56 = vrot.slane %v2181_v43, 1  ;;  %v2727_v11 = vadd.f32 %v2726_v37, %v2725_v36 }
 0x227   : > { %v2259_v60 = vadd.f32 %v2258_v55, %v2257_v16  ;;  %v2337_v50 = vadd.f32 %v2336_v49, %v2335_v22  ;;  %v2415_v24 = vadd.f32 %v2414_v15, %v2413_v1  ;;  %v2493_v13 = vadd.f32 %v2492_v21, %v2491_v53  ;;  %v8909_v15 = vld [vmem:[#allocation49_spill] sm:$0xff] }
 0x228   : > { %v2571_v5 = vadd.f32 %v2570_v59, %v2569_v44  ;;  %v2649_v19 = vadd.f32 %v2648_v9, %v2647_v48  ;;  %v2183_v27 = vadd.f32 %v2182_v56, %v2181_v43  ;;  %v2728_v38 = vrot.slane %v2727_v11, 1  ;;  %v8910_v43 = vld [vmem:[#allocation69_spill] sm:$0xff]  ;;  %v8913_v56 = vld [vmem:[#allocation94_spill] sm:$0xff] }
 0x229   : > { %v2260_v52 = vrot.slane %v2259_v60, 1  ;;  %v2338_v7 = vrot.slane %v2337_v50, 1  ;;  %v2416_v6 = vrot.slane %v2415_v24, 1  ;;  %v2494_v8 = vrot.slane %v2493_v13, 1 }
 0x22a   : > { %v2572_v61 = vrot.slane %v2571_v5, 1  ;;  %v2650_v40 = vrot.slane %v2649_v19, 1  ;;  %v2729_v22 = vadd.f32 %v2728_v38, %v2727_v11  ;;  %v2735_v1 = vmul.f32 0.015625, %v2183_v27 }
 0x22b   : > { %v2261_v51 = vadd.f32 %v2260_v52, %v2259_v60  ;;  %v2339_v45 = vadd.f32 %v2338_v7, %v2337_v50  ;;  %v2417_v2 = vadd.f32 %v2416_v6, %v2415_v24  ;;  %v2495_v35 = vadd.f32 %v2494_v8, %v2493_v13  ;;  %v8911_v60 = vld [vmem:[#allocation70_spill] sm:$0xff]  ;;  %v8912_v13 = vld [vmem:[#allocation87_spill] sm:$0xff]  ;;  %v8916_v6 = vld [vmem:[#allocation109_spill] sm:$0xff] }
 0x22c   : > { %v2573_v16 = vadd.f32 %v2572_v61, %v2571_v5  ;;  %v2651_v49 = vadd.f32 %v2650_v40, %v2649_v19  ;;  %v2777_v55 = vmul.f32 0.015625, %v2729_v22  ;;  %v2783_v21 = vsub.f32 %v8909_v15, %v2735_v1  ;;  %v8914_v19 = vld [vmem:[#allocation108_spill] sm:$0xff]  ;;  %v8915_v52 = vld [vmem:[#allocation107_spill] sm:$0xff] }
 0x22d   : > { %v2741_v53 = vmul.f32 0.015625, %v2261_v51  ;;  %v2747_v44 = vmul.f32 0.015625, %v2339_v45  ;;  %v2753_v48 = vmul.f32 0.015625, %v2417_v2  ;;  %v2759_v37 = vmul.f32 0.015625, %v2495_v35  ;;  %v6911_v51 = vld [vmem:[%s3918_s27 + $0x10] sm:$0xff] }
 0x22e   : > { %v2765_v9 = vmul.f32 0.015625, %v2573_v16  ;;  %v2771_v36 = vmul.f32 0.015625, %v2651_v49  ;;  %v2825_v8 = vsub.f32 %v8916_v6, %v2777_v55  ;;  %v2831_v27 = vand.u32 2147483647, %v2783_v21  ;;  %v6915_v49 = vld [vmem:[%s3918_s27 + $0x28] sm:$0xff]  ;;  %v6929_v55 = vld [vmem:[%s3918_s27 + $0x70] sm:$0xff] }
 0x22f   : > { %v2789_v59 = vsub.f32 %v8910_v43, %v2741_v53  ;;  %v2795_v24 = vsub.f32 %v8911_v60, %v2747_v44  ;;  %v2801_v50 = vsub.f32 %v8912_v13, %v2753_v48  ;;  %v2807_v5 = vsub.f32 %v8913_v56, %v2759_v37  ;;  %v6920_v44 = vld [vmem:[%s3918_s27 + $0x40] sm:$0xff]  ;;  %v6924_v37 = vld [vmem:[%s3918_s27 + $0x58] sm:$0xff]  ;;  %v6933_v21 = vld [vmem:[%s3918_s27 + $0x88] sm:$0xff] }
 0x230   : > { %v2813_v11 = vsub.f32 %v8914_v19, %v2765_v9  ;;  %v2819_v7 = vsub.f32 %v8915_v52, %v2771_v36  ;;  %v2873_v1 = vand.u32 2147483647, %v2825_v8  ;;  %v6942_v13 = vld [vmem:[%s3918_s27 + $0xb8] sm:$0xff]  ;;  %v6946_v56 = vld [vmem:[%s3918_s27 + $0xd0] sm:$0xff]  ;;  %v6950_v19 = vld [vmem:[%s3918_s27 + $0xe8] sm:$0xff]  ;;  %v628_v62 = vunpack.c.l.bf16 %v3657_v20 }
 0x231   : > { %v2837_v61 = vand.u32 2147483647, %v2789_v59  ;;  %v2843_v40 = vand.u32 2147483647, %v2795_v24  ;;  %v2849_v38 = vand.u32 2147483647, %v2801_v50  ;;  %v634_v29 = vunpack.c.l.bf16 %v3658_v30 }
 0x232   : > { %v2855_v2 = vand.u32 2147483647, %v2807_v5  ;;  %v2861_v35 = vand.u32 2147483647, %v2813_v11  ;;  %v2867_v16 = vand.u32 2147483647, %v2819_v7  ;;  %v676_v22 = vunpack.c.l.bf16 %v8932_v39 }
 0x233   : > { %v3067_v53 = vsel %vm3025_vm0, %v2837_v61, %v2831_v27  ;;  %v6937_v59 = vld [vmem:[%s3918_s27 + $0xa0] sm:$0xff]  ;;  %8918 = vst [vmem:[#allocation77_spill] sm:$0xff] %v6942_v13  ;;  %v6959_v8 = vld [vmem:[%s3918_s27 + $0x118] sm:$0xff]  ;;  %v6963_v61 = vld [vmem:[%s3918_s27 + $0x130] sm:$0xff]  ;;  %v688_v20 = vunpack.c.l.bf16 %v8934_v58  ;;  %v694_v30 = vunpack.c.l.bf16 %v8935_v0  ;;  %v718_v28 = vunpack.c.l.bf16 %v8939_v26 }
 0x234   : > { %v3068_v36 = vsel %vm3027_vm1, %v2843_v40, %v3067_v53  ;;  %8917 = vst [vmem:[#allocation76_spill] sm:$0xff] %v6937_v59  ;;  %v6955_v7 = vld [vmem:[%s3918_s27 + $0x100] sm:$0xff]  ;;  %v8919_v53 = vld [vmem:[#allocation21_spill] sm:$0xff]  ;;  %v3654_v27 = vld [vmem:[%s3918_s27 + $0x1a8] sm:$0xff]  ;;  %v736_v39 = vunpack.c.l.bf16 %v8942_v33  ;;  %v748_v58 = vunpack.c.l.bf16 %v8944_v42  ;;  %v772_v54 = vunpack.c.l.bf16 %v8948_v12 }
 0x235   : > { %v3069_v24 = vsel %vm3029_vm2, %v2849_v38, %v3068_v36  ;;  %v3653_v15 = vld [vmem:[%s3918_s27 + $0x190] sm:$0xff]  ;;  %v580_v6 = vunpack.c.l.bf16 %v3654_v27  ;;  %v6974_v48 = vld [vmem:[%s3918_s27 + $0x1c0] sm:$0xff]  ;;  %v778_v26 = vunpack.c.l.bf16 %v8949_v31  ;;  %v796_v33 = vunpack.c.l.bf16 %v8952_v25 }
 0x236   : > { %v3070_v52 = vsel %vm3031_vm3, %v2855_v2, %v3069_v24  ;;  %v574_v9 = vunpack.c.l.bf16 %v3653_v15  ;;  %v8922_v36 = vld [vmem:[#allocation27_spill] sm:$0xff]  ;;  %v8923_v40 = vld [vmem:[#allocation34_spill] sm:$0xff]  ;;  %v3656_v45 = vld [vmem:[%s3918_s27 + $0x250] sm:$0xff]  ;;  %v838_v31 = vunpack.c.l.bf16 %v8959_v32  ;;  %v8964_v42 = vunpack.c.l.bf16 %v6915_v49 }
 0x237   : > { %v3071_v38 = vsel %vm3033_vm4, %v2861_v35, %v3070_v52  ;;  %v586_v35 = vunpack.c.l.bf16 %v6974_v48  ;;  %v622_v27 = vunpack.c.l.bf16 %v3656_v45  ;;  %v3659_v48 = vld [vmem:[%s3918_s27 + $0x298] sm:$0xff]  ;;  %v682_v45 = vunpack.c.l.bf16 %v8933_v10  ;;  %v8955_v15 = vld [vmem:[#allocation39_spill] sm:$0xff] }
 0x238   : > { %v3072_v43 = vsel %vm3035_vm5, %v2867_v16, %v3071_v38  ;;  %v640_v47 = vunpack.c.l.bf16 %v3659_v48  ;;  %v670_v38 = vunpack.c.l.bf16 %v8931_v18  ;;  %v730_v18 = vunpack.c.l.bf16 %v8941_v17  ;;  %v8956_v2 = vld [vmem:[#allocation50_spill] sm:$0xff]  ;;  %v8961_v11 = vld [vmem:[#allocation51_spill] sm:$0xff]  ;;  %v8962_v16 = vld [vmem:[#allocation4_spill] sm:$0xff] }
 0x239   : > { %v3073_v52 = vsel %vm3037_vm6, %v2873_v1, %v3072_v43  ;;  %v8927_v1 = vld [vmem:[#allocation44_spill] sm:$0xff]  ;;  %v742_v10 = vunpack.c.l.bf16 %v8943_v63  ;;  %v766_v43 = vunpack.c.l.bf16 %v8947_v34  ;;  %v790_v17 = vunpack.c.l.bf16 %v8951_v41  ;;  %v8958_v13 = vld [vmem:[#allocation18_spill] sm:$0xff] }
 0x23a   : > { %3284 = vmatprep.mubr.f32.mxu0 %v3073_v52  ;;  %v724_v52 = vunpack.c.l.bf16 %v8940_v4  ;;  %v784_v4 = vunpack.c.l.bf16 %v8950_v14  ;;  %v802_v63 = vunpack.c.l.bf16 %v8953_v23  ;;  %v814_v0 = vunpack.c.l.bf16 %v8955_v15 }
 0x23b   : > { %v820_v48 = vunpack.c.l.bf16 %v8956_v2  ;;  %v826_v34 = vunpack.c.l.bf16 %v8957_v46  ;;  %v832_v12 = vunpack.c.l.bf16 %v8958_v13  ;;  %v844_v14 = vunpack.c.l.bf16 %v8960_v3 }
 0x23c   : > { %v850_v41 = vunpack.c.l.bf16 %v8961_v11  ;;  %v856_v25 = vunpack.c.l.bf16 %v8962_v16  ;;  %v8963_v23 = vunpack.c.l.bf16 %v6911_v51  ;;  %v8965_v15 = vunpack.c.l.bf16 %v6946_v56 }
 0x23d   : > { %v8966_v2 = vunpack.c.l.bf16 %v6950_v19  ;;  %v1066_v50 = vadd.f32 %v580_v6, %v574_v9  ;;  %v1144_v13 = vadd.f32 %v628_v62, %v622_v27  ;;  %v1222_v59 = vadd.f32 %v676_v22, %v670_v38 }
 0x23e   : > { %v910_v5 = vadd.f32 %v8964_v42, %v8963_v23  ;;  %v1300_v32 = vadd.f32 %v724_v52, %v718_v28  ;;  %v8967_v3 = vunpack.c.l.bf16 %v6920_v44  ;;  %v8968_v11 = vunpack.c.l.bf16 %v6955_v7 }
 0x23f   : > { %v988_v46 = vadd.f32 %v8966_v2, %v8965_v15  ;;  %v1378_v60 = vadd.f32 %v772_v54, %v766_v43  ;;  %v1456_v51 = vadd.f32 %v820_v48, %v814_v0  ;;  %v1067_v24 = vadd.f32 %v1066_v50, %v586_v35 }
 0x240   : > { %v911_v57 = vadd.f32 %v910_v5, %v8967_v3  ;;  %v1145_v49 = vadd.f32 %v1144_v13, %v634_v29  ;;  %v1223_v42 = vadd.f32 %v1222_v59, %v682_v45  ;;  %v1301_v23 = vadd.f32 %v1300_v32, %v730_v18  ;;  %v8990_v32 = vld [vmem:[#allocation54_spill] sm:$0xff] }
 0x241   : > { %v989_v16 = vadd.f32 %v988_v46, %v8968_v11  ;;  %v8969_v56 = vunpack.c.l.bf16 %v6924_v37  ;;  %v8970_v9 = vunpack.c.l.bf16 %v6959_v8  ;;  %v1379_v22 = vadd.f32 %v1378_v60, %v778_v26  ;;  %v8982_v26 = vld [vmem:[#allocation56_spill] sm:$0xff] }
 0x242   : > { %v1457_v28 = vadd.f32 %v1456_v51, %v826_v34  ;;  %v8971_v44 = vunpack.c.l.bf16 %v8922_v36  ;;  %v1146_v6 = vadd.f32 %v1145_v49, %v640_v47  ;;  %v1224_v7 = vadd.f32 %v1223_v42, %v688_v20  ;;  %v8994_v42 = vld [vmem:[#allocation16_spill] sm:$0xff] }
 0x243   : > { %v912_v19 = vadd.f32 %v911_v57, %v8969_v56  ;;  %v990_v62 = vadd.f32 %v989_v16, %v8970_v9  ;;  %v1302_v38 = vadd.f32 %v1301_v23, %v736_v39  ;;  %v8972_v54 = vunpack.c.l.bf16 %v6929_v55  ;;  %v8980_v39 = vld [vmem:[#allocation45_spill] sm:$0xff]  ;;  %v8992_v16 = vld [vmem:[#allocation3_spill] sm:$0xff] }
 0x244   : > { %v1068_v5 = vadd.f32 %v1067_v24, %v8971_v44  ;;  %v8973_v29 = vunpack.c.l.bf16 %v6963_v61  ;;  %v1380_v35 = vadd.f32 %v1379_v22, %v784_v4  ;;  %v1458_v37 = vadd.f32 %v1457_v28, %v832_v12  ;;  %v8978_v61 = vld [vmem:[#allocation35_spill] sm:$0xff]  ;;  %v8996_v56 = vld [vmem:[#allocation77_spill] sm:$0xff] }
 0x245   : > { %v913_v50 = vadd.f32 %v912_v19, %v8972_v54  ;;  %v8974_v57 = vunpack.c.l.bf16 %v8923_v40  ;;  %v8975_v60 = vunpack.c.l.bf16 %v8927_v1  ;;  %v1225_v43 = vadd.f32 %v1224_v7, %v694_v30  ;;  %v8984_v30 = vld [vmem:[#allocation76_spill] sm:$0xff]  ;;  %v9000_v44 = vld [vmem:[#allocation37_spill] sm:$0xff]  ;;  %v9002_v7 = vld [vmem:[#allocation55_spill] sm:$0xff] }
 0x246   : > { %v991_v59 = vadd.f32 %v990_v62, %v8973_v29  ;;  %v1303_v36 = vadd.f32 %v1302_v38, %v742_v10  ;;  %v8976_v47 = vunpack.c.l.bf16 %v6933_v21  ;;  %v8977_v52 = vunpack.c.l.bf16 %v8919_v53  ;;  %v8986_v21 = vld [vmem:[#allocation22_spill] sm:$0xff] }
 0x247   : > { %v1069_v8 = vadd.f32 %v1068_v5, %v8974_v57  ;;  %v1147_v27 = vadd.f32 %v1146_v6, %v8975_v60  ;;  %v1381_v45 = vadd.f32 %v1380_v35, %v790_v17  ;;  %v1459_v20 = vadd.f32 %v1458_v37, %v838_v31  ;;  %v8988_v17 = vld [vmem:[#allocation36_spill] sm:$0xff]  ;;  %v8998_v62 = vld [vmem:[#allocation26_spill] sm:$0xff] }
 0x248   : > { %v914_v24 = vadd.f32 %v913_v50, %v8976_v47  ;;  %v992_v55 = vadd.f32 %v991_v59, %v8977_v52  ;;  %v8979_v48 = vunpack.c.l.bf16 %v8978_v61  ;;  %v8981_v0 = vunpack.c.l.bf16 %v8980_v39  ;;  %v9004_v50 = vld [vmem:[#allocation6_spill] sm:$0xff]  ;;  %v9006_v35 = vld [vmem:[#allocation32_spill] sm:$0xff] }
 0x249   : > { %v8983_v4 = vunpack.c.l.bf16 %v8982_v26  ;;  %v1304_v34 = vadd.f32 %v1303_v36, %v748_v58  ;;  %v8985_v10 = vunpack.c.l.bf16 %v8984_v30  ;;  %v8987_v15 = vunpack.c.l.bf16 %v8986_v21 }
 0x24a   : > { %v1070_v18 = vadd.f32 %v1069_v8, %v8979_v48  ;;  %v1148_v40 = vadd.f32 %v1147_v27, %v8981_v0  ;;  %v1382_v53 = vadd.f32 %v1381_v45, %v796_v33  ;;  %v1460_v46 = vadd.f32 %v1459_v20, %v844_v14  ;;  %v9008_v27 = vld [vmem:[#allocation28_spill] sm:$0xff] }
 0x24b   : > { %v1226_v1 = vadd.f32 %v1225_v43, %v8983_v4  ;;  %v915_v12 = vadd.f32 %v914_v24, %v8985_v10  ;;  %v993_v2 = vadd.f32 %v992_v55, %v8987_v15  ;;  %v8989_v31 = vunpack.c.l.bf16 %v8988_v17 }
 0x24c   : > { %v8991_v3 = vunpack.c.l.bf16 %v8990_v32  ;;  %v8993_v51 = vunpack.c.l.bf16 %v8992_v16  ;;  %v8995_v23 = vunpack.c.l.bf16 %v8994_v42  ;;  %v8997_v19 = vunpack.c.l.bf16 %v8996_v56 }
 0x24d   : > { %v1071_v13 = vadd.f32 %v1070_v18, %v8989_v31  ;;  %v8999_v22 = vunpack.c.l.bf16 %v8998_v62  ;;  %v1383_v33 = vadd.f32 %v1382_v53, %v802_v63  ;;  %v1461_v14 = vadd.f32 %v1460_v46, %v850_v41 }
 0x24e   : > { %v1149_v11 = vadd.f32 %v1148_v40, %v8991_v3  ;;  %v1227_v49 = vadd.f32 %v1226_v1, %v8993_v51  ;;  %v1305_v58 = vadd.f32 %v1304_v34, %v8995_v23  ;;  %v916_v9 = vadd.f32 %v915_v12, %v8997_v19 }
 0x24f   : > { %v994_v28 = vadd.f32 %v993_v2, %v8999_v22  ;;  %v9001_v5 = vunpack.c.l.bf16 %v9000_v44  ;;  %v9003_v38 = vunpack.c.l.bf16 %v9002_v7  ;;  %v9005_v29 = vunpack.c.l.bf16 %v9004_v50 }
 0x250   : > { %v9007_v37 = vunpack.c.l.bf16 %v9006_v35  ;;  %v917_v8 = vrot.slane %v916_v9, 4  ;;  %v9009_v43 = vunpack.c.l.bf16 %v9008_v27  ;;  %v1462_v47 = vadd.f32 %v1461_v14, %v856_v25  ;;  %v9021_v27 = vld [vmem:[#allocation43_spill] sm:$0xff]  ;;  %v9063_v35 = vld [vmem:[#allocation68_spill] sm:$0xff] }
 0x251   : > { %v1072_v6 = vadd.f32 %v1071_v13, %v9001_v5  ;;  %v1150_v54 = vadd.f32 %v1149_v11, %v9003_v38  ;;  %v1228_v59 = vadd.f32 %v1227_v49, %v9005_v29  ;;  %v995_v60 = vrot.slane %v994_v28, 4 }
 0x252   : > { %v1306_v57 = vadd.f32 %v1305_v58, %v9007_v37  ;;  %v1384_v36 = vadd.f32 %v1383_v33, %v9009_v43  ;;  %v918_v55 = vadd.f32 %v917_v8, %v916_v9  ;;  %v1463_v61 = vrot.slane %v1462_v47, 4  ;;  %v9019_v37 = vld [vmem:[#allocation19_spill] sm:$0xff]  ;;  %v9020_v8 = vld [vmem:[#allocation30_spill] sm:$0xff] }
 0x253   : > { %v1073_v63 = vrot.slane %v1072_v6, 4  ;;  %v1151_v41 = vrot.slane %v1150_v54, 4  ;;  %v1229_v24 = vrot.slane %v1228_v59, 4  ;;  %v996_v45 = vadd.f32 %v995_v60, %v994_v28  ;;  %v9060_v43 = vld [vmem:[#allocation98_spill] sm:$0xff]  ;;  %v9061_v60 = vld [vmem:[#allocation7_spill] sm:$0xff] }
 0x254   : > { %v1307_v52 = vrot.slane %v1306_v57, 4  ;;  %v1385_v20 = vrot.slane %v1384_v36, 4  ;;  %v919_v40 = vrot.slane %v918_v55, 2  ;;  %v1464_v1 = vadd.f32 %v1463_v61, %v1462_v47  ;;  %v9072_v47 = vld [vmem:[#allocation128_spill] sm:$0xff] }
 0x255   : > { %v1074_v48 = vadd.f32 %v1073_v63, %v1072_v6  ;;  %v1152_v18 = vadd.f32 %v1151_v41, %v1150_v54  ;;  %v1230_v39 = vadd.f32 %v1229_v24, %v1228_v59  ;;  %v997_v26 = vrot.slane %v996_v45, 2  ;;  %v9018_v59 = vld [vmem:[#allocation12_spill] sm:$0xff] }
 0x256   : > { %v1308_v0 = vadd.f32 %v1307_v52, %v1306_v57  ;;  %v1386_v4 = vadd.f32 %v1385_v20, %v1384_v36  ;;  %v920_v12 = vadd.f32 %v919_v40, %v918_v55  ;;  %v1465_v2 = vrot.slane %v1464_v1, 2  ;;  %v9022_v36 = vld [vmem:[#allocation52_spill] sm:$0xff]  ;;  %v9029_v40 = vld [vmem:[#allocation67_spill] sm:$0xff]  ;;  %v9051_v52 = vld [vmem:[#allocation82_spill] sm:$0xff] }
 0x257   : > { %v1075_v34 = vrot.slane %v1074_v48, 2  ;;  %v1153_v30 = vrot.slane %v1152_v18, 2  ;;  %v1231_v10 = vrot.slane %v1230_v39, 2  ;;  %v998_v21 = vadd.f32 %v997_v26, %v996_v45  ;;  %v9026_v20 = vld [vmem:[#allocation24_spill] sm:$0xff]  ;;  %v9059_v26 = vld [vmem:[#allocation97_spill] sm:$0xff]  ;;  %v9062_v57 = vld [vmem:[#allocation10_spill] sm:$0xff] }
 0x258   : > { %v1309_v25 = vrot.slane %v1308_v0, 2  ;;  %v1387_v15 = vrot.slane %v1386_v4, 2  ;;  %v921_v13 = vrot.slane %v920_v12, 1  ;;  %v1466_v11 = vadd.f32 %v1465_v2, %v1464_v1  ;;  %v9054_v41 = vld [vmem:[#allocation112_spill] sm:$0xff]  ;;  %v9077_v55 = vld [vmem:[#allocation126_spill] sm:$0xff]  ;;  %v9079_v1 = vld [vmem:[#allocation103_spill] sm:$0xff] }
 0x259   : > { %v1076_v53 = vadd.f32 %v1075_v34, %v1074_v48  ;;  %v1154_v46 = vadd.f32 %v1153_v30, %v1152_v18  ;;  %v1232_v17 = vadd.f32 %v1231_v10, %v1230_v39  ;;  %v999_v32 = vrot.slane %v998_v21, 1  ;;  %v9027_v48 = vld [vmem:[#allocation60_spill] sm:$0xff] }
 0x25a   : > { %v1310_v31 = vadd.f32 %v1309_v25, %v1308_v0  ;;  %v1388_v3 = vadd.f32 %v1387_v15, %v1386_v4  ;;  %v922_v23 = vadd.f32 %v921_v13, %v920_v12  ;;  %v1467_v19 = vrot.slane %v1466_v11, 1  ;;  %v9028_v39 = vld [vmem:[#allocation64_spill] sm:$0xff]  ;;  %v9030_v4 = vld [vmem:[#allocation62_spill] sm:$0xff] }
 0x25b   : > { %v1077_v16 = vrot.slane %v1076_v53, 1  ;;  %v1155_v51 = vrot.slane %v1154_v46, 1  ;;  %v1233_v49 = vrot.slane %v1232_v17, 1  ;;  %v1000_v58 = vadd.f32 %v999_v32, %v998_v21  ;;  %v9034_v15 = vld [vmem:[#allocation100_spill] sm:$0xff]  ;;  %v9037_v13 = vld [vmem:[#allocation118_spill] sm:$0xff] }
 0x25c   : > { %v1311_v42 = vrot.slane %v1310_v31, 1  ;;  %v1389_v56 = vrot.slane %v1388_v3, 1  ;;  %v1468_v14 = vadd.f32 %v1467_v19, %v1466_v11  ;;  %v7085_v44 = vmul.f32 0.015625, %v922_v23  ;;  %v9050_v25 = vld [vmem:[#allocation74_spill] sm:$0xff]  ;;  %v9053_v30 = vld [vmem:[#allocation104_spill] sm:$0xff]  ;;  %v9074_v23 = vld [vmem:[#allocation79_spill] sm:$0xff] }
 0x25d   : > { %v1078_v9 = vadd.f32 %v1077_v16, %v1076_v53  ;;  %v1156_v62 = vadd.f32 %v1155_v51, %v1154_v46  ;;  %v1234_v22 = vadd.f32 %v1233_v49, %v1232_v17  ;;  %v7087_v5 = vmul.f32 0.015625, %v1000_v58  ;;  %v9035_v53 = vld [vmem:[#allocation113_spill] sm:$0xff]  ;;  %v9036_v17 = vld [vmem:[#allocation114_spill] sm:$0xff]  ;;  %v9058_v32 = vld [vmem:[#allocation96_spill] sm:$0xff] }
 0x25e   : > { %v1312_v28 = vadd.f32 %v1311_v42, %v1310_v31  ;;  %v1390_v33 = vadd.f32 %v1389_v56, %v1388_v3  ;;  %9010 = vst [vmem:[#allocation84_spill] sm:$0xff] %v7085_v44  ;;  %v7099_v29 = vmul.f32 0.015625, %v1468_v14  ;;  %v1774_v61 = vunpack.c.l.bf16 %v9026_v20  ;;  %v9038_v3 = vld [vmem:[#allocation122_spill] sm:$0xff]  ;;  %v9042_v56 = vld [vmem:[#allocation72_spill] sm:$0xff]  ;;  %v9046_v20 = vld [vmem:[#allocation73_spill] sm:$0xff] }
 0x25f   : > { %9011 = vst [vmem:[#allocation85_spill] sm:$0xff] %v7087_v5  ;;  %v7089_v6 = vmul.f32 0.015625, %v1078_v9  ;;  %v7091_v7 = vmul.f32 0.015625, %v1156_v62  ;;  %v7093_v38 = vmul.f32 0.015625, %v1234_v22  ;;  %v1780_v18 = vunpack.c.l.bf16 %v9027_v48  ;;  %v9043_v9 = vld [vmem:[#allocation88_spill] sm:$0xff]  ;;  %v9044_v22 = vld [vmem:[#allocation102_spill] sm:$0xff] }
 0x260   : > { %v7095_v54 = vmul.f32 0.015625, %v1312_v28  ;;  %v7097_v50 = vmul.f32 0.015625, %v1390_v33  ;;  %9017 = vst [vmem:[#allocation69_spill] sm:$0xff] %v7099_v29  ;;  %v1786_v0 = vunpack.c.l.bf16 %v9028_v39  ;;  %v1822_v2 = vunpack.c.l.bf16 %v9034_v15  ;;  %v9045_v33 = vld [vmem:[#allocation65_spill] sm:$0xff]  ;;  %v9070_v5 = vld [vmem:[#allocation116_spill] sm:$0xff]  ;;  %v9075_v12 = vld [vmem:[#allocation106_spill] sm:$0xff] }
 0x261   : > { %9012 = vst [vmem:[#allocation86_spill] sm:$0xff] %v7089_v6  ;;  %9013 = vst [vmem:[#allocation13_spill] sm:$0xff] %v7091_v7  ;;  %v1828_v46 = vunpack.c.l.bf16 %v9035_v53  ;;  %v1834_v31 = vunpack.c.l.bf16 %v9036_v17  ;;  %v1870_v19 = vunpack.c.l.bf16 %v9042_v56  ;;  %v1876_v62 = vunpack.c.l.bf16 %v9043_v9  ;;  %v9052_v51 = vld [vmem:[#allocation93_spill] sm:$0xff]  ;;  %v9068_v7 = vld [vmem:[#allocation78_spill] sm:$0xff] }
 0x262   : > { %9014 = vst [vmem:[#allocation14_spill] sm:$0xff] %v7093_v38  ;;  %9015 = vst [vmem:[#allocation20_spill] sm:$0xff] %v7095_v54  ;;  %v1882_v28 = vunpack.c.l.bf16 %v9044_v22  ;;  %v1888_v14 = vunpack.c.l.bf16 %v9045_v33  ;;  %v1918_v42 = vunpack.c.l.bf16 %v9050_v25  ;;  %v1924_v58 = vunpack.c.l.bf16 %v9051_v52  ;;  %v9066_v54 = vld [vmem:[#allocation119_spill] sm:$0xff]  ;;  %v9069_v6 = vld [vmem:[#allocation105_spill] sm:$0xff] }
 0x263   : > { %9016 = vst [vmem:[#allocation49_spill] sm:$0xff] %v7097_v50  ;;  %v1930_v56 = vunpack.c.l.bf16 %v9052_v51  ;;  %v1936_v9 = vunpack.c.l.bf16 %v9053_v30  ;;  %v1942_v22 = vunpack.c.l.bf16 %v9054_v41  ;;  %v1966_v17 = vunpack.c.l.bf16 %v9058_v32  ;;  %v9067_v38 = vld [vmem:[#allocation127_spill] sm:$0xff]  ;;  %v9071_v44 = vld [vmem:[#allocation121_spill] sm:$0xff]  ;;  %v9078_v29 = vld [vmem:[#allocation80_spill] sm:$0xff] }
 0x264   : > { %v1972_v45 = vunpack.c.l.bf16 %v9059_v26  ;;  %v1978_v25 = vunpack.c.l.bf16 %v9060_v43  ;;  %v1984_v52 = vunpack.c.l.bf16 %v9061_v60  ;;  %v1990_v51 = vunpack.c.l.bf16 %v9062_v57  ;;  %v9076_v50 = vld [vmem:[#allocation117_spill] sm:$0xff]  ;;  %v9080_v53 = vld [vmem:[#allocation120_spill] sm:$0xff]  ;;  %v9081_v49 = vld [vmem:[#allocation63_spill] sm:$0xff] }
 0x265   : > { %v1996_v30 = vunpack.c.l.bf16 %v9063_v35  ;;  %v2014_v48 = vunpack.c.l.bf16 %v9066_v54  ;;  %v2020_v15 = vunpack.c.l.bf16 %v9067_v38  ;;  %v2026_v32 = vunpack.c.l.bf16 %v9068_v7 }
 0x266   : > { %v2032_v26 = vunpack.c.l.bf16 %v9069_v6  ;;  %v2038_v43 = vunpack.c.l.bf16 %v9070_v5  ;;  %v2044_v60 = vunpack.c.l.bf16 %v9071_v44  ;;  %v2050_v57 = vunpack.c.l.bf16 %v9072_v47 }
 0x267   : > { %v2062_v41 = vunpack.c.l.bf16 %v9074_v23  ;;  %v2068_v33 = vunpack.c.l.bf16 %v9075_v12  ;;  %v2074_v54 = vunpack.c.l.bf16 %v9076_v50  ;;  %v2080_v38 = vunpack.c.l.bf16 %v9077_v55 }
 0x268   : > { %v2086_v7 = vunpack.c.l.bf16 %v9078_v29  ;;  %v2092_v6 = vunpack.c.l.bf16 %v9079_v1  ;;  %v2098_v5 = vunpack.c.l.bf16 %v9080_v53  ;;  %v2104_v44 = vunpack.c.l.bf16 %v9081_v49 }
 0x269   : > { %v9082_v47 = vunpack.c.l.bf16 %v9018_v59  ;;  %v9083_v35 = vunpack.c.l.bf16 %v9019_v37  ;;  %v2236_v23 = vadd.f32 %v1780_v18, %v1774_v61  ;;  %v2314_v10 = vadd.f32 %v1828_v46, %v1822_v2 }
 0x26a   : > { %v2392_v12 = vadd.f32 %v1876_v62, %v1870_v19  ;;  %v2470_v24 = vadd.f32 %v1924_v58, %v1918_v42  ;;  %v2548_v50 = vadd.f32 %v1972_v45, %v1966_v17  ;;  %v9084_v55 = vunpack.c.l.bf16 %v9020_v8 }
 0x26b   : > { %v2158_v21 = vadd.f32 %v9083_v35, %v9082_v47  ;;  %v2237_v29 = vadd.f32 %v2236_v23, %v1786_v0  ;;  %v2626_v39 = vadd.f32 %v2020_v15, %v2014_v48  ;;  %v2704_v1 = vadd.f32 %v2068_v33, %v2062_v41  ;;  %v9094_v48 = vld [vmem:[#allocation95_spill] sm:$0xff] }
 0x26c   : > { %v2315_v16 = vadd.f32 %v2314_v10, %v1834_v31  ;;  %v2393_v53 = vadd.f32 %v2392_v12, %v1882_v28  ;;  %v2471_v34 = vadd.f32 %v2470_v24, %v1930_v56  ;;  %v2549_v49 = vadd.f32 %v2548_v50, %v1978_v25  ;;  %v9100_v25 = vld [vmem:[#allocation89_spill] sm:$0xff]  ;;  %v9108_v12 = vld [vmem:[#allocation66_spill] sm:$0xff] }
 0x26d   : > { %v2159_v11 = vadd.f32 %v2158_v21, %v9084_v55  ;;  %v9085_v59 = vunpack.c.l.bf16 %v9021_v27  ;;  %v9086_v37 = vunpack.c.l.bf16 %v9029_v40  ;;  %v2627_v18 = vadd.f32 %v2626_v39, %v2026_v32 }
 0x26e   : > { %v2705_v2 = vadd.f32 %v2704_v1, %v2074_v54  ;;  %v9087_v45 = vunpack.c.l.bf16 %v9037_v13  ;;  %v2394_v8 = vadd.f32 %v2393_v53, %v1888_v14  ;;  %v2472_v21 = vadd.f32 %v2471_v34, %v1936_v9  ;;  %v9098_v9 = vld [vmem:[#allocation81_spill] sm:$0xff] }
 0x26f   : > { %v2160_v63 = vadd.f32 %v2159_v11, %v9085_v59  ;;  %v2238_v61 = vadd.f32 %v2237_v29, %v9086_v37  ;;  %v2550_v0 = vadd.f32 %v2549_v49, %v1984_v52  ;;  %v9088_v42 = vunpack.c.l.bf16 %v9022_v36  ;;  %v9110_v29 = vld [vmem:[#allocation90_spill] sm:$0xff]  ;;  %v9112_v49 = vld [vmem:[#allocation101_spill] sm:$0xff]  ;;  %v9114_v37 = vld [vmem:[#allocation83_spill] sm:$0xff] }
 0x270   : > { %v2316_v46 = vadd.f32 %v2315_v16, %v9087_v45  ;;  %v9089_v24 = vunpack.c.l.bf16 %v9030_v4  ;;  %v2628_v58 = vadd.f32 %v2627_v18, %v2032_v26  ;;  %v2706_v27 = vadd.f32 %v2705_v2, %v2080_v38  ;;  %v9092_v16 = vld [vmem:[#allocation5_spill] sm:$0xff]  ;;  %v9096_v4 = vld [vmem:[#allocation123_spill] sm:$0xff]  ;;  %v9116_v2 = vld [vmem:[#allocation110_spill] sm:$0xff] }
 0x271   : > { %v2161_v10 = vadd.f32 %v2160_v63, %v9088_v42  ;;  %v9090_v11 = vunpack.c.l.bf16 %v9038_v3  ;;  %v9091_v19 = vunpack.c.l.bf16 %v9046_v20  ;;  %v2473_v28 = vadd.f32 %v2472_v21, %v1942_v22  ;;  %v9102_v22 = vld [vmem:[#allocation59_spill] sm:$0xff] }
 0x272   : > { %v2239_v31 = vadd.f32 %v2238_v61, %v9089_v24  ;;  %v2551_v13 = vadd.f32 %v2550_v0, %v1990_v51  ;;  %v9093_v14 = vunpack.c.l.bf16 %v9092_v16  ;;  %v9095_v39 = vunpack.c.l.bf16 %v9094_v48  ;;  %v9104_v26 = vld [vmem:[#allocation99_spill] sm:$0xff] }
 0x273   : > { %v2317_v40 = vadd.f32 %v2316_v46, %v9090_v11  ;;  %v2395_v62 = vadd.f32 %v2394_v8, %v9091_v19  ;;  %v2629_v63 = vadd.f32 %v2628_v58, %v2038_v43  ;;  %v2707_v15 = vadd.f32 %v2706_v27, %v2086_v7  ;;  %v9106_v43 = vld [vmem:[#allocation124_spill] sm:$0xff]  ;;  %v9118_v8 = vld [vmem:[#allocation125_spill] sm:$0xff]  ;;  %v9120_v42 = vld [vmem:[#allocation111_spill] sm:$0xff] }
 0x274   : > { %v2162_v34 = vadd.f32 %v2161_v10, %v9093_v14  ;;  %v2240_v36 = vadd.f32 %v2239_v31, %v9095_v39  ;;  %v9097_v17 = vunpack.c.l.bf16 %v9096_v4  ;;  %v9099_v33 = vunpack.c.l.bf16 %v9098_v9  ;;  %v9122_v31 = vld [vmem:[#allocation91_spill] sm:$0xff] }
 0x275   : > { %v9101_v52 = vunpack.c.l.bf16 %v9100_v25  ;;  %v2552_v41 = vadd.f32 %v2551_v13, %v1996_v30  ;;  %v9103_v51 = vunpack.c.l.bf16 %v9102_v22  ;;  %v9105_v35 = vunpack.c.l.bf16 %v9104_v26  ;;  %v9124_v11 = vld [vmem:[#allocation115_spill] sm:$0xff]  ;;  %v9126_v13 = vld [vmem:[#allocation92_spill] sm:$0xff] }
 0x276   : > { %v2318_v56 = vadd.f32 %v2317_v40, %v9097_v17  ;;  %v2396_v3 = vadd.f32 %v2395_v62, %v9099_v33  ;;  %v2630_v38 = vadd.f32 %v2629_v63, %v2044_v60  ;;  %v2708_v47 = vadd.f32 %v2707_v15, %v2092_v6 }
 0x277   : > { %v2474_v20 = vadd.f32 %v2473_v28, %v9101_v52  ;;  %v2163_v32 = vadd.f32 %v2162_v34, %v9103_v51  ;;  %v2241_v54 = vadd.f32 %v2240_v36, %v9105_v35  ;;  %v9107_v7 = vunpack.c.l.bf16 %v9106_v43 }
 0x278   : > { %v9109_v50 = vunpack.c.l.bf16 %v9108_v12  ;;  %v9111_v1 = vunpack.c.l.bf16 %v9110_v29  ;;  %v9113_v59 = vunpack.c.l.bf16 %v9112_v49  ;;  %v9115_v61 = vunpack.c.l.bf16 %v9114_v37 }
 0x279   : > { %v2319_v23 = vadd.f32 %v2318_v56, %v9107_v7  ;;  %v9117_v45 = vunpack.c.l.bf16 %v9116_v2  ;;  %v2631_v60 = vadd.f32 %v2630_v38, %v2050_v57  ;;  %v2709_v6 = vadd.f32 %v2708_v47, %v2098_v5 }
 0x27a   : > { %v2397_v55 = vadd.f32 %v2396_v3, %v9109_v50  ;;  %v2475_v53 = vadd.f32 %v2474_v20, %v9111_v1  ;;  %v2553_v30 = vadd.f32 %v2552_v41, %v9113_v59  ;;  %v2164_v18 = vadd.f32 %v2163_v32, %v9115_v61 }
 0x27b   : > { %v2242_v46 = vadd.f32 %v2241_v54, %v9117_v45  ;;  %v9119_v21 = vunpack.c.l.bf16 %v9118_v8  ;;  %v9121_v10 = vunpack.c.l.bf16 %v9120_v42  ;;  %v9123_v58 = vunpack.c.l.bf16 %v9122_v31 }
 0x27c   : > { %v9125_v40 = vunpack.c.l.bf16 %v9124_v11  ;;  %v2165_v62 = vrot.slane %v2164_v18, 4  ;;  %v9127_v16 = vunpack.c.l.bf16 %v9126_v13  ;;  %v2710_v34 = vadd.f32 %v2709_v6, %v2104_v44  ;;  %v9131_v13 = vld [vmem:[#allocation13_spill] sm:$0xff] }
 0x27d   : > { %v2320_v0 = vadd.f32 %v2319_v23, %v9119_v21  ;;  %v2398_v24 = vadd.f32 %v2397_v55, %v9121_v10  ;;  %v2476_v27 = vadd.f32 %v2475_v53, %v9123_v58  ;;  %v2243_v28 = vrot.slane %v2242_v46, 4 }
 0x27e   : > { %v2554_v19 = vadd.f32 %v2553_v30, %v9125_v40  ;;  %v2632_v14 = vadd.f32 %v2631_v60, %v9127_v16  ;;  %v2166_v36 = vadd.f32 %v2165_v62, %v2164_v18  ;;  %v2711_v4 = vrot.slane %v2710_v34, 4  ;;  %v9129_v40 = vld [vmem:[#allocation85_spill] sm:$0xff]  ;;  %v9130_v62 = vld [vmem:[#allocation86_spill] sm:$0xff] }
 0x27f   : > { %v2321_v57 = vrot.slane %v2320_v0, 4  ;;  %v2399_v5 = vrot.slane %v2398_v24, 4  ;;  %v2477_v48 = vrot.slane %v2476_v27, 4  ;;  %v2244_v63 = vadd.f32 %v2243_v28, %v2242_v46 }
 0x280   : > { %v2555_v39 = vrot.slane %v2554_v19, 4  ;;  %v2633_v15 = vrot.slane %v2632_v14, 4  ;;  %v2167_v3 = vrot.slane %v2166_v36, 2  ;;  %v2712_v20 = vadd.f32 %v2711_v4, %v2710_v34 }
 0x281   : > { %v2322_v17 = vadd.f32 %v2321_v57, %v2320_v0  ;;  %v2400_v56 = vadd.f32 %v2399_v5, %v2398_v24  ;;  %v2478_v9 = vadd.f32 %v2477_v48, %v2476_v27  ;;  %v2245_v25 = vrot.slane %v2244_v63, 2  ;;  %v9128_v27 = vld [vmem:[#allocation84_spill] sm:$0xff]  ;;  %v9134_v48 = vld [vmem:[#allocation49_spill] sm:$0xff] }
 0x282   : > { %v2556_v33 = vadd.f32 %v2555_v39, %v2554_v19  ;;  %v2634_v52 = vadd.f32 %v2633_v15, %v2632_v14  ;;  %v2168_v32 = vadd.f32 %v2167_v3, %v2166_v36  ;;  %v2713_v54 = vrot.slane %v2712_v20, 2  ;;  %v9132_v14 = vld [vmem:[#allocation14_spill] sm:$0xff]  ;;  %v9133_v57 = vld [vmem:[#allocation20_spill] sm:$0xff]  ;;  %v9135_v36 = vld [vmem:[#allocation69_spill] sm:$0xff] }
 0x283   : > { %v2323_v41 = vrot.slane %v2322_v17, 2  ;;  %v2401_v22 = vrot.slane %v2400_v56, 2  ;;  %v2479_v51 = vrot.slane %v2478_v9, 2  ;;  %v2246_v26 = vadd.f32 %v2245_v25, %v2244_v63  ;;  %v9137_v3 = vld [vmem:[#allocation75_spill] sm:$0xff] }
 0x284   : > { %v2557_v44 = vrot.slane %v2556_v33, 2  ;;  %v2635_v35 = vrot.slane %v2634_v52, 2  ;;  %v2169_v23 = vrot.slane %v2168_v32, 1  ;;  %v2714_v55 = vadd.f32 %v2713_v54, %v2712_v20 }
 0x285   : > { %v2324_v38 = vadd.f32 %v2323_v41, %v2322_v17  ;;  %v2402_v47 = vadd.f32 %v2401_v22, %v2400_v56  ;;  %v2480_v43 = vadd.f32 %v2479_v51, %v2478_v9  ;;  %v2247_v12 = vrot.slane %v2246_v26, 1 }
 0x286   : > { %v2558_v7 = vadd.f32 %v2557_v44, %v2556_v33  ;;  %v2636_v50 = vadd.f32 %v2635_v35, %v2634_v52  ;;  %v2170_v59 = vadd.f32 %v2169_v23, %v2168_v32  ;;  %v2715_v61 = vrot.slane %v2714_v55, 1  ;;  %v9136_v33 = vld [vmem:[#allocation71_spill] sm:$0xff] }
 0x287   : > { %v2325_v29 = vrot.slane %v2324_v38, 1  ;;  %v2403_v1 = vrot.slane %v2402_v47, 1  ;;  %v2481_v53 = vrot.slane %v2480_v43, 1  ;;  %v2248_v30 = vadd.f32 %v2247_v12, %v2246_v26 }
 0x288   : > { %v2559_v49 = vrot.slane %v2558_v7, 1  ;;  %v2637_v37 = vrot.slane %v2636_v50, 1  ;;  %v2716_v6 = vadd.f32 %v2715_v61, %v2714_v55  ;;  %v2734_v8 = vmul.f32 0.015625, %v2170_v59 }
 0x289   : > { %v2326_v18 = vadd.f32 %v2325_v29, %v2324_v38  ;;  %v2404_v2 = vadd.f32 %v2403_v1, %v2402_v47  ;;  %v2482_v45 = vadd.f32 %v2481_v53, %v2480_v43  ;;  %v2740_v21 = vmul.f32 0.015625, %v2248_v30  ;;  %v3396_v38 = vld [vmem:[%s7255_s3] ss:$0 sm:$0xff] }
 0x28a   : > { %v2560_v46 = vadd.f32 %v2559_v49, %v2558_v7  ;;  %v2638_v60 = vadd.f32 %v2637_v37, %v2636_v50  ;;  %v2776_v58 = vmul.f32 0.015625, %v2716_v6  ;;  %v2782_v11 = vsub.f32 %v9128_v27, %v2734_v8  ;;  %v3397_v53 = vld [vmem:[%s7256_s4] ss:$0 sm:$0xff] }
 0x28b   : > { %v2746_v0 = vmul.f32 0.015625, %v2326_v18  ;;  %v2752_v42 = vmul.f32 0.015625, %v2404_v2  ;;  %v2758_v10 = vmul.f32 0.015625, %v2482_v45  ;;  %v2788_v19 = vsub.f32 %v9129_v40, %v2740_v21  ;;  %v3398_v37 = vld [vmem:[#allocation2] ss:$0 sm:$0xff] }
 0x28c   : > { %v2764_v24 = vmul.f32 0.015625, %v2560_v46  ;;  %v2770_v31 = vmul.f32 0.015625, %v2638_v60  ;;  %v2824_v63 = vsub.f32 %v9135_v36, %v2776_v58  ;;  %v2830_v15 = vand.u32 2147483647, %v2782_v11 }
 0x28d   : > { %v2794_v28 = vsub.f32 %v9130_v62, %v2746_v0  ;;  %v2800_v16 = vsub.f32 %v9131_v13, %v2752_v42  ;;  %v2806_v34 = vsub.f32 %v9132_v14, %v2758_v10  ;;  %v2836_v4 = vand.u32 2147483647, %v2788_v19 }
 0x28e   : > { %v2812_v5 = vsub.f32 %v9133_v57, %v2764_v24  ;;  %v2818_v39 = vsub.f32 %v9134_v48, %v2770_v31  ;;  %v3436_v25 = vadd.f32 %v9137_v3, %v9136_v33  ;;  %v2872_v51 = vand.u32 2147483647, %v2824_v63 }
 0x28f   : > { %v2842_v17 = vand.u32 2147483647, %v2794_v28  ;;  %v2848_v56 = vand.u32 2147483647, %v2800_v16  ;;  %v2854_v9 = vand.u32 2147483647, %v2806_v34  ;;  %v3060_v20 = vsel %vm3025_vm0, %v2836_v4, %v2830_v15 }
 0x290   : > { %v2860_v52 = vand.u32 2147483647, %v2812_v5  ;;  %v2866_v41 = vand.u32 2147483647, %v2818_v39  ;;  %v3147_v47 = vadd.f32 %v3436_v25, %v3396_v38  ;;  %v3668_v30 = vmov 0  }
 0x291   : > { %v3061_v22 = vsel %vm3027_vm1, %v2842_v17, %v3060_v20  ;;  %3613 = vset.pattern.permute.xlu0 %v3668_v30 }
 0x292   : > { %v3062_v44 = vsel %vm3029_vm2, %v2848_v56, %v3061_v22 }
 0x293   : > { %v3063_v32 = vsel %vm3031_vm3, %v2854_v9, %v3062_v44 }
 0x294   : > { %v3064_v26 = vsel %vm3033_vm4, %v2860_v52, %v3063_v32 }
 0x295   : > { %v3065_v35 = vsel %vm3035_vm5, %v2866_v41, %v3064_v26 }
 0x296   : > { %v3066_v54 = vsel %vm3037_vm6, %v2872_v51, %v3065_v35  ;;  %v3469_v43 = vpop.f32.mrb[0].mxu1 }
 0x297   : > { %3285 = vmatmul.mubr.f32.vlgmr.msra.gmra.mrb[2].mxu0 %v3066_v54  ;;  %v3470_v7 = vpop.f32.mrb[1].mxu1 }
 0x298   : > { %v3471_v23 = vadd.f32 %v3470_v7, %v3469_v43 }
 0x29a   : > { %v3217_v12 = vadd.f32 %v3471_v23, %v3147_v47 }
 0x36a   : > { %v3504_v50 = vpop.f32.mrb[2].mxu0 }
 0x36b   : > { %v3505_v55 = vpop.f32.mrb[3].mxu0 }
 0x36c   : > { %v3506_v29 = vadd.f32 %v3505_v55, %v3504_v50 }
 0x36e   : > { %v3287_v1 = vadd.f32 %v3506_v29, %v3217_v12 }
 0x370   : > { %v3290_v49 = vmax.f32 %v3287_v1, 0.0 }
 0x372   : > { %v3298_v59 = vmul.f32 %v3397_v53, %v3290_v49 }
 0x374   : > { %3299 = vadd.xlane.f32.xlu0 %v3298_v59 }
 0x401   : > { %v3300_v61 = vpop.xlane.xlu0 %3299 }
 0x402   : > { %v3308_v18 = vadd.f32 %v3398_v37, %v3300_v61 }
 0x404   : > { %v3399_v2 = vmul.f32 -1.442695, %v3308_v18 }
 0x406   : > { %3614 = vpow2.f32 %v3399_v2 }
 0x410   : > { %v3615_v45 = vpop.eup %3614 }
 0x411   : > { %v3312_v46 = vadd.f32 1.0, %v3615_v45 }
 0x413   : > { %3616 = vrcp.f32 %v3312_v46 }
 0x41d   : > { %v3617_v60 = vpop.eup %3616 }
 0x41e   : > { %3317 = vperm.xlu0 %3613, %v3617_v60  }
 0x49d   : > { %v3318_v6 = vpop.permute.xlu0 %3317 }
 0x49e   : > { %3320 = vst [vmem:[%s281_s11] sm:$0xff] %v3318_v6 }
 0x49f PF: > { %s18_s23 = sadd.s32 1, %s3666_s23  }
 0x4a0   : > { %p15_p5 = scmp.ge.s32.totalorder %s18_s23, 4  }
 0x4a2   :  { %17 = sbr.rel (!%p15_p5) target bundleno = 3 (0x3), region = 77 }

</bundles_post_ra>
